<compile_context>
chip_gen: v7x
topology: tpu7x:2x2x1
jax: 0.10.0
libtpu: 0.0.40
codegen_flags: <defaults>
</compile_context>

<pallas_src>
import jax
import jax.numpy as jnp
from jax.experimental import pallas as pl
from jax.experimental.pallas import tpu as pltpu

F_PAD = 128          # feature lane width (in_ch and hidden both padded to this)
OUT_PAD = 128        # padded output width (lane-dense final store)
B_SUB = 8            # graph count padded to a sublane multiple
TILE = 128           # attention tile (target rows x source cols)
_MASK = -1e30        # additive mask value / online-softmax init (finite)


# ---------------------------------------------------------------------------
# Fused kernel: 3x GATConv (+ReLU) -> global_max_pool -> MLP head -> sigmoid
# grid = (layer, target-row tile, source-column tile)
# ---------------------------------------------------------------------------
def _fused_gat_kernel(x_ref, adjb_ref, w_ref, asrc_ref, adst_ref, bgat_ref,
                      gmask_ref, news_ref, w0_ref, b0_ref, wn_ref, bn_ref,
                      w1h_ref, w1n_ref, b1_ref,
                      out_ref,
                      h_sc, hlin_sc, m_sc, l_sc, acc_sc):
    l = pl.program_id(0)
    i = pl.program_id(1)
    j = pl.program_id(2)
    nl = pl.num_programs(0)
    ni = pl.num_programs(1)
    nj = pl.num_programs(2)
    ti = acc_sc.shape[0]
    tj = adjb_ref.shape[1]

    # ---- very first step: load x into the resident node-state scratch ------
    @pl.when((l == 0) & (i == 0) & (j == 0))
    def _():
        h_sc[...] = x_ref[...]

    # ---- once per layer: h_lin = h @ W_l  (kept resident in VMEM) ----------
    @pl.when((i == 0) & (j == 0))
    def _():
        hlin_sc[...] = jnp.dot(h_sc[...].astype(jnp.bfloat16),
                               w_ref[0].astype(jnp.bfloat16),
                               preferred_element_type=jnp.float32)

    # ---- online-softmax attention: row tile i  x  column tile j ------------
    @pl.when(j == 0)
    def _():
        m_sc[...] = jnp.full(m_sc.shape, _MASK, dtype=m_sc.dtype)
        l_sc[...] = jnp.zeros(l_sc.shape, dtype=l_sc.dtype)
        acc_sc[...] = jnp.zeros(acc_sc.shape, dtype=acc_sc.dtype)

    row = pl.multiple_of(i * ti, ti)
    col = pl.multiple_of(j * tj, tj)
    hi = hlin_sc[pl.ds(row, ti), :]                  # [ti, F]  target features
    hj = hlin_sc[pl.ds(col, tj), :]                  # [tj, F]  source features

    # per-node attention scalars (f32, tiny matvecs)
    a_dst = jnp.sum(hi * adst_ref[0], axis=-1, keepdims=True)          # [ti, 1]
    a_src = jax.lax.dot_general(asrc_ref[0], hj, (((1,), (1,)), ((), ())),
                                preferred_element_type=jnp.float32)    # [1, tj]

    s = a_dst + a_src                                # [ti, tj]
    s = jnp.where(s > 0.0, s, 0.2 * s)               # LeakyReLU(0.2)
    s = s + adjb_ref[...].astype(jnp.float32)        # additive edge mask (bf16)

    m_new = jnp.maximum(m_sc[...], jnp.max(s, axis=-1, keepdims=True))
    corr = jnp.exp(m_sc[...] - m_new)
    p = jnp.exp(s - m_new)
    l_sc[...] = corr * l_sc[...] + jnp.sum(p, axis=-1, keepdims=True)
    acc_sc[...] = corr * acc_sc[...] + jnp.dot(p.astype(jnp.bfloat16),
                                               hj.astype(jnp.bfloat16),
                                               preferred_element_type=jnp.float32)
    m_sc[...] = m_new

    # ---- last column tile: normalize, +bias, ReLU, write new node state ----
    @pl.when(j == nj - 1)
    def _():
        inv_l = pl.reciprocal(l_sc[...], approx=True)
        h_sc[pl.ds(row, ti), :] = jnp.maximum(
            acc_sc[...] * inv_l + bgat_ref[0], 0.0)

    # ---- very last step: fused head (max-pool + lin0 + linnews + lin1) -----
    @pl.when((l == nl - 1) & (i == ni - 1) & (j == nj - 1))
    def _():
        h = h_sc[...]                                # [n_pad, F]   (all final)
        gm = gmask_ref[...]                          # [b_pad, n_pad, 1]
        # h >= 0 after ReLU, so masked max == max over nodes of (mask * h)
        pooled = jnp.max(gm * h[None, :, :], axis=1)                 # [b_pad, F]
        h0 = jnp.maximum(
            jnp.dot(pooled.astype(jnp.bfloat16), w0_ref[...].astype(jnp.bfloat16),
                    preferred_element_type=jnp.float32) + b0_ref[...], 0.0)
        news = jnp.maximum(
            jnp.dot(news_ref[...].astype(jnp.bfloat16), wn_ref[...].astype(jnp.bfloat16),
                    preferred_element_type=jnp.float32) + bn_ref[...], 0.0)
        # lin1(concat([h0, news], -1)) == h0 @ W1[:H] + news @ W1[H:]
        logits = (jnp.dot(h0.astype(jnp.bfloat16), w1h_ref[...].astype(jnp.bfloat16),
                          preferred_element_type=jnp.float32)
                  + jnp.dot(news.astype(jnp.bfloat16), w1n_ref[...].astype(jnp.bfloat16),
                            preferred_element_type=jnp.float32)
                  + b1_ref[...])
        out_ref[...] = jax.nn.sigmoid(logits)


# ---------------------------------------------------------------------------
# Wrapper: padding, adjacency-bias precompute, pallas_call glue
# ---------------------------------------------------------------------------
def _round_up(v, m):
    return (v + m - 1) // m * m


def _pad2d(a, rows, cols):
    a = a.astype(jnp.float32)
    return jnp.pad(a, ((0, rows - a.shape[0]), (0, cols - a.shape[1])))


def gat_forward(params, x, adj, batch, num_graphs):
    n, in_ch = x.shape
    hid = params["w0"].shape[0]
    out_ch = params["b1"].shape[1]
    # TODO(synk): feature dims > 128 would need an extra feature-tiling grid axis.
    assert in_ch <= F_PAD and hid <= F_PAD and out_ch <= OUT_PAD

    n_pad = max(_round_up(n, TILE), TILE)
    b_pad = _round_up(max(num_graphs, 1), B_SUB)

    # node features, lane-dense padded
    x_pad = _pad2d(x, n_pad, F_PAD)

    # adjacency -> additive attention bias (bf16), computed ONCE for all layers
    adj_sl = jnp.maximum(adj.astype(jnp.float32), jnp.eye(n, dtype=jnp.float32))
    adj_pad = jnp.zeros((n_pad, n_pad), jnp.float32).at[:n, :n].set(adj_sl)
    adj_pad = jnp.maximum(adj_pad, jnp.eye(n_pad, dtype=jnp.float32))  # pad self-loops
    adj_bias = ((adj_pad - 1.0) * (-_MASK)).astype(jnp.bfloat16) * jnp.bfloat16(-1.0)
    adj_bias = ((adj_pad - 1.0) * 1e30).astype(jnp.bfloat16)           # 0 / -1e30

    # stacked per-layer GAT parameters, all padded to [F_PAD, F_PAD] / [1, F_PAD]
    keys = ("gat1", "gat2", "gat3")
    w_stack = jnp.stack([_pad2d(params[k][0], F_PAD, F_PAD) for k in keys])
    asrc_stack = jnp.stack([_pad2d(params[k][1], 1, F_PAD) for k in keys])
    adst_stack = jnp.stack([_pad2d(params[k][2], 1, F_PAD) for k in keys])
    bgat_stack = jnp.stack([_pad2d(params[k][3], 1, F_PAD) for k in keys])

    # graph-membership mask [b_pad, n_pad, 1] (vectorized global_max_pool)
    gm = (batch.astype(jnp.int32)[None, :] ==
          jnp.arange(b_pad, dtype=jnp.int32)[:, None]).astype(jnp.float32)
    g_mask = jnp.zeros((b_pad, n_pad), jnp.float32).at[:, :n].set(gm)[:, :, None]

    # root node of every graph (plain-JAX data-dependent gather)
    diff = batch[1:] - batch[:-1]
    root = jnp.nonzero(diff, size=num_graphs - 1)[0].astype(jnp.int32)
    root = jnp.concatenate([jnp.zeros((1,), jnp.int32), root + 1])
    news_x = _pad2d(x[root], b_pad, F_PAD)

    # head weights, padded lane-dense
    w0 = _pad2d(params["w0"], F_PAD, F_PAD)
    b0 = _pad2d(params["b0"], 1, F_PAD)
    wn = _pad2d(params["wn"], F_PAD, F_PAD)
    bn = _pad2d(params["bn"], 1, F_PAD)
    w1h = _pad2d(params["w1h"], F_PAD, OUT_PAD)
    w1n = _pad2d(params["w1n"], F_PAD, OUT_PAD)
    b1 = _pad2d(params["b1"], 1, OUT_PAD)

    nt = n_pad // TILE
    grid = (3, nt, nt)

    in_specs = [
        pl.BlockSpec((n_pad, F_PAD), lambda l, i, j: (0, 0)),        # x
        pl.BlockSpec((TILE, TILE), lambda l, i, j: (i, j)),          # adj bias
        pl.BlockSpec((1, F_PAD, F_PAD), lambda l, i, j: (l, 0, 0)),  # W stack
        pl.BlockSpec((1, 1, F_PAD), lambda l, i, j: (l, 0, 0)),      # a_src stack
        pl.BlockSpec((1, 1, F_PAD), lambda l, i, j: (l, 0, 0)),      # a_dst stack
        pl.BlockSpec((1, 1, F_PAD), lambda l, i, j: (l, 0, 0)),      # bias stack
        pl.BlockSpec((b_pad, n_pad, 1), lambda l, i, j: (0, 0, 0)),  # graph mask
        pl.BlockSpec((b_pad, F_PAD), lambda l, i, j: (0, 0)),        # news_x
        pl.BlockSpec((F_PAD, F_PAD), lambda l, i, j: (0, 0)),        # w0
        pl.BlockSpec((1, F_PAD), lambda l, i, j: (0, 0)),            # b0
        pl.BlockSpec((F_PAD, F_PAD), lambda l, i, j: (0, 0)),        # wn
        pl.BlockSpec((1, F_PAD), lambda l, i, j: (0, 0)),            # bn
        pl.BlockSpec((F_PAD, OUT_PAD), lambda l, i, j: (0, 0)),      # w1h
        pl.BlockSpec((F_PAD, OUT_PAD), lambda l, i, j: (0, 0)),      # w1n
        pl.BlockSpec((1, OUT_PAD), lambda l, i, j: (0, 0)),          # b1
    ]
    out_specs = pl.BlockSpec((b_pad, OUT_PAD), lambda l, i, j: (0, 0))
    scratch_shapes = [
        pltpu.VMEM((n_pad, F_PAD), jnp.float32),   # h   (resident node state)
        pltpu.VMEM((n_pad, F_PAD), jnp.float32),   # h @ W_l for current layer
        pltpu.VMEM((TILE, 1), jnp.float32),        # online-softmax running max
        pltpu.VMEM((TILE, 1), jnp.float32),        # online-softmax denominator
        pltpu.VMEM((TILE, F_PAD), jnp.float32),    # accumulator
    ]

    out = pl.pallas_call(
        _fused_gat_kernel,
        out_shape=jax.ShapeDtypeStruct((b_pad, OUT_PAD), jnp.float32),
        grid=grid,
        in_specs=in_specs,
        out_specs=out_specs,
        scratch_shapes=scratch_shapes,
        compiler_params=pltpu.CompilerParams(
            dimension_semantics=("arbitrary", "arbitrary", "arbitrary"),
            vmem_limit_bytes=48 * 1024 * 1024),
    )(x_pad, adj_bias, w_stack, asrc_stack, adst_stack, bgat_stack,
      g_mask, news_x, w0, b0, wn, bn, w1h, w1n, b1)

    return out[:num_graphs, :out_ch]


# ---------------------------------------------------------------------------
# Pure-JAX reference (for validation)
# ---------------------------------------------------------------------------
def gat_ref(params, x, adj, batch, num_graphs):
    n = x.shape[0]
    adj_sl = jnp.maximum(adj.astype(jnp.float32), jnp.eye(n, dtype=jnp.float32))

    def conv(h, p):
        w, a_src, a_dst, b = p
        hl = h @ w
        asrc = hl @ a_src[0]
        adst = hl @ a_dst[0]
        e = adst[:, None] + asrc[None, :]
        e = jnp.where(e > 0, e, 0.2 * e)
        e = jnp.where(adj_sl > 0, e, -jnp.inf)
        att = jax.nn.softmax(e, axis=-1)
        return jnp.maximum(att @ hl + b, 0.0)

    h = conv(x, params["gat1"])
    h = conv(h, params["gat2"])
    h = conv(h, params["gat3"])
    pooled = jnp.stack(
        [jnp.max(jnp.where((batch == b)[:, None], h, -jnp.inf), axis=0)
         for b in range(num_graphs)])
    h0 = jnp.maximum(pooled @ params["w0"] + params["b0"], 0.0)
    diff = batch[1:] - batch[:-1]
    root = jnp.nonzero(diff, size=num_graphs - 1)[0]
    root = jnp.concatenate([jnp.zeros((1,), root.dtype), root + 1])
    news = jnp.maximum(x[root] @ params["wn"] + params["bn"], 0.0)
    logits = h0 @ params["w1h"] + news @ params["w1n"] + params["b1"]
    return jax.nn.sigmoid(logits)


# ---------------------------------------------------------------------------
# Deterministic parameter init (synthetic, not a checkpoint load)
# ---------------------------------------------------------------------------
def _glorot(key, shape):
    lim = (6.0 / (shape[0] + shape[1])) ** 0.5
    return jax.random.uniform(key, shape, jnp.float32, -lim, lim)


def init_params(key, in_ch, hid, out_ch):
    ks = jax.random.split(key, 14)
    params = {}
    # GATConv: (W [Fin,Fout], att_src [1,Fout], att_dst [1,Fout], bias [1,Fout])
    params["gat1"] = (_glorot(ks[0], (in_ch, hid)), _glorot(ks[1], (1, hid)),
                      _glorot(ks[2], (1, hid)), jnp.zeros((1, hid), jnp.float32))
    params["gat2"] = (_glorot(ks[3], (hid, hid)), _glorot(ks[4], (1, hid)),
                      _glorot(ks[5], (1, hid)), jnp.zeros((1, hid), jnp.float32))
    params["gat3"] = (_glorot(ks[6], (hid, hid)), _glorot(ks[7], (1, hid)),
                      _glorot(ks[8], (1, hid)), jnp.zeros((1, hid), jnp.float32))
    params["w0"] = _glorot(ks[9], (hid, hid))
    params["b0"] = jnp.zeros((1, hid), jnp.float32)
    params["wn"] = _glorot(ks[10], (in_ch, hid))
    params["bn"] = jnp.zeros((1, hid), jnp.float32)
    params["w1h"] = _glorot(ks[11], (hid, out_ch))
    params["w1n"] = _glorot(ks[12], (hid, out_ch))
    params["b1"] = jnp.zeros((1, out_ch), jnp.float32)
    return params


# ---------------------------------------------------------------------------

if __name__ == "__main__":
    N, IN_CH, HID, OUT_CH, NUM_GRAPHS = 200, 8, 32, 2, 2   # -> 2x2 attention tiles

    key = jax.random.PRNGKey(0)
    kx, kadj, kp = jax.random.split(key, 3)

    x = jax.random.normal(kx, (N, IN_CH), jnp.float32)
    adj = (jax.random.uniform(kadj, (N, N)) < 0.1).astype(jnp.float32)
    batch = jnp.concatenate([jnp.zeros(120, jnp.int32), jnp.ones(80, jnp.int32)])

    params = init_params(kp, IN_CH, HID, OUT_CH)

    out = gat_forward(params, x, adj, batch, NUM_GRAPHS)
    out = jax.block_until_ready(out)
    assert out.shape == (NUM_GRAPHS, OUT_CH)
    assert bool(jnp.all(jnp.isfinite(out)))
    assert bool(jnp.all((out >= 0.0) & (out <= 1.0)))

    ref = gat_ref(params, x, adj, batch, NUM_GRAPHS)
    err = float(jnp.max(jnp.abs(out - ref)))
    assert err < 5e-2, f"kernel vs reference max abs err {err}"

    print("KERNEL_OK")
</pallas_src>

<mosaic_0001>
module attributes {stable_mosaic.version = 11 : i64} {
  func.func @_fused_gat_kernel(%arg0: i32, %arg1: i32, %arg2: i32, %arg3: memref<256x128xf32, #tpu.memory_space<vmem>>, %arg4: memref<128x128xbf16, #tpu.memory_space<vmem>>, %arg5: memref<1x128x128xf32, #tpu.memory_space<vmem>>, %arg6: memref<1x1x128xf32, #tpu.memory_space<vmem>>, %arg7: memref<1x1x128xf32, #tpu.memory_space<vmem>>, %arg8: memref<1x1x128xf32, #tpu.memory_space<vmem>>, %arg9: memref<8x256x1xf32, #tpu.memory_space<vmem>>, %arg10: memref<8x128xf32, #tpu.memory_space<vmem>>, %arg11: memref<128x128xf32, #tpu.memory_space<vmem>>, %arg12: memref<1x128xf32, #tpu.memory_space<vmem>>, %arg13: memref<128x128xf32, #tpu.memory_space<vmem>>, %arg14: memref<1x128xf32, #tpu.memory_space<vmem>>, %arg15: memref<128x128xf32, #tpu.memory_space<vmem>>, %arg16: memref<128x128xf32, #tpu.memory_space<vmem>>, %arg17: memref<1x128xf32, #tpu.memory_space<vmem>>, %arg18: memref<8x128xf32, #tpu.memory_space<vmem>>, %arg19: memref<256x128xf32, #tpu.memory_space<vmem>>, %arg20: memref<256x128xf32, #tpu.memory_space<vmem>>, %arg21: memref<128x1xf32, #tpu.memory_space<vmem>>, %arg22: memref<128x1xf32, #tpu.memory_space<vmem>>, %arg23: memref<128x128xf32, #tpu.memory_space<vmem>>) attributes {dimension_semantics = [#tpu.dimension_semantics<arbitrary>, #tpu.dimension_semantics<arbitrary>, #tpu.dimension_semantics<arbitrary>], iteration_bounds = array<i64: 3, 2, 2>, scalar_prefetch = 0 : i64, scratch_operands = 5 : i64, tpu.core_type = #tpu.core_type<tc>, window_params = [{pipeline_mode = #tpu.pipeline_mode<synchronous>, transform_indices = @transform_0, window_bounds = array<i64: 256, 128>}, {transform_indices = @transform_1, window_bounds = array<i64: 128, 128>}, {transform_indices = @transform_2, window_bounds = array<i64: 1, 128, 128>}, {transform_indices = @transform_3, window_bounds = array<i64: 1, 1, 128>}, {transform_indices = @transform_4, window_bounds = array<i64: 1, 1, 128>}, {transform_indices = @transform_5, window_bounds = array<i64: 1, 1, 128>}, {pipeline_mode = #tpu.pipeline_mode<synchronous>, transform_indices = @transform_6, window_bounds = array<i64: 8, 256, 1>}, {pipeline_mode = #tpu.pipeline_mode<synchronous>, transform_indices = @transform_7, window_bounds = array<i64: 8, 128>}, {pipeline_mode = #tpu.pipeline_mode<synchronous>, transform_indices = @transform_8, window_bounds = array<i64: 128, 128>}, {pipeline_mode = #tpu.pipeline_mode<synchronous>, transform_indices = @transform_9, window_bounds = array<i64: 1, 128>}, {pipeline_mode = #tpu.pipeline_mode<synchronous>, transform_indices = @transform_10, window_bounds = array<i64: 128, 128>}, {pipeline_mode = #tpu.pipeline_mode<synchronous>, transform_indices = @transform_11, window_bounds = array<i64: 1, 128>}, {pipeline_mode = #tpu.pipeline_mode<synchronous>, transform_indices = @transform_12, window_bounds = array<i64: 128, 128>}, {pipeline_mode = #tpu.pipeline_mode<synchronous>, transform_indices = @transform_13, window_bounds = array<i64: 128, 128>}, {pipeline_mode = #tpu.pipeline_mode<synchronous>, transform_indices = @transform_14, window_bounds = array<i64: 1, 128>}, {pipeline_mode = #tpu.pipeline_mode<synchronous>, transform_indices = @transform_15, window_bounds = array<i64: 8, 128>}]} {
    %c0_i32 = arith.constant 0 : i32
    %0 = arith.cmpi eq, %arg0, %c0_i32 : i32
    %c0_i32_0 = arith.constant 0 : i32
    %1 = arith.cmpi eq, %arg1, %c0_i32_0 : i32
    %2 = arith.andi %0, %1 : i1
    %c0_i32_1 = arith.constant 0 : i32
    %3 = arith.cmpi eq, %arg2, %c0_i32_1 : i32
    %4 = arith.andi %2, %3 : i1
    %5 = arith.extui %4 : i1 to i32
    %c0_i32_2 = arith.constant 0 : i32
    %6 = arith.cmpi ne, %5, %c0_i32_2 : i32
    scf.if %6 {
      %c0_42 = arith.constant 0 : index
      %c0_43 = arith.constant 0 : index
      %78 = vector.load %arg3[%c0_42, %c0_43] : memref<256x128xf32, #tpu.memory_space<vmem>>, vector<256x128xf32>
      %c0_44 = arith.constant 0 : index
      %c0_45 = arith.constant 0 : index
      %79 = vector.load %arg19[%c0_44, %c0_45] : memref<256x128xf32, #tpu.memory_space<vmem>>, vector<256x128xf32>
      tpu.vector_store %arg19[%c0_44, %c0_45], %78 {strides = array<i32>} : memref<256x128xf32, #tpu.memory_space<vmem>>, vector<256x128xf32>,
    } else {
    }
    %c0_i32_3 = arith.constant 0 : i32
    %7 = arith.cmpi eq, %arg1, %c0_i32_3 : i32
    %c0_i32_4 = arith.constant 0 : i32
    %8 = arith.cmpi eq, %arg2, %c0_i32_4 : i32
    %9 = arith.andi %7, %8 : i1
    %10 = arith.extui %9 : i1 to i32
    %c0_i32_5 = arith.constant 0 : i32
    %11 = arith.cmpi ne, %10, %c0_i32_5 : i32
    scf.if %11 {
      %c0_42 = arith.constant 0 : index
      %c0_43 = arith.constant 0 : index
      %78 = vector.load %arg19[%c0_42, %c0_43] : memref<256x128xf32, #tpu.memory_space<vmem>>, vector<256x128xf32>
      %79 = arith.truncf %78 : vector<256x128xf32> to vector<256x128xbf16>
      %c0_44 = arith.constant 0 : index
      %c0_45 = arith.constant 0 : index
      %c0_46 = arith.constant 0 : index
      %80 = vector.load %arg5[%c0_44, %c0_45, %c0_46] : memref<1x128x128xf32, #tpu.memory_space<vmem>>, vector<1x128x128xf32>
      %81 = vector.shape_cast %80 : vector<1x128x128xf32> to vector<128x128xf32>
      %82 = arith.truncf %81 : vector<128x128xf32> to vector<128x128xbf16>
      %cst_47 = arith.constant dense<0.000000e+00> : vector<256x128xf32>
      %83 = tpu.matmul %79, %82, %cst_47 {dimension_numbers = #tpu.dot_dimension_numbers<[1], [0], [0], [1], [0, 0, 1, 1], [], []>} : vector<256x128xbf16>, vector<128x128xbf16>, vector<256x128xf32> -> vector<256x128xf32>
      %c0_48 = arith.constant 0 : index
      %c0_49 = arith.constant 0 : index
      %84 = vector.load %arg20[%c0_48, %c0_49] : memref<256x128xf32, #tpu.memory_space<vmem>>, vector<256x128xf32>
      tpu.vector_store %arg20[%c0_48, %c0_49], %83 {strides = array<i32>} : memref<256x128xf32, #tpu.memory_space<vmem>>, vector<256x128xf32>,
    } else {
    }
    %c0_i32_6 = arith.constant 0 : i32
    %12 = arith.cmpi eq, %arg2, %c0_i32_6 : i32
    %13 = arith.extui %12 : i1 to i32
    %c0_i32_7 = arith.constant 0 : i32
    %14 = arith.cmpi ne, %13, %c0_i32_7 : i32
    scf.if %14 {
      %cst_42 = arith.constant -1.000000e+30 : f32
      %78 = vector.broadcast %cst_42 : f32 to vector<128x1xf32>
      %c0_43 = arith.constant 0 : index
      %c0_44 = arith.constant 0 : index
      %79 = vector.load %arg21[%c0_43, %c0_44] : memref<128x1xf32, #tpu.memory_space<vmem>>, vector<128x1xf32>
      tpu.vector_store %arg21[%c0_43, %c0_44], %78 {strides = array<i32>} : memref<128x1xf32, #tpu.memory_space<vmem>>, vector<128x1xf32>,
      %cst_45 = arith.constant 0.000000e+00 : f32
      %80 = vector.broadcast %cst_45 : f32 to vector<128x1xf32>
      %c0_46 = arith.constant 0 : index
      %c0_47 = arith.constant 0 : index
      %81 = vector.load %arg22[%c0_46, %c0_47] : memref<128x1xf32, #tpu.memory_space<vmem>>, vector<128x1xf32>
      tpu.vector_store %arg22[%c0_46, %c0_47], %80 {strides = array<i32>} : memref<128x1xf32, #tpu.memory_space<vmem>>, vector<128x1xf32>,
      %cst_48 = arith.constant 0.000000e+00 : f32
      %82 = vector.broadcast %cst_48 : f32 to vector<128x128xf32>
      %c0_49 = arith.constant 0 : index
      %c0_50 = arith.constant 0 : index
      %83 = vector.load %arg23[%c0_49, %c0_50] : memref<128x128xf32, #tpu.memory_space<vmem>>, vector<128x128xf32>
      tpu.vector_store %arg23[%c0_49, %c0_50], %82 {strides = array<i32>} : memref<128x128xf32, #tpu.memory_space<vmem>>, vector<128x128xf32>,
    } else {
    }
    %c128_i32 = arith.constant 128 : i32
    %15 = arith.muli %arg1, %c128_i32 : i32
    %16 = tpu.assume_multiple %15, 128 : i32
    %c128_i32_8 = arith.constant 128 : i32
    %17 = arith.muli %arg2, %c128_i32_8 : i32
    %18 = tpu.assume_multiple %17, 128 : i32
    %19 = arith.index_cast %16 : i32 to index
    %c0 = arith.constant 0 : index
    %20 = vector.load %arg20[%19, %c0] : memref<256x128xf32, #tpu.memory_space<vmem>>, vector<128x128xf32>
    %21 = arith.index_cast %18 : i32 to index
    %c0_9 = arith.constant 0 : index
    %22 = vector.load %arg20[%21, %c0_9] : memref<256x128xf32, #tpu.memory_space<vmem>>, vector<128x128xf32>
    %c0_10 = arith.constant 0 : index
    %c0_11 = arith.constant 0 : index
    %c0_12 = arith.constant 0 : index
    %23 = vector.load %arg7[%c0_10, %c0_11, %c0_12] : memref<1x1x128xf32, #tpu.memory_space<vmem>>, vector<1x1x128xf32>
    %24 = vector.shape_cast %23 : vector<1x1x128xf32> to vector<1x128xf32>
    %25 = vector.broadcast %24 : vector<1x128xf32> to vector<128x128xf32>
    %26 = arith.mulf %20, %25 : vector<128x128xf32>
    %cst = arith.constant dense<0.000000e+00> : vector<128xf32>
    %27 = vector.multi_reduction <add>, %26, %cst [1] : vector<128x128xf32> to vector<128xf32>
    %28 = vector.shape_cast %27 : vector<128xf32> to vector<128x1xf32>
    %c0_13 = arith.constant 0 : index
    %c0_14 = arith.constant 0 : index
    %c0_15 = arith.constant 0 : index
    %29 = vector.load %arg6[%c0_13, %c0_14, %c0_15] : memref<1x1x128xf32, #tpu.memory_space<vmem>>, vector<1x1x128xf32>
    %30 = vector.shape_cast %29 : vector<1x1x128xf32> to vector<1x128xf32>
    %cst_16 = arith.constant dense<0.000000e+00> : vector<1x128xf32>
    %31 = tpu.matmul %30, %22, %cst_16 {dimension_numbers = #tpu.dot_dimension_numbers<[1], [1], [0], [0], [0, 0, 1, 0], [], []>} : vector<1x128xf32>, vector<128x128xf32>, vector<1x128xf32> -> vector<1x128xf32>
    %32 = vector.broadcast %28 : vector<128x1xf32> to vector<128x128xf32>
    %33 = vector.broadcast %31 : vector<1x128xf32> to vector<128x128xf32>
    %34 = arith.addf %32, %33 : vector<128x128xf32>
    %cst_17 = arith.constant 0.000000e+00 : f32
    %35 = vector.broadcast %cst_17 : f32 to vector<128x128xf32>
    %36 = arith.cmpf ogt, %34, %35 : vector<128x128xf32>
    %cst_18 = arith.constant 2.000000e-01 : f32
    %37 = vector.broadcast %cst_18 : f32 to vector<128x128xf32>
    %38 = arith.mulf %37, %34 : vector<128x128xf32>
    %39 = arith.select %36, %34, %38 : vector<128x128xi1>, vector<128x128xf32>
    %c0_19 = arith.constant 0 : index
    %c0_20 = arith.constant 0 : index
    %40 = vector.load %arg4[%c0_19, %c0_20] : memref<128x128xbf16, #tpu.memory_space<vmem>>, vector<128x128xbf16>
    %41 = arith.extf %40 : vector<128x128xbf16> to vector<128x128xf32>
    %42 = arith.addf %39, %41 : vector<128x128xf32>
    %c0_21 = arith.constant 0 : index
    %c0_22 = arith.constant 0 : index
    %43 = vector.load %arg21[%c0_21, %c0_22] : memref<128x1xf32, #tpu.memory_space<vmem>>, vector<128x1xf32>
    %cst_23 = arith.constant dense<0xFF800000> : vector<128xf32>
    %44 = vector.multi_reduction <maximumf>, %42, %cst_23 [1] : vector<128x128xf32> to vector<128xf32>
    %45 = vector.shape_cast %44 : vector<128xf32> to vector<128x1xf32>
    %46 = arith.maximumf %43, %45 : vector<128x1xf32>
    %c0_24 = arith.constant 0 : index
    %c0_25 = arith.constant 0 : index
    %47 = vector.load %arg21[%c0_24, %c0_25] : memref<128x1xf32, #tpu.memory_space<vmem>>, vector<128x1xf32>
    %48 = arith.subf %47, %46 : vector<128x1xf32>
    %49 = math.exp %48 : vector<128x1xf32>
    %50 = vector.broadcast %46 : vector<128x1xf32> to vector<128x128xf32>
    %51 = arith.subf %42, %50 : vector<128x128xf32>
    %52 = math.exp %51 : vector<128x128xf32>
    %c0_26 = arith.constant 0 : index
    %c0_27 = arith.constant 0 : index
    %53 = vector.load %arg22[%c0_26, %c0_27] : memref<128x1xf32, #tpu.memory_space<vmem>>, vector<128x1xf32>
    %54 = arith.mulf %49, %53 : vector<128x1xf32>
    %cst_28 = arith.constant dense<0.000000e+00> : vector<128xf32>
    %55 = vector.multi_reduction <add>, %52, %cst_28 [1] : vector<128x128xf32> to vector<128xf32>
    %56 = vector.shape_cast %55 : vector<128xf32> to vector<128x1xf32>
    %57 = arith.addf %54, %56 : vector<128x1xf32>
    %c0_29 = arith.constant 0 : index
    %c0_30 = arith.constant 0 : index
    %58 = vector.load %arg22[%c0_29, %c0_30] : memref<128x1xf32, #tpu.memory_space<vmem>>, vector<128x1xf32>
    tpu.vector_store %arg22[%c0_29, %c0_30], %57 {strides = array<i32>} : memref<128x1xf32, #tpu.memory_space<vmem>>, vector<128x1xf32>,
    %c0_31 = arith.constant 0 : index
    %c0_32 = arith.constant 0 : index
    %59 = vector.load %arg23[%c0_31, %c0_32] : memref<128x128xf32, #tpu.memory_space<vmem>>, vector<128x128xf32>
    %60 = vector.broadcast %49 : vector<128x1xf32> to vector<128x128xf32>
    %61 = arith.mulf %60, %59 : vector<128x128xf32>
    %62 = arith.truncf %52 : vector<128x128xf32> to vector<128x128xbf16>
    %63 = arith.truncf %22 : vector<128x128xf32> to vector<128x128xbf16>
    %cst_33 = arith.constant dense<0.000000e+00> : vector<128x128xf32>
    %64 = tpu.matmul %62, %63, %cst_33 {dimension_numbers = #tpu.dot_dimension_numbers<[1], [0], [0], [1], [0, 0, 1, 1], [], []>} : vector<128x128xbf16>, vector<128x128xbf16>, vector<128x128xf32> -> vector<128x128xf32>
    %65 = arith.addf %61, %64 : vector<128x128xf32>
    %c0_34 = arith.constant 0 : index
    %c0_35 = arith.constant 0 : index
    %66 = vector.load %arg23[%c0_34, %c0_35] : memref<128x128xf32, #tpu.memory_space<vmem>>, vector<128x128xf32>
    tpu.vector_store %arg23[%c0_34, %c0_35], %65 {strides = array<i32>} : memref<128x128xf32, #tpu.memory_space<vmem>>, vector<128x128xf32>,
    %c0_36 = arith.constant 0 : index
    %c0_37 = arith.constant 0 : index
    %67 = vector.load %arg21[%c0_36, %c0_37] : memref<128x1xf32, #tpu.memory_space<vmem>>, vector<128x1xf32>
    tpu.vector_store %arg21[%c0_36, %c0_37], %46 {strides = array<i32>} : memref<128x1xf32, #tpu.memory_space<vmem>>, vector<128x1xf32>,
    %c1_i32 = arith.constant 1 : i32
    %68 = arith.cmpi eq, %arg2, %c1_i32 : i32
    %69 = arith.extui %68 : i1 to i32
    %c0_i32_38 = arith.constant 0 : i32
    %70 = arith.cmpi ne, %69, %c0_i32_38 : i32
    scf.if %70 {
      %c0_42 = arith.constant 0 : index
      %c0_43 = arith.constant 0 : index
      %78 = vector.load %arg22[%c0_42, %c0_43] : memref<128x1xf32, #tpu.memory_space<vmem>>, vector<128x1xf32>
      %79 = tpu.reciprocal %78 {approx = true} : vector<128x1xf32> -> vector<128x1xf32>
      %c0_44 = arith.constant 0 : index
      %c0_45 = arith.constant 0 : index
      %80 = vector.load %arg23[%c0_44, %c0_45] : memref<128x128xf32, #tpu.memory_space<vmem>>, vector<128x128xf32>
      %81 = vector.broadcast %79 : vector<128x1xf32> to vector<128x128xf32>
      %82 = arith.mulf %80, %81 : vector<128x128xf32>
      %c0_46 = arith.constant 0 : index
      %c0_47 = arith.constant 0 : index
      %c0_48 = arith.constant 0 : index
      %83 = vector.load %arg8[%c0_46, %c0_47, %c0_48] : memref<1x1x128xf32, #tpu.memory_space<vmem>>, vector<1x1x128xf32>
      %84 = vector.shape_cast %83 : vector<1x1x128xf32> to vector<1x128xf32>
      %85 = vector.broadcast %84 : vector<1x128xf32> to vector<128x128xf32>
      %86 = arith.addf %82, %85 : vector<128x128xf32>
      %cst_49 = arith.constant 0.000000e+00 : f32
      %87 = vector.broadcast %cst_49 : f32 to vector<128x128xf32>
      %88 = arith.maximumf %86, %87 : vector<128x128xf32>
      %89 = arith.index_cast %16 : i32 to index
      %c0_50 = arith.constant 0 : index
      %90 = vector.load %arg19[%89, %c0_50] : memref<256x128xf32, #tpu.memory_space<vmem>>, vector<128x128xf32>
      tpu.vector_store %arg19[%89, %c0_50], %88 {strides = array<i32>} : memref<256x128xf32, #tpu.memory_space<vmem>>, vector<128x128xf32>,
    } else {
    }
    %c2_i32 = arith.constant 2 : i32
    %71 = arith.cmpi eq, %arg0, %c2_i32 : i32
    %c1_i32_39 = arith.constant 1 : i32
    %72 = arith.cmpi eq, %arg1, %c1_i32_39 : i32
    %73 = arith.andi %71, %72 : i1
    %c1_i32_40 = arith.constant 1 : i32
    %74 = arith.cmpi eq, %arg2, %c1_i32_40 : i32
    %75 = arith.andi %73, %74 : i1
    %76 = arith.extui %75 : i1 to i32
    %c0_i32_41 = arith.constant 0 : i32
    %77 = arith.cmpi ne, %76, %c0_i32_41 : i32
    scf.if %77 {
      %c0_42 = arith.constant 0 : index
      %c0_43 = arith.constant 0 : index
      %78 = vector.load %arg19[%c0_42, %c0_43] : memref<256x128xf32, #tpu.memory_space<vmem>>, vector<256x128xf32>
      %c0_44 = arith.constant 0 : index
      %c0_45 = arith.constant 0 : index
      %c0_46 = arith.constant 0 : index
      %79 = vector.load %arg9[%c0_44, %c0_45, %c0_46] : memref<8x256x1xf32, #tpu.memory_space<vmem>>, vector<8x256x1xf32>
      %80 = vector.shape_cast %78 : vector<256x128xf32> to vector<1x256x128xf32>
      %81 = vector.broadcast %79 : vector<8x256x1xf32> to vector<8x256x128xf32>
      %82 = vector.broadcast %80 : vector<1x256x128xf32> to vector<8x256x128xf32>
      %83 = arith.mulf %81, %82 : vector<8x256x128xf32>
      %cst_47 = arith.constant dense<0xFF800000> : vector<8x128xf32>
      %84 = vector.multi_reduction <maximumf>, %83, %cst_47 [1] : vector<8x256x128xf32> to vector<8x128xf32>
      %85 = arith.truncf %84 : vector<8x128xf32> to vector<8x128xbf16>
      %c0_48 = arith.constant 0 : index
      %c0_49 = arith.constant 0 : index
      %86 = vector.load %arg11[%c0_48, %c0_49] : memref<128x128xf32, #tpu.memory_space<vmem>>, vector<128x128xf32>
      %87 = arith.truncf %86 : vector<128x128xf32> to vector<128x128xbf16>
      %cst_50 = arith.constant dense<0.000000e+00> : vector<8x128xf32>
      %88 = tpu.matmul %85, %87, %cst_50 {dimension_numbers = #tpu.dot_dimension_numbers<[1], [0], [0], [1], [0, 0, 1, 1], [], []>} : vector<8x128xbf16>, vector<128x128xbf16>, vector<8x128xf32> -> vector<8x128xf32>
      %c0_51 = arith.constant 0 : index
      %c0_52 = arith.constant 0 : index
      %89 = vector.load %arg12[%c0_51, %c0_52] : memref<1x128xf32, #tpu.memory_space<vmem>>, vector<1x128xf32>
      %90 = vector.broadcast %89 : vector<1x128xf32> to vector<8x128xf32>
      %91 = arith.addf %88, %90 : vector<8x128xf32>
      %cst_53 = arith.constant 0.000000e+00 : f32
      %92 = vector.broadcast %cst_53 : f32 to vector<8x128xf32>
      %93 = arith.maximumf %91, %92 : vector<8x128xf32>
      %c0_54 = arith.constant 0 : index
      %c0_55 = arith.constant 0 : index
      %94 = vector.load %arg10[%c0_54, %c0_55] : memref<8x128xf32, #tpu.memory_space<vmem>>, vector<8x128xf32>
      %95 = arith.truncf %94 : vector<8x128xf32> to vector<8x128xbf16>
      %c0_56 = arith.constant 0 : index
      %c0_57 = arith.constant 0 : index
      %96 = vector.load %arg13[%c0_56, %c0_57] : memref<128x128xf32, #tpu.memory_space<vmem>>, vector<128x128xf32>
      %97 = arith.truncf %96 : vector<128x128xf32> to vector<128x128xbf16>
      %cst_58 = arith.constant dense<0.000000e+00> : vector<8x128xf32>
      %98 = tpu.matmul %95, %97, %cst_58 {dimension_numbers = #tpu.dot_dimension_numbers<[1], [0], [0], [1], [0, 0, 1, 1], [], []>} : vector<8x128xbf16>, vector<128x128xbf16>, vector<8x128xf32> -> vector<8x128xf32>
      %c0_59 = arith.constant 0 : index
      %c0_60 = arith.constant 0 : index
      %99 = vector.load %arg14[%c0_59, %c0_60] : memref<1x128xf32, #tpu.memory_space<vmem>>, vector<1x128xf32>
      %100 = vector.broadcast %99 : vector<1x128xf32> to vector<8x128xf32>
      %101 = arith.addf %98, %100 : vector<8x128xf32>
      %cst_61 = arith.constant 0.000000e+00 : f32
      %102 = vector.broadcast %cst_61 : f32 to vector<8x128xf32>
      %103 = arith.maximumf %101, %102 : vector<8x128xf32>
      %104 = arith.truncf %93 : vector<8x128xf32> to vector<8x128xbf16>
      %c0_62 = arith.constant 0 : index
      %c0_63 = arith.constant 0 : index
      %105 = vector.load %arg15[%c0_62, %c0_63] : memref<128x128xf32, #tpu.memory_space<vmem>>, vector<128x128xf32>
      %106 = arith.truncf %105 : vector<128x128xf32> to vector<128x128xbf16>
      %cst_64 = arith.constant dense<0.000000e+00> : vector<8x128xf32>
      %107 = tpu.matmul %104, %106, %cst_64 {dimension_numbers = #tpu.dot_dimension_numbers<[1], [0], [0], [1], [0, 0, 1, 1], [], []>} : vector<8x128xbf16>, vector<128x128xbf16>, vector<8x128xf32> -> vector<8x128xf32>
      %108 = arith.truncf %103 : vector<8x128xf32> to vector<8x128xbf16>
      %c0_65 = arith.constant 0 : index
      %c0_66 = arith.constant 0 : index
      %109 = vector.load %arg16[%c0_65, %c0_66] : memref<128x128xf32, #tpu.memory_space<vmem>>, vector<128x128xf32>
      %110 = arith.truncf %109 : vector<128x128xf32> to vector<128x128xbf16>
      %cst_67 = arith.constant dense<0.000000e+00> : vector<8x128xf32>
      %111 = tpu.matmul %108, %110, %cst_67 {dimension_numbers = #tpu.dot_dimension_numbers<[1], [0], [0], [1], [0, 0, 1, 1], [], []>} : vector<8x128xbf16>, vector<128x128xbf16>, vector<8x128xf32> -> vector<8x128xf32>
      %112 = arith.addf %107, %111 : vector<8x128xf32>
      %c0_68 = arith.constant 0 : index
      %c0_69 = arith.constant 0 : index
      %113 = vector.load %arg17[%c0_68, %c0_69] : memref<1x128xf32, #tpu.memory_space<vmem>>, vector<1x128xf32>
      %114 = vector.broadcast %113 : vector<1x128xf32> to vector<8x128xf32>
      %115 = arith.addf %112, %114 : vector<8x128xf32>
      %116 = arith.negf %115 : vector<8x128xf32>
      %117 = math.exp %116 : vector<8x128xf32>
      %cst_70 = arith.constant 1.000000e+00 : f32
      %118 = vector.broadcast %cst_70 : f32 to vector<8x128xf32>
      %119 = arith.addf %118, %117 : vector<8x128xf32>
      %120 = arith.divf %118, %119 : vector<8x128xf32>
      %c0_71 = arith.constant 0 : index
      %c0_72 = arith.constant 0 : index
      %121 = vector.load %arg18[%c0_71, %c0_72] : memref<8x128xf32, #tpu.memory_space<vmem>>, vector<8x128xf32>
      tpu.vector_store %arg18[%c0_71, %c0_72], %120 {strides = array<i32>} : memref<8x128xf32, #tpu.memory_space<vmem>>, vector<8x128xf32>,
    } else {
    }
    return
  }
  func.func @transform_0(%arg0: i32, %arg1: i32, %arg2: i32) -> (i32, i32) {
    %c0_i32 = arith.constant 0 : i32
    %c0_i32_0 = arith.constant 0 : i32
    %c0_i32_1 = arith.constant 0 : i32
    return %c0_i32, %c0_i32_0 : i32, i32
  }
  func.func @transform_1(%arg0: i32, %arg1: i32, %arg2: i32) -> (i32, i32) {
    %c0_i32 = arith.constant 0 : i32
    return %arg1, %arg2 : i32, i32
  }
  func.func @transform_2(%arg0: i32, %arg1: i32, %arg2: i32) -> (i32, i32, i32) {
    %c0_i32 = arith.constant 0 : i32
    %c0_i32_0 = arith.constant 0 : i32
    %c0_i32_1 = arith.constant 0 : i32
    return %arg0, %c0_i32, %c0_i32_0 : i32, i32, i32
  }
  func.func @transform_3(%arg0: i32, %arg1: i32, %arg2: i32) -> (i32, i32, i32) {
    %c0_i32 = arith.constant 0 : i32
    %c0_i32_0 = arith.constant 0 : i32
    %c0_i32_1 = arith.constant 0 : i32
    return %arg0, %c0_i32, %c0_i32_0 : i32, i32, i32
  }
  func.func @transform_4(%arg0: i32, %arg1: i32, %arg2: i32) -> (i32, i32, i32) {
    %c0_i32 = arith.constant 0 : i32
    %c0_i32_0 = arith.constant 0 : i32
    %c0_i32_1 = arith.constant 0 : i32
    return %arg0, %c0_i32, %c0_i32_0 : i32, i32, i32
  }
  func.func @transform_5(%arg0: i32, %arg1: i32, %arg2: i32) -> (i32, i32, i32) {
    %c0_i32 = arith.constant 0 : i32
    %c0_i32_0 = arith.constant 0 : i32
    %c0_i32_1 = arith.constant 0 : i32
    return %arg0, %c0_i32, %c0_i32_0 : i32, i32, i32
  }
  func.func @transform_6(%arg0: i32, %arg1: i32, %arg2: i32) -> (i32, i32, i32) {
    %c0_i32 = arith.constant 0 : i32
    %c0_i32_0 = arith.constant 0 : i32
    %c0_i32_1 = arith.constant 0 : i32
    %c0_i32_2 = arith.constant 0 : i32
    return %c0_i32, %c0_i32_0, %c0_i32_1 : i32, i32, i32
  }
  func.func @transform_7(%arg0: i32, %arg1: i32, %arg2: i32) -> (i32, i32) {
    %c0_i32 = arith.constant 0 : i32
    %c0_i32_0 = arith.constant 0 : i32
    %c0_i32_1 = arith.constant 0 : i32
    return %c0_i32, %c0_i32_0 : i32, i32
  }
  func.func @transform_8(%arg0: i32, %arg1: i32, %arg2: i32) -> (i32, i32) {
    %c0_i32 = arith.constant 0 : i32
    %c0_i32_0 = arith.constant 0 : i32
    %c0_i32_1 = arith.constant 0 : i32
    return %c0_i32, %c0_i32_0 : i32, i32
  }
  func.func @transform_9(%arg0: i32, %arg1: i32, %arg2: i32) -> (i32, i32) {
    %c0_i32 = arith.constant 0 : i32
    %c0_i32_0 = arith.constant 0 : i32
    %c0_i32_1 = arith.constant 0 : i32
    return %c0_i32, %c0_i32_0 : i32, i32
  }
  func.func @transform_10(%arg0: i32, %arg1: i32, %arg2: i32) -> (i32, i32) {
    %c0_i32 = arith.constant 0 : i32
    %c0_i32_0 = arith.constant 0 : i32
    %c0_i32_1 = arith.constant 0 : i32
    return %c0_i32, %c0_i32_0 : i32, i32
  }
  func.func @transform_11(%arg0: i32, %arg1: i32, %arg2: i32) -> (i32, i32) {
    %c0_i32 = arith.constant 0 : i32
    %c0_i32_0 = arith.constant 0 : i32
    %c0_i32_1 = arith.constant 0 : i32
    return %c0_i32, %c0_i32_0 : i32, i32
  }
  func.func @transform_12(%arg0: i32, %arg1: i32, %arg2: i32) -> (i32, i32) {
    %c0_i32 = arith.constant 0 : i32
    %c0_i32_0 = arith.constant 0 : i32
    %c0_i32_1 = arith.constant 0 : i32
    return %c0_i32, %c0_i32_0 : i32, i32
  }
  func.func @transform_13(%arg0: i32, %arg1: i32, %arg2: i32) -> (i32, i32) {
    %c0_i32 = arith.constant 0 : i32
    %c0_i32_0 = arith.constant 0 : i32
    %c0_i32_1 = arith.constant 0 : i32
    return %c0_i32, %c0_i32_0 : i32, i32
  }
  func.func @transform_14(%arg0: i32, %arg1: i32, %arg2: i32) -> (i32, i32) {
    %c0_i32 = arith.constant 0 : i32
    %c0_i32_0 = arith.constant 0 : i32
    %c0_i32_1 = arith.constant 0 : i32
    return %c0_i32, %c0_i32_0 : i32, i32
  }
  func.func @transform_15(%arg0: i32, %arg1: i32, %arg2: i32) -> (i32, i32) {
    %c0_i32 = arith.constant 0 : i32
    %c0_i32_0 = arith.constant 0 : i32
    %c0_i32_1 = arith.constant 0 : i32
    return %c0_i32, %c0_i32_0 : i32, i32
  }
}

</mosaic_0001>

<bundles_post_ra>
// kernel: tpu_custom_call.1
= control target key start
LH: loop header
LB: loop body
LE: loop exit
PB: predicated region body
PF: predicated region fallthrough
CT: control target
= control target key end

     0   :  { %s8336_s0 = inlined_call_operand.vmem [shape: f32[256,128], index: 0, kind: input, shape index: {}]   ;;  %s8337_s1 = inlined_call_operand.vmem [shape: bf16[256,256], index: 1, kind: input, shape index: {}]   ;;  %s8338_s2 = inlined_call_operand.vmem [shape: f32[3,128,128], index: 2, kind: input, shape index: {}]   ;;  %s8339_s3 = inlined_call_operand.vmem [shape: f32[3,1,128], index: 3, kind: input, shape index: {}]   ;;  %s8340_s4 = inlined_call_operand.vmem [shape: f32[3,1,128], index: 4, kind: input, shape index: {}]   ;;  %s8341_s5 = inlined_call_operand.vmem [shape: f32[3,1,128], index: 5, kind: input, shape index: {}]   ;;  %s8342_s6 = inlined_call_operand.vmem [shape: f32[8,256,1], index: 6, kind: input, shape index: {}]   ;;  %s8343_s7 = inlined_call_operand.vmem [shape: f32[8,128], index: 7, kind: input, shape index: {}]   ;;  %s8344_s8 = inlined_call_operand.vmem [shape: f32[128,128], index: 8, kind: input, shape index: {}]   ;;  %s8345_s9 = inlined_call_operand.vmem [shape: f32[1,128], index: 9, kind: input, shape index: {}]   ;;  %s8346_s10 = inlined_call_operand.vmem [shape: f32[128,128], index: 10, kind: input, shape index: {}]   ;;  %s8347_s11 = inlined_call_operand.vmem [shape: f32[1,128], index: 11, kind: input, shape index: {}]   ;;  %s8348_s12 = inlined_call_operand.vmem [shape: f32[128,128], index: 12, kind: input, shape index: {}]   ;;  %s8349_s13 = inlined_call_operand.vmem [shape: f32[128,128], index: 13, kind: input, shape index: {}]   ;;  %s8350_s14 = inlined_call_operand.vmem [shape: f32[1,128], index: 14, kind: input, shape index: {}]   ;;  %s8351_s15 = inlined_call_operand.hbm [shape: f32[8,128], index: 15, kind: output, shape index: {}]  }
   0x1   :  { %8364 = sst [smem:[#allocation118_spill]] %s8337_s1 }
   0x2   :  { %8365 = sst [smem:[#allocation119_spill]] %s8345_s9 }
   0x3   :  { %8366 = sst [smem:[#allocation120_spill]] %s8347_s11 }
   0x4   :  { %8367 = sst [smem:[#allocation121_spill]] %s8348_s12 }
   0x5   :  { %8368 = sst [smem:[#allocation122_spill]] %s8349_s13 }
   0x6   :  { %8369 = sst [smem:[#allocation123_spill]] %s8350_s14 }
   0x7   :  { %8370 = sst [smem:[#allocation124_spill]] %s8351_s15 }
   0x8   :  { %20 = vsyncpa [#allocation9], 0  ;;  %s5514_s18 = smov 0   ;;  %s5516_s19 = smov 0  }
   0x9   :  { %s5518_s20 = smov 0   ;;  %s5520_s21 = smov 0  }
   0xa   :  { %s5522_s22 = smov 0   ;;  %s5524_s23 = smov 0  }
   0xb   :  { %s5526_s24 = smov 0   ;;  %s5528_s25 = smov 0  }
   0xc   :  { %s5530_s26 = smov 0  }
   0xd LB: > { %8371 = sst [smem:[#allocation11_spill]] %s5409_s23  ;;  %s38_s28 = sadd.s32 1, %s5409_s23  ;;  %s5421_s26 = sphi %s5530_s26, %s26_s26   ;;  %s5417_s25 = sphi %s5528_s25, %s8596_s25   ;;  %s5413_s24 = sphi %s5526_s24, %s8595_s24   ;;  %s5409_s23 = sphi %s5524_s23, %s8594_s23   ;;  %s5405_s22 = sphi %s5522_s22, %s8593_s22   ;;  %s5401_s21 = sphi %s5520_s21, %s8592_s21   ;;  %s5397_s20 = sphi %s5518_s20, %s8591_s20   ;;  %s5393_s19 = sphi %s5516_s19, %s8598_s19   ;;  %s5389_s18 = sphi %s5514_s18, %s8597_s18  }
   0xe   : > { %8372 = sst [smem:[#allocation12_spill]] %s5413_s24  ;;  %p39_p0 = scmp.ge.s32.totalorder %s38_s28, 2 }
   0xf   : > { %8373 = sst [smem:[#allocation13_spill]] %s5417_s25  ;;  %s41_s29 = sadd.s32 1, %s5413_s24 }
  0x10   : > { %s8600_s28 = smov (%p39_p0, %s38_s28), 0  ;;  %s8602_s29 = smov (!%p39_p0, %s41_s29), %s5413_s24 }
  0x11   : > { %8374 = sst [smem:[#allocation14_spill]] %s8600_s28  ;;  %s45_s30 = sadd.s32 1, %s5417_s25 }
  0x12   : > { %p82_p1 = scmp.ne.s32.totalorder %s5393_s19, %s5389_s18  ;;  %p43_p2 = scmp.ge.s32.totalorder %s8602_s29, 2 }
  0x13   : > { %p83_p3 = scmp.eq.s32.totalorder %s5421_s26, 0  ;;  %s71_s16 = ssub.s32 %s5409_s23, %s8600_s28 }
  0x14   : > { %s75_s17 = sadd.s32 1, %s5393_s19  ;;  %s8604_s29 = smov (%p43_p2, %s8602_s29), 0 }
  0x15   : > { %8375 = sst [smem:[#allocation15_spill]] %s8604_s29  ;;  %s8606_s30 = smov (!%p43_p2, %s45_s30), %s5417_s25 }
  0x16   : > { %s70_s15 = ssub.s32 %s5413_s24, %s8604_s29  ;;  %p84_p4 = por %p83_p3, %p82_p1 }
  0x17   : > { %p47_p5 = scmp.ge.s32.totalorder %s8606_s30, 3  ;;  %s72_s27 = sor.u32 %s71_s16, %s70_s15 }
  0x18   : > { %p73_p6 = scmp.eq.s32.totalorder %s72_s27, 0  ;;  %p4734_p7 = scmp.ge.s32.totalorder %s5421_s26, 12 }
  0x19   : > { %s8608_s30 = smov (%p47_p5, %s8606_s30), 0 }
  0x1a   : > { %8376 = sst [smem:[#allocation16_spill]] %s8608_s30  ;;  %452 = sbr.rel (%p4734_p7) target bundleno = 53 (0x35), region = 56 }
  0x1b   : > { %s5580_s14 = scalar_select %p73_p6, %s5393_s19, %s75_s17  }
  0x21   : > { %455 = sbr.rel (!%p84_p4) target bundleno = 53 (0x35), region = 60  ;;  %s457_s28 = sand.u32 (%p84_p4), 1, %s5393_s19  }
  0x22   : > { %s4757_s9 = sshll.u32 (%p84_p4), %s5413_s24, 5  ;;  %s4735_s11 = sshll.u32 (%p84_p4), %s457_s28, 6 }
  0x23   : > { %s462_s25 = sadd.s32 (%p84_p4), %s5409_s23, %s4757_s9  ;;  %s8377_s1 = sld [smem:[#allocation118_spill]] (%p84_p4) }
  0x24   : > { %s4738_s29 = sshll.u32 (%p84_p4), %s462_s25, 2  ;;  %s459_s27 = scalar_lea.vmem (%p84_p4), [#allocation7], %s4735_s11 }
  0x29   : > { %s5589_s15 = scalar_lea.vmem %s8377_s1, %s4738_s29 }
  0x2a   : > { %v480_v0 = vld [vmem:[%s5589_s15] sm:$0xf]  ;;  %v482_v1 = vld [vmem:[%s5589_s15 + $0x8] sm:$0xf]  ;;  %v484_v2 = vld [vmem:[%s5589_s15 + $0x10] sm:$0xf] }
  0x2b   : > { %481 = vst [vmem:[%s459_s27] sm:$0xf] %v480_v0  ;;  %483 = vst [vmem:[%s459_s27 + $0x4] sm:$0xf] %v482_v1  ;;  %v486_v3 = vld [vmem:[%s5589_s15 + $0x18] sm:$0xf] }
  0x2c   : > { %485 = vst [vmem:[%s459_s27 + $0x8] sm:$0xf] %v484_v2  ;;  %v488_v4 = vld [vmem:[%s5589_s15 + $0x20] sm:$0xf]  ;;  %v490_v5 = vld [vmem:[%s5589_s15 + $0x28] sm:$0xf] }
  0x2d   : > { %487 = vst [vmem:[%s459_s27 + $0xc] sm:$0xf] %v486_v3  ;;  %489 = vst [vmem:[%s459_s27 + $0x10] sm:$0xf] %v488_v4  ;;  %v492_v6 = vld [vmem:[%s5589_s15 + $0x30] sm:$0xf] }
  0x2e   : > { %491 = vst [vmem:[%s459_s27 + $0x14] sm:$0xf] %v490_v5  ;;  %v494_v7 = vld [vmem:[%s5589_s15 + $0x38] sm:$0xf]  ;;  %v496_v8 = vld [vmem:[%s5589_s15 + $0x40] sm:$0xf] }
  0x2f   : > { %493 = vst [vmem:[%s459_s27 + $0x18] sm:$0xf] %v492_v6  ;;  %495 = vst [vmem:[%s459_s27 + $0x1c] sm:$0xf] %v494_v7  ;;  %v498_v9 = vld [vmem:[%s5589_s15 + $0x48] sm:$0xf] }
  0x30   : > { %497 = vst [vmem:[%s459_s27 + $0x20] sm:$0xf] %v496_v8  ;;  %v500_v10 = vld [vmem:[%s5589_s15 + $0x50] sm:$0xf]  ;;  %v502_v11 = vld [vmem:[%s5589_s15 + $0x58] sm:$0xf] }
  0x31   : > { %499 = vst [vmem:[%s459_s27 + $0x24] sm:$0xf] %v498_v9  ;;  %501 = vst [vmem:[%s459_s27 + $0x28] sm:$0xf] %v500_v10  ;;  %v504_v12 = vld [vmem:[%s5589_s15 + $0x60] sm:$0xf] }
  0x32   : > { %503 = vst [vmem:[%s459_s27 + $0x2c] sm:$0xf] %v502_v11  ;;  %v506_v13 = vld [vmem:[%s5589_s15 + $0x68] sm:$0xf]  ;;  %v508_v14 = vld [vmem:[%s5589_s15 + $0x70] sm:$0xf] }
  0x33   : > { %505 = vst [vmem:[%s459_s27 + $0x30] sm:$0xf] %v504_v12  ;;  %507 = vst [vmem:[%s459_s27 + $0x34] sm:$0xf] %v506_v13  ;;  %v510_v15 = vld [vmem:[%s5589_s15 + $0x78] sm:$0xf] }
  0x34   : > { %509 = vst [vmem:[%s459_s27 + $0x38] sm:$0xf] %v508_v14  ;;  %511 = vst [vmem:[%s459_s27 + $0x3c] sm:$0xf] %v510_v15 }
  0x35 PF: > { %p4739_p8 = scmp.ge.s32.totalorder %s5421_s26, 1  ;;  %p591_p9 = scmp.lt.s32.totalorder %s5421_s26, 13 }
  0x37   : > { %p592_p10 = pnand %p4739_p8, %p591_p9 }
  0x38   : > { %s598_s9 = sand.u32 (!%p592_p10), 1, %s5389_s18   ;;  %p655_p11 = scmp.lt.s32.totalorder (!%p592_p10), %s5405_s22, 2 }
  0x39   : > { %595 = sbr.rel (%p592_p10) target bundleno = 2528 (0x9e0), region = 117  ;;  %s4740_s11 = sshll.u32 (!%p592_p10), %s598_s9, 6 }
  0x3a   : > { %p670_p12 = scmp.eq.s32.totalorder (!%p592_p10), %s5405_s22, 0  ;;  %p671_p13 = scmp.eq.s32.totalorder (!%p592_p10), %s5401_s21, 0 }
  0x3b   : > { %p674_p1 = scmp.eq.s32.totalorder (!%p592_p10), %s5397_s20, 0  ;;  %s5639_s23 = scalar_lea.vmem (!%p592_p10), [#allocation7], %s4740_s11 }
  0x3c   : > { %p672_p0 = pnand (!%p592_p10), %p671_p13, %p670_p12 }
  0x3e   : > { %p673_p2 = pneg (!%p592_p10), %p672_p0 }
  0x40   : > { %s5614_s12 = scalar_select %p655_p11, %s5405_s22, 2 }
  0x41   : > { %p675_p3 = pnand %p674_p1, %p673_p2 }
  0x42   : > { %s4758_s13 = sshll.u32 %s5614_s12, 7  ;;  %s662_s29 = scalar_lea.vmem %s8339_s3, %s5614_s12  ;;  %v679_v16 = vld [vmem:[%s8336_s0] sm:$0xff] (!%p675_p3)  ;;  %v680_v17 = vld [vmem:[%s8336_s0 + $0x8] sm:$0xff] (!%p675_p3)  ;;  %v681_v18 = vld [vmem:[%s8336_s0 + $0x10] sm:$0xff] (!%p675_p3) }
  0x43   : > { %s5627_s17 = scalar_lea.vmem %s8338_s2, %s4758_s13  ;;  %s665_s9 = scalar_lea.vmem %s8340_s4, %s5614_s12  ;;  %711 = vst [vmem:[#allocation2] sm:$0xff] (!%p675_p3), %v679_v16  ;;  %712 = vst [vmem:[#allocation2 + $0x8] sm:$0xff] (!%p675_p3), %v680_v17  ;;  %v682_v19 = vld [vmem:[%s8336_s0 + $0x18] sm:$0xff] (!%p675_p3)  ;;  %v683_v20 = vld [vmem:[%s8336_s0 + $0x20] sm:$0xff] (!%p675_p3) }
  0x44   : > { %s668_s24 = scalar_lea.vmem %s8341_s5, %s5614_s12  ;;  %678 = sbr.rel (%p675_p3) target bundleno = 83 (0x53), region = 125  ;;  %713 = vst [vmem:[#allocation2 + $0x10] sm:$0xff] (!%p675_p3), %v681_v18  ;;  %v684_v21 = vld [vmem:[%s8336_s0 + $0x28] sm:$0xff] (!%p675_p3)  ;;  %714 = vst [vmem:[#allocation2 + $0x18] sm:$0xff] (!%p675_p3), %v682_v19  ;;  %v685_v22 = vld [vmem:[%s8336_s0 + $0x30] sm:$0xff] (!%p675_p3) }
  0x45   : > { %715 = vst [vmem:[#allocation2 + $0x20] sm:$0xff] (!%p675_p3), %v683_v20  ;;  %716 = vst [vmem:[#allocation2 + $0x28] sm:$0xff] (!%p675_p3), %v684_v21  ;;  %v686_v23 = vld [vmem:[%s8336_s0 + $0x38] sm:$0xff] (!%p675_p3)  ;;  %v687_v24 = vld [vmem:[%s8336_s0 + $0x40] sm:$0xff] (!%p675_p3) }
  0x46   : > { %717 = vst [vmem:[#allocation2 + $0x30] sm:$0xff] (!%p675_p3), %v685_v22  ;;  %718 = vst [vmem:[#allocation2 + $0x38] sm:$0xff] (!%p675_p3), %v686_v23  ;;  %v688_v25 = vld [vmem:[%s8336_s0 + $0x48] sm:$0xff] (!%p675_p3)  ;;  %v689_v26 = vld [vmem:[%s8336_s0 + $0x50] sm:$0xff] (!%p675_p3) }
  0x47   : > { %719 = vst [vmem:[#allocation2 + $0x40] sm:$0xff] (!%p675_p3), %v687_v24  ;;  %v690_v27 = vld [vmem:[%s8336_s0 + $0x58] sm:$0xff] (!%p675_p3)  ;;  %720 = vst [vmem:[#allocation2 + $0x48] sm:$0xff] (!%p675_p3), %v688_v25  ;;  %v691_v28 = vld [vmem:[%s8336_s0 + $0x60] sm:$0xff] (!%p675_p3) }
  0x48   : > { %721 = vst [vmem:[#allocation2 + $0x50] sm:$0xff] (!%p675_p3), %v689_v26  ;;  %722 = vst [vmem:[#allocation2 + $0x58] sm:$0xff] (!%p675_p3), %v690_v27  ;;  %v692_v29 = vld [vmem:[%s8336_s0 + $0x68] sm:$0xff] (!%p675_p3)  ;;  %v693_v30 = vld [vmem:[%s8336_s0 + $0x70] sm:$0xff] (!%p675_p3) }
  0x49   : > { %723 = vst [vmem:[#allocation2 + $0x60] sm:$0xff] (!%p675_p3), %v691_v28  ;;  %724 = vst [vmem:[#allocation2 + $0x68] sm:$0xff] (!%p675_p3), %v692_v29  ;;  %v694_v31 = vld [vmem:[%s8336_s0 + $0x78] sm:$0xff] (!%p675_p3)  ;;  %v695_v32 = vld [vmem:[%s8336_s0 + $0x80] sm:$0xff] (!%p675_p3) }
  0x4a   : > { %725 = vst [vmem:[#allocation2 + $0x70] sm:$0xff] (!%p675_p3), %v693_v30  ;;  %v696_v33 = vld [vmem:[%s8336_s0 + $0x88] sm:$0xff] (!%p675_p3)  ;;  %726 = vst [vmem:[#allocation2 + $0x78] sm:$0xff] (!%p675_p3), %v694_v31  ;;  %v697_v34 = vld [vmem:[%s8336_s0 + $0x90] sm:$0xff] (!%p675_p3) }
  0x4b   : > { %727 = vst [vmem:[#allocation2 + $0x80] sm:$0xff] %v695_v32  ;;  %728 = vst [vmem:[#allocation2 + $0x88] sm:$0xff] %v696_v33  ;;  %v698_v35 = vld [vmem:[%s8336_s0 + $0x98] sm:$0xff]  ;;  %v699_v36 = vld [vmem:[%s8336_s0 + $0xa0] sm:$0xff] }
  0x4c   : > { %729 = vst [vmem:[#allocation2 + $0x90] sm:$0xff] %v697_v34  ;;  %730 = vst [vmem:[#allocation2 + $0x98] sm:$0xff] %v698_v35  ;;  %v700_v37 = vld [vmem:[%s8336_s0 + $0xa8] sm:$0xff]  ;;  %v701_v38 = vld [vmem:[%s8336_s0 + $0xb0] sm:$0xff] }
  0x4d   : > { %731 = vst [vmem:[#allocation2 + $0xa0] sm:$0xff] %v699_v36  ;;  %v702_v39 = vld [vmem:[%s8336_s0 + $0xb8] sm:$0xff]  ;;  %732 = vst [vmem:[#allocation2 + $0xa8] sm:$0xff] %v700_v37  ;;  %v703_v40 = vld [vmem:[%s8336_s0 + $0xc0] sm:$0xff] }
  0x4e   : > { %733 = vst [vmem:[#allocation2 + $0xb0] sm:$0xff] %v701_v38  ;;  %734 = vst [vmem:[#allocation2 + $0xb8] sm:$0xff] %v702_v39  ;;  %v704_v41 = vld [vmem:[%s8336_s0 + $0xc8] sm:$0xff]  ;;  %v705_v42 = vld [vmem:[%s8336_s0 + $0xd0] sm:$0xff] }
  0x4f   : > { %735 = vst [vmem:[#allocation2 + $0xc0] sm:$0xff] %v703_v40  ;;  %736 = vst [vmem:[#allocation2 + $0xc8] sm:$0xff] %v704_v41  ;;  %v706_v43 = vld [vmem:[%s8336_s0 + $0xd8] sm:$0xff]  ;;  %v707_v44 = vld [vmem:[%s8336_s0 + $0xe0] sm:$0xff] }
  0x50   : > { %737 = vst [vmem:[#allocation2 + $0xd0] sm:$0xff] %v705_v42  ;;  %v708_v45 = vld [vmem:[%s8336_s0 + $0xe8] sm:$0xff]  ;;  %738 = vst [vmem:[#allocation2 + $0xd8] sm:$0xff] %v706_v43  ;;  %v709_v46 = vld [vmem:[%s8336_s0 + $0xf0] sm:$0xff] }
  0x51   : > { %739 = vst [vmem:[#allocation2 + $0xe0] sm:$0xff] %v707_v44  ;;  %740 = vst [vmem:[#allocation2 + $0xe8] sm:$0xff] %v708_v45  ;;  %v710_v47 = vld [vmem:[%s8336_s0 + $0xf8] sm:$0xff] }
  0x52   : > { %741 = vst [vmem:[#allocation2 + $0xf0] sm:$0xff] %v709_v46  ;;  %742 = vst [vmem:[#allocation2 + $0xf8] sm:$0xff] %v710_v47 }
  0x53 PF: > { %p743_p4 = pnand %p674_p1, %p671_p13 }
  0x54   : > { %v795_v48 = vld [vmem:[%s5627_s17] sm:$0xff] (!%p743_p4)  ;;  %v796_v49 = vld [vmem:[%s5627_s17 + $0x8] sm:$0xff] (!%p743_p4)  ;;  %v797_v50 = vld [vmem:[%s5627_s17 + $0x10] sm:$0xff] (!%p743_p4) }
  0x55   : > { %746 = sbr.rel (%p743_p4) target bundleno = 359 (0x167), region = 129  ;;  %v811_v51 = vpack.c.bf16 (!%p743_p4), %v796_v49, %v795_v48  ;;  %v798_v52 = vld [vmem:[%s5627_s17 + $0x18] sm:$0xff] (!%p743_p4)  ;;  %v799_v54 = vld [vmem:[%s5627_s17 + $0x20] sm:$0xff] (!%p743_p4)  ;;  %v800_v55 = vld [vmem:[%s5627_s17 + $0x28] sm:$0xff] (!%p743_p4) }
  0x56   : > { %v812_v53 = vpack.c.bf16 (!%p743_p4), %v798_v52, %v797_v50  ;;  %v813_v56 = vpack.c.bf16 (!%p743_p4), %v800_v55, %v799_v54  ;;  %v801_v57 = vld [vmem:[%s5627_s17 + $0x30] sm:$0xff] (!%p743_p4)  ;;  %v747_v58 = vld [vmem:[#allocation2] sm:$0xff] (!%p743_p4)  ;;  %v748_v59 = vld [vmem:[#allocation2 + $0x8] sm:$0xff] (!%p743_p4) }
  0x57   : > { %4891 = vmatprep.subr.bf16.mxu0 (!%p743_p4), %v811_v51  ;;  %5110 = vmatprep.subr.bf16.mxu1 (!%p743_p4), %v811_v51  ;;  %v802_v60 = vld [vmem:[%s5627_s17 + $0x38] sm:$0xff] (!%p743_p4)  ;;  %v779_v61 = vpack.c.bf16 (!%p743_p4), %v748_v59, %v747_v58  ;;  %v803_v2 = vld [vmem:[%s5627_s17 + $0x40] sm:$0xff] (!%p743_p4)  ;;  %v804_v3 = vld [vmem:[%s5627_s17 + $0x48] sm:$0xff] (!%p743_p4) }
  0x58   : > { %4892 = vmatpush3.bf16.msra.mxu0 (!%p743_p4), %v811_v51  ;;  %5118 = vmatpush3.bf16.msra.mxu1 (!%p743_p4), %v811_v51  ;;  %v814_v1 = vpack.c.bf16 (!%p743_p4), %v802_v60, %v801_v57  ;;  %v815_v4 = vpack.c.bf16 (!%p743_p4), %v804_v3, %v803_v2  ;;  %v805_v5 = vld [vmem:[%s5627_s17 + $0x50] sm:$0xff] (!%p743_p4)  ;;  %v806_v6 = vld [vmem:[%s5627_s17 + $0x58] sm:$0xff] (!%p743_p4)  ;;  %v807_v8 = vld [vmem:[%s5627_s17 + $0x60] sm:$0xff] (!%p743_p4) }
  0x59   : > { %4893 = vmatprep.subr.bf16.mxu0 (!%p743_p4), %v812_v53  ;;  %5111 = vmatprep.subr.bf16.mxu1 (!%p743_p4), %v812_v53  ;;  %v816_v7 = vpack.c.bf16 (!%p743_p4), %v806_v6, %v805_v5  ;;  %v808_v9 = vld [vmem:[%s5627_s17 + $0x68] sm:$0xff] (!%p743_p4)  ;;  %v809_v11 = vld [vmem:[%s5627_s17 + $0x70] sm:$0xff] (!%p743_p4)  ;;  %v810_v12 = vld [vmem:[%s5627_s17 + $0x78] sm:$0xff] (!%p743_p4) }
  0x5a   : > { %v763_v62 = vld [vmem:[#allocation2 + $0x80] sm:$0xff] (!%p743_p4)  ;;  %v764_v63 = vld [vmem:[#allocation2 + $0x88] sm:$0xff] (!%p743_p4)  ;;  %4907 = vmatprep.mubr.bf16.mxu0 (!%p743_p4), %v779_v61  ;;  %v817_v10 = vpack.c.bf16 (!%p743_p4), %v808_v9, %v807_v8  ;;  %v818_v13 = vpack.c.bf16 (!%p743_p4), %v810_v12, %v809_v11  ;;  %v749_v14 = vld [vmem:[#allocation2 + $0x10] sm:$0xff] (!%p743_p4) }
  0x5b   : > { %v787_v0 = vpack.c.bf16 (!%p743_p4), %v764_v63, %v763_v62  ;;  %v750_v15 = vld [vmem:[#allocation2 + $0x18] sm:$0xff] (!%p743_p4)  ;;  %v765_v16 = vld [vmem:[#allocation2 + $0x90] sm:$0xff] (!%p743_p4)  ;;  %v751_v18 = vld [vmem:[#allocation2 + $0x20] sm:$0xff] (!%p743_p4) }
  0x5c   : > { %4894 = vmatpush3.bf16.msra.mxu0 %v812_v53  ;;  %5119 = vmatpush3.bf16.msra.mxu1 %v812_v53  ;;  %v766_v17 = vld [vmem:[#allocation2 + $0x98] sm:$0xff]  ;;  %v752_v19 = vld [vmem:[#allocation2 + $0x28] sm:$0xff]  ;;  %v767_v20 = vld [vmem:[#allocation2 + $0xa0] sm:$0xff]  ;;  %v780_v22 = vpack.c.bf16 %v750_v15, %v749_v14 }
  0x5d   : > { %4895 = vmatprep.subr.bf16.mxu0 %v813_v56  ;;  %5112 = vmatprep.subr.bf16.mxu1 %v813_v56  ;;  %v768_v21 = vld [vmem:[#allocation2 + $0xa8] sm:$0xff]  ;;  %v788_v23 = vpack.c.bf16 %v766_v17, %v765_v16  ;;  %v781_v24 = vpack.c.bf16 %v752_v19, %v751_v18  ;;  %v753_v26 = vld [vmem:[#allocation2 + $0x30] sm:$0xff]  ;;  %v754_v27 = vld [vmem:[#allocation2 + $0x38] sm:$0xff] }
  0x5e   : > { %4923 = vmatprep.mubr.bf16.mxu1 %v787_v0  ;;  %v789_v25 = vpack.c.bf16 %v768_v21, %v767_v20  ;;  %v769_v28 = vld [vmem:[#allocation2 + $0xb0] sm:$0xff]  ;;  %v770_v29 = vld [vmem:[#allocation2 + $0xb8] sm:$0xff]  ;;  %v755_v30 = vld [vmem:[#allocation2 + $0x40] sm:$0xff]  ;;  %v782_v34 = vpack.c.bf16 %v754_v27, %v753_v26 }
  0x5f   : > { %v756_v31 = vld [vmem:[#allocation2 + $0x48] sm:$0xff]  ;;  %v771_v32 = vld [vmem:[#allocation2 + $0xc0] sm:$0xff]  ;;  %v790_v35 = vpack.c.bf16 %v770_v29, %v769_v28  ;;  %v757_v38 = vld [vmem:[#allocation2 + $0x50] sm:$0xff] }
  0x60   : > { %4896 = vmatpush3.bf16.msra.mxu0 %v813_v56  ;;  %5120 = vmatpush3.bf16.msra.mxu1 %v813_v56  ;;  %v772_v33 = vld [vmem:[#allocation2 + $0xc8] sm:$0xff]  ;;  %v783_v36 = vpack.c.bf16 %v756_v31, %v755_v30  ;;  %v758_v39 = vld [vmem:[#allocation2 + $0x58] sm:$0xff]  ;;  %v773_v40 = vld [vmem:[#allocation2 + $0xd0] sm:$0xff] }
  0x61   : > { %4897 = vmatprep.subr.bf16.mxu0 %v814_v1  ;;  %5113 = vmatprep.subr.bf16.mxu1 %v814_v1  ;;  %v791_v37 = vpack.c.bf16 %v772_v33, %v771_v32  ;;  %v774_v41 = vld [vmem:[#allocation2 + $0xd8] sm:$0xff]  ;;  %v759_v42 = vld [vmem:[#allocation2 + $0x60] sm:$0xff]  ;;  %v760_v43 = vld [vmem:[#allocation2 + $0x68] sm:$0xff]  ;;  %v784_v46 = vpack.c.bf16 %v758_v39, %v757_v38 }
  0x62   : > { %v775_v44 = vld [vmem:[#allocation2 + $0xe0] sm:$0xff]  ;;  %v776_v45 = vld [vmem:[#allocation2 + $0xe8] sm:$0xff]  ;;  %v792_v47 = vpack.c.bf16 %v774_v41, %v773_v40  ;;  %v785_v48 = vpack.c.bf16 %v760_v43, %v759_v42  ;;  %v761_v50 = vld [vmem:[#allocation2 + $0x70] sm:$0xff] }
  0x63   : > { %v793_v49 = vpack.c.bf16 %v776_v45, %v775_v44  ;;  %v762_v51 = vld [vmem:[#allocation2 + $0x78] sm:$0xff]  ;;  %v777_v52 = vld [vmem:[#allocation2 + $0xf0] sm:$0xff] }
  0x64   : > { %4898 = vmatpush3.bf16.msra.mxu0 %v814_v1  ;;  %5121 = vmatpush3.bf16.msra.mxu1 %v814_v1  ;;  %v778_v53 = vld [vmem:[#allocation2 + $0xf8] sm:$0xff]  ;;  %v786_v54 = vpack.c.bf16 %v762_v51, %v761_v50 }
  0x65   : > { %4899 = vmatprep.subr.bf16.mxu0 %v815_v4  ;;  %5114 = vmatprep.subr.bf16.mxu1 %v815_v4  ;;  %v794_v55 = vpack.c.bf16 %v778_v53, %v777_v52 }
  0x68   : > { %4900 = vmatpush3.bf16.msra.mxu0 %v815_v4  ;;  %5122 = vmatpush3.bf16.msra.mxu1 %v815_v4 }
  0x69   : > { %4901 = vmatprep.subr.bf16.mxu0 %v816_v7  ;;  %5115 = vmatprep.subr.bf16.mxu1 %v816_v7 }
  0x6c   : > { %4902 = vmatpush3.bf16.msra.mxu0 %v816_v7  ;;  %5123 = vmatpush3.bf16.msra.mxu1 %v816_v7 }
  0x6d   : > { %4903 = vmatprep.subr.bf16.mxu0 %v817_v10  ;;  %5116 = vmatprep.subr.bf16.mxu1 %v817_v10 }
  0x70   : > { %4904 = vmatpush3.bf16.msra.mxu0 %v817_v10  ;;  %5124 = vmatpush3.bf16.msra.mxu1 %v817_v10 }
  0x71   : > { %4905 = vmatprep.subr.bf16.mxu0 %v818_v13  ;;  %5117 = vmatprep.subr.bf16.mxu1 %v818_v13 }
  0x74   : > { %4906 = vmatpush3.bf16.msra.mxu0 %v818_v13  ;;  %5125 = vmatpush3.bf16.msra.mxu1 %v818_v13 }
  0x77   : > { %4908 = vmatmul.mubr.bf16.vlgmr.msra.gmra.mrb[0].mxu0 %v780_v22  ;;  %4924 = vmatmul.mubr.bf16.vlgmr.msra.gmra.mrb[0].mxu1 %v788_v23 }
  0x78   : > { %4911 = vmatprep.mubr.bf16.mxu0 %v781_v24  ;;  %4927 = vmatprep.mubr.bf16.mxu1 %v789_v25 }
  0x7f   : > { %4912 = vmatmul.mubr.bf16.gmra.mrb[4].mxu0 %v782_v34  ;;  %4928 = vmatmul.mubr.bf16.gmra.mrb[4].mxu1 %v790_v35 }
  0x80   : > { %4915 = vmatprep.mubr.bf16.mxu0 %v783_v36  ;;  %4931 = vmatprep.mubr.bf16.mxu1 %v791_v37 }
  0x87   : > { %4916 = vmatmul.mubr.bf16.gmra.mrb[8].mxu0 %v784_v46  ;;  %4932 = vmatmul.mubr.bf16.gmra.mrb[8].mxu1 %v792_v47 }
  0x88   : > { %4919 = vmatprep.mubr.bf16.mxu0 %v785_v48  ;;  %4935 = vmatprep.mubr.bf16.mxu1 %v793_v49 }
  0x8f   : > { %4920 = vmatmul.mubr.bf16.gmra.mrb[12].mxu0 %v786_v54  ;;  %4936 = vmatmul.mubr.bf16.gmra.mrb[12].mxu1 %v794_v55 }
 0x14a   : > { %v4909_v56 = vpop.f32.mrb[0].mxu0  ;;  %v4925_v57 = vpop.f32.mrb[0].mxu1 }
 0x14b   : > { %982 = vst [vmem:[#allocation3 + $0x10] sm:$0xff] %v4909_v56  ;;  %998 = vst [vmem:[#allocation3 + $0x90] sm:$0xff] %v4925_v57  ;;  %v853_v58 = vpop.f32.mrb[1].mxu0  ;;  %v917_v59 = vpop.f32.mrb[1].mxu1 }
 0x14c   : > { %980 = vst [vmem:[#allocation3] sm:$0xff] %v853_v58  ;;  %996 = vst [vmem:[#allocation3 + $0x80] sm:$0xff] %v917_v59  ;;  %v4910_v60 = vpop.f32.mrb[2].mxu0  ;;  %v4926_v61 = vpop.f32.mrb[2].mxu1 }
 0x14d   : > { %983 = vst [vmem:[#allocation3 + $0x18] sm:$0xff] %v4910_v60  ;;  %999 = vst [vmem:[#allocation3 + $0x98] sm:$0xff] %v4926_v61  ;;  %v856_v62 = vpop.f32.mrb[3].mxu0  ;;  %v920_v63 = vpop.f32.mrb[3].mxu1 }
 0x14e   : > { %981 = vst [vmem:[#allocation3 + $0x8] sm:$0xff] %v856_v62  ;;  %997 = vst [vmem:[#allocation3 + $0x88] sm:$0xff] %v920_v63 }
 0x152   : > { %v4913_v0 = vpop.f32.mrb[4].mxu0  ;;  %v4929_v1 = vpop.f32.mrb[4].mxu1 }
 0x153   : > { %986 = vst [vmem:[#allocation3 + $0x30] sm:$0xff] %v4913_v0  ;;  %1002 = vst [vmem:[#allocation3 + $0xb0] sm:$0xff] %v4929_v1  ;;  %v869_v2 = vpop.f32.mrb[5].mxu0  ;;  %v933_v3 = vpop.f32.mrb[5].mxu1 }
 0x154   : > { %984 = vst [vmem:[#allocation3 + $0x20] sm:$0xff] %v869_v2  ;;  %1000 = vst [vmem:[#allocation3 + $0xa0] sm:$0xff] %v933_v3  ;;  %v4914_v4 = vpop.f32.mrb[6].mxu0  ;;  %v4930_v5 = vpop.f32.mrb[6].mxu1 }
 0x155   : > { %987 = vst [vmem:[#allocation3 + $0x38] sm:$0xff] %v4914_v4  ;;  %1003 = vst [vmem:[#allocation3 + $0xb8] sm:$0xff] %v4930_v5  ;;  %v872_v6 = vpop.f32.mrb[7].mxu0  ;;  %v936_v7 = vpop.f32.mrb[7].mxu1 }
 0x156   : > { %985 = vst [vmem:[#allocation3 + $0x28] sm:$0xff] %v872_v6  ;;  %1001 = vst [vmem:[#allocation3 + $0xa8] sm:$0xff] %v936_v7 }
 0x15a   : > { %v4917_v8 = vpop.f32.mrb[8].mxu0  ;;  %v4933_v9 = vpop.f32.mrb[8].mxu1 }
 0x15b   : > { %990 = vst [vmem:[#allocation3 + $0x50] sm:$0xff] %v4917_v8  ;;  %1006 = vst [vmem:[#allocation3 + $0xd0] sm:$0xff] %v4933_v9  ;;  %v885_v10 = vpop.f32.mrb[9].mxu0  ;;  %v949_v11 = vpop.f32.mrb[9].mxu1 }
 0x15c   : > { %988 = vst [vmem:[#allocation3 + $0x40] sm:$0xff] %v885_v10  ;;  %1004 = vst [vmem:[#allocation3 + $0xc0] sm:$0xff] %v949_v11  ;;  %v4918_v12 = vpop.f32.mrb[10].mxu0  ;;  %v4934_v13 = vpop.f32.mrb[10].mxu1 }
 0x15d   : > { %991 = vst [vmem:[#allocation3 + $0x58] sm:$0xff] %v4918_v12  ;;  %1007 = vst [vmem:[#allocation3 + $0xd8] sm:$0xff] %v4934_v13  ;;  %v888_v14 = vpop.f32.mrb[11].mxu0  ;;  %v952_v15 = vpop.f32.mrb[11].mxu1 }
 0x15e   : > { %989 = vst [vmem:[#allocation3 + $0x48] sm:$0xff] %v888_v14  ;;  %1005 = vst [vmem:[#allocation3 + $0xc8] sm:$0xff] %v952_v15 }
 0x162   : > { %v4921_v16 = vpop.f32.mrb[12].mxu0  ;;  %v4937_v17 = vpop.f32.mrb[12].mxu1 }
 0x163   : > { %994 = vst [vmem:[#allocation3 + $0x70] sm:$0xff] %v4921_v16  ;;  %1010 = vst [vmem:[#allocation3 + $0xf0] sm:$0xff] %v4937_v17  ;;  %v901_v18 = vpop.f32.mrb[13].mxu0  ;;  %v965_v19 = vpop.f32.mrb[13].mxu1 }
 0x164   : > { %992 = vst [vmem:[#allocation3 + $0x60] sm:$0xff] %v901_v18  ;;  %1008 = vst [vmem:[#allocation3 + $0xe0] sm:$0xff] %v965_v19  ;;  %v4922_v20 = vpop.f32.mrb[14].mxu0  ;;  %v4938_v21 = vpop.f32.mrb[14].mxu1 }
 0x165   : > { %995 = vst [vmem:[#allocation3 + $0x78] sm:$0xff] %v4922_v20  ;;  %1011 = vst [vmem:[#allocation3 + $0xf8] sm:$0xff] %v4938_v21  ;;  %v904_v22 = vpop.f32.mrb[15].mxu0  ;;  %v968_v23 = vpop.f32.mrb[15].mxu1 }
 0x166   : > { %993 = vst [vmem:[#allocation3 + $0x68] sm:$0xff] %v904_v22  ;;  %1009 = vst [vmem:[#allocation3 + $0xe8] sm:$0xff] %v968_v23 }
 0x167 PF: > { %p4743_p5 = scmp.ne.s32.totalorder %s5397_s20, 0 }
 0x168   : > { %vm1015_vm0 = vcmask (!%p4743_p5), 7168   ;;  %v5423_v24 = vmov (!%p4743_p5), -1e+30   ;;  %v5424_v25 = vmov (!%p4743_p5), 0.0  }
 0x169   : > { %1014 = sbr.rel (%p4743_p5) target bundleno = 385 (0x181), region = 133  ;;  %1016 = vst.msk [vmem:[#allocation4] sm:$0xff] (!%p4743_p5), %vm1015_vm0, %v5423_v24  ;;  %1017 = vst.msk [vmem:[#allocation4 + $0x8] sm:$0xff] (!%p4743_p5), %vm1015_vm0, %v5423_v24 }
 0x16a   : > { %1018 = vst.msk [vmem:[#allocation4 + $0x10] sm:$0xff] (!%p4743_p5), %vm1015_vm0, %v5423_v24  ;;  %1019 = vst.msk [vmem:[#allocation4 + $0x18] sm:$0xff] (!%p4743_p5), %vm1015_vm0, %v5423_v24 }
 0x16b   : > { %1020 = vst.msk [vmem:[#allocation4 + $0x20] sm:$0xff] (!%p4743_p5), %vm1015_vm0, %v5423_v24  ;;  %1021 = vst.msk [vmem:[#allocation4 + $0x28] sm:$0xff] (!%p4743_p5), %vm1015_vm0, %v5423_v24 }
 0x16c   : > { %1022 = vst.msk [vmem:[#allocation4 + $0x30] sm:$0xff] (!%p4743_p5), %vm1015_vm0, %v5423_v24  ;;  %1023 = vst.msk [vmem:[#allocation4 + $0x38] sm:$0xff] (!%p4743_p5), %vm1015_vm0, %v5423_v24 }
 0x16d   : > { %1024 = vst.msk [vmem:[#allocation4 + $0x40] sm:$0xff] (!%p4743_p5), %vm1015_vm0, %v5423_v24  ;;  %1025 = vst.msk [vmem:[#allocation4 + $0x48] sm:$0xff] (!%p4743_p5), %vm1015_vm0, %v5423_v24 }
 0x16e   : > { %1026 = vst.msk [vmem:[#allocation4 + $0x50] sm:$0xff] (!%p4743_p5), %vm1015_vm0, %v5423_v24  ;;  %1027 = vst.msk [vmem:[#allocation4 + $0x58] sm:$0xff] (!%p4743_p5), %vm1015_vm0, %v5423_v24 }
 0x16f   : > { %1028 = vst.msk [vmem:[#allocation4 + $0x60] sm:$0xff] (!%p4743_p5), %vm1015_vm0, %v5423_v24  ;;  %1029 = vst.msk [vmem:[#allocation4 + $0x68] sm:$0xff] (!%p4743_p5), %vm1015_vm0, %v5423_v24 }
 0x170   : > { %1030 = vst.msk [vmem:[#allocation4 + $0x70] sm:$0xff] %vm1015_vm0, %v5423_v24  ;;  %1031 = vst.msk [vmem:[#allocation4 + $0x78] sm:$0xff] %vm1015_vm0, %v5423_v24 }
 0x171   : > { %1032 = vst.msk [vmem:[#allocation5] sm:$0xff] %vm1015_vm0, %v5424_v25  ;;  %1033 = vst.msk [vmem:[#allocation5 + $0x8] sm:$0xff] %vm1015_vm0, %v5424_v25 }
 0x172   : > { %1034 = vst.msk [vmem:[#allocation5 + $0x10] sm:$0xff] %vm1015_vm0, %v5424_v25  ;;  %1035 = vst.msk [vmem:[#allocation5 + $0x18] sm:$0xff] %vm1015_vm0, %v5424_v25 }
 0x173   : > { %1036 = vst.msk [vmem:[#allocation5 + $0x20] sm:$0xff] %vm1015_vm0, %v5424_v25  ;;  %1037 = vst.msk [vmem:[#allocation5 + $0x28] sm:$0xff] %vm1015_vm0, %v5424_v25 }
 0x174   : > { %1038 = vst.msk [vmem:[#allocation5 + $0x30] sm:$0xff] %vm1015_vm0, %v5424_v25  ;;  %1039 = vst.msk [vmem:[#allocation5 + $0x38] sm:$0xff] %vm1015_vm0, %v5424_v25 }
 0x175   : > { %1040 = vst.msk [vmem:[#allocation5 + $0x40] sm:$0xff] %vm1015_vm0, %v5424_v25  ;;  %1041 = vst.msk [vmem:[#allocation5 + $0x48] sm:$0xff] %vm1015_vm0, %v5424_v25 }
 0x176   : > { %1042 = vst.msk [vmem:[#allocation5 + $0x50] sm:$0xff] %vm1015_vm0, %v5424_v25  ;;  %1043 = vst.msk [vmem:[#allocation5 + $0x58] sm:$0xff] %vm1015_vm0, %v5424_v25 }
 0x177   : > { %1044 = vst.msk [vmem:[#allocation5 + $0x60] sm:$0xff] %vm1015_vm0, %v5424_v25  ;;  %1045 = vst.msk [vmem:[#allocation5 + $0x68] sm:$0xff] %vm1015_vm0, %v5424_v25 }
 0x178   : > { %1046 = vst.msk [vmem:[#allocation5 + $0x70] sm:$0xff] %vm1015_vm0, %v5424_v25  ;;  %1047 = vst.msk [vmem:[#allocation5 + $0x78] sm:$0xff] %vm1015_vm0, %v5424_v25 }
 0x179   : > { %1048 = vst [vmem:[#allocation6] sm:$0xff] %v5424_v25  ;;  %1049 = vst [vmem:[#allocation6 + $0x8] sm:$0xff] %v5424_v25 }
 0x17a   : > { %1050 = vst [vmem:[#allocation6 + $0x10] sm:$0xff] %v5424_v25  ;;  %1051 = vst [vmem:[#allocation6 + $0x18] sm:$0xff] %v5424_v25 }
 0x17b   : > { %1052 = vst [vmem:[#allocation6 + $0x20] sm:$0xff] %v5424_v25  ;;  %1053 = vst [vmem:[#allocation6 + $0x28] sm:$0xff] %v5424_v25 }
 0x17c   : > { %1054 = vst [vmem:[#allocation6 + $0x30] sm:$0xff] %v5424_v25  ;;  %1055 = vst [vmem:[#allocation6 + $0x38] sm:$0xff] %v5424_v25 }
 0x17d   : > { %1056 = vst [vmem:[#allocation6 + $0x40] sm:$0xff] %v5424_v25  ;;  %1057 = vst [vmem:[#allocation6 + $0x48] sm:$0xff] %v5424_v25 }
 0x17e   : > { %1058 = vst [vmem:[#allocation6 + $0x50] sm:$0xff] %v5424_v25  ;;  %1059 = vst [vmem:[#allocation6 + $0x58] sm:$0xff] %v5424_v25 }
 0x17f   : > { %1060 = vst [vmem:[#allocation6 + $0x60] sm:$0xff] %v5424_v25  ;;  %1061 = vst [vmem:[#allocation6 + $0x68] sm:$0xff] %v5424_v25 }
 0x180   : > { %1062 = vst [vmem:[#allocation6 + $0x70] sm:$0xff] %v5424_v25  ;;  %1063 = vst [vmem:[#allocation6 + $0x78] sm:$0xff] %v5424_v25 }
 0x181 PF: > { %s4745_s17 = sshll.u32 %s5397_s20, 7  ;;  %v5425_v26 = vmov 0.0|0.0   ;;  %vm5426_vm1 = vmmov 0   ;;  %v5427_v27 = vmov 0.0   ;;  %s4744_s18 = sshll.u32 %s5401_s21, 7 }
 0x182   : > { %5086 = vmatprep.subr.bf16.mxu0 %v5425_v26  ;;  %4971 = vmatprep.mubr.msk.f32.mxu0 %vm5426_vm1, %v5427_v27  ;;  %s5793_s15 = scalar_lea.vmem [#allocation3], %s4745_s17  ;;  %v5804_v34 = vld [vmem:[%s665_s9] ss:$0 sm:$0xff]  ;;  %s5811_s11 = scalar_lea.vmem [#allocation3], %s4744_s18  ;;  %v1226_v27 = vlaneseq }
 0x183   : > { %v1084_v28 = vld [vmem:[%s5793_s15] sm:$0xff]  ;;  %v1085_v29 = vld [vmem:[%s5793_s15 + $0x8] sm:$0xff]  ;;  %v1086_v30 = vld [vmem:[%s5793_s15 + $0x10] sm:$0xff]  ;;  %p1952_p6 = scmp.eq.s32.totalorder %s5397_s20, 1  ;;  %p4747_p7 = scmp.ne.s32.totalorder %s5397_s20, 1 }
 0x184   : > { %v5087_v31 = vpack.c.bf16 %v1085_v29, %v1084_v28  ;;  %v1087_v32 = vld [vmem:[%s5793_s15 + $0x18] sm:$0xff]  ;;  %v1088_v35 = vld [vmem:[%s5793_s15 + $0x20] sm:$0xff]  ;;  %v1089_v36 = vld [vmem:[%s5793_s15 + $0x28] sm:$0xff] }
 0x185   : > { %v5090_v33 = vpack.c.bf16 %v1087_v32, %v1086_v30  ;;  %v1069_v37 = vld [vmem:[%s5811_s11 + $0x10] sm:$0xff]  ;;  %v1067_v38 = vld [vmem:[%s5811_s11] sm:$0xff]  ;;  %v1070_v41 = vld [vmem:[%s5811_s11 + $0x18] sm:$0xff]  ;;  %v5093_v43 = vpack.c.bf16 %v1089_v36, %v1088_v35  ;;  %v1227_v30 = vshrl.u32 %v1226_v27, 7 }
 0x186   : > { %5088 = vmatpush3.bf16.xpose.msra.mxu0 %v5087_v31  ;;  %4974 = vmatprep.subr.bf16.mxu1 %v5087_v31  ;;  %v1109_v39 = vmul.f32 %v5804_v34, %v1069_v37  ;;  %v1107_v40 = vmul.f32 %v5804_v34, %v1067_v38  ;;  %v1068_v42 = vld [vmem:[%s5811_s11 + $0x8] sm:$0xff]  ;;  %v1110_v44 = vmul.f32 %v5804_v34, %v1070_v41  ;;  %v1090_v45 = vld [vmem:[%s5793_s15 + $0x30] sm:$0xff]  ;;  %v1091_v46 = vld [vmem:[%s5793_s15 + $0x38] sm:$0xff] }
 0x187   : > { %5089 = vmatprep.subr.bf16.mxu0 %v5425_v26  ;;  %4975 = vmatpush3.bf16.msra.mxu1 %v5087_v31  ;;  %v1108_v47 = vmul.f32 %v5804_v34, %v1068_v42  ;;  %v1072_v48 = vld [vmem:[%s5811_s11 + $0x28] sm:$0xff]  ;;  %v1071_v49 = vld [vmem:[%s5811_s11 + $0x20] sm:$0xff]  ;;  %v5096_v50 = vpack.c.bf16 %v1091_v46, %v1090_v45  ;;  %v1074_v55 = vld [vmem:[%s5811_s11 + $0x38] sm:$0xff]  ;;  %v1228_v31 = vsub.s32 0, %v1227_v30 }
 0x188   : > { %4976 = vmatprep.subr.bf16.mxu1 %v5090_v33  ;;  %1127 = vadd.xlane.f32.xlu1 %v1109_v39  ;;  %v1112_v51 = vmul.f32 %v5804_v34, %v1072_v48  ;;  %v1092_v52 = vld [vmem:[%s5793_s15 + $0x40] sm:$0xff]  ;;  %v1093_v53 = vld [vmem:[%s5793_s15 + $0x48] sm:$0xff]  ;;  %v1111_v54 = vmul.f32 %v5804_v34, %v1071_v49  ;;  %v1073_v56 = vld [vmem:[%s5811_s11 + $0x30] sm:$0xff]  ;;  %v1114_v58 = vmul.f32 %v5804_v34, %v1074_v55 }
 0x189   : > { %1123 = vadd.xlane.f32.xlu0 %v1107_v40  ;;  %v5099_v57 = vpack.c.bf16 %v1093_v53, %v1092_v52  ;;  %v1094_v59 = vld [vmem:[%s5793_s15 + $0x50] sm:$0xff]  ;;  %v1095_v60 = vld [vmem:[%s5793_s15 + $0x58] sm:$0xff]  ;;  %v1113_v61 = vmul.f32 %v5804_v34, %v1073_v56  ;;  %v1076_v62 = vld [vmem:[%s5811_s11 + $0x48] sm:$0xff] }
 0x18a   : > { %v1075_v63 = vld [vmem:[%s5811_s11 + $0x40] sm:$0xff]  ;;  %v5102_v0 = vpack.c.bf16 %v1095_v60, %v1094_v59  ;;  %v1116_v1 = vmul.f32 %v5804_v34, %v1076_v62  ;;  %v1097_v3 = vld [vmem:[%s5793_s15 + $0x68] sm:$0xff]  ;;  %v1078_v5 = vld [vmem:[%s5811_s11 + $0x58] sm:$0xff] }
 0x18b   : > { %4977 = vmatpush3.bf16.msra.mxu1 %v5090_v33  ;;  %v1096_v2 = vld [vmem:[%s5793_s15 + $0x60] sm:$0xff]  ;;  %v1115_v4 = vmul.f32 %v5804_v34, %v1075_v63  ;;  %v1077_v6 = vld [vmem:[%s5811_s11 + $0x50] sm:$0xff]  ;;  %v1118_v8 = vmul.f32 %v5804_v34, %v1078_v5  ;;  %v1099_v10 = vld [vmem:[%s5793_s15 + $0x78] sm:$0xff] }
 0x18c   : > { %4978 = vmatprep.subr.bf16.mxu1 %v5093_v43  ;;  %1129 = vadd.xlane.f32.xlu1 %v1110_v44  ;;  %v5105_v7 = vpack.c.bf16 %v1097_v3, %v1096_v2  ;;  %v1098_v9 = vld [vmem:[%s5793_s15 + $0x70] sm:$0xff]  ;;  %v1117_v11 = vmul.f32 %v5804_v34, %v1077_v6  ;;  %v1080_v12 = vld [vmem:[%s5811_s11 + $0x68] sm:$0xff]  ;;  %v1079_v13 = vld [vmem:[%s5811_s11 + $0x60] sm:$0xff] }
 0x18d   : > { %1125 = vadd.xlane.f32.xlu0 %v1108_v47  ;;  %v5108_v14 = vpack.c.bf16 %v1099_v10, %v1098_v9  ;;  %v1120_v15 = vmul.f32 %v5804_v34, %v1080_v12  ;;  %v1119_v16 = vmul.f32 %v5804_v34, %v1079_v13  ;;  %v1082_v17 = vld [vmem:[%s5811_s11 + $0x78] sm:$0xff]  ;;  %v1081_v18 = vld [vmem:[%s5811_s11 + $0x70] sm:$0xff]  ;;  %v1155_v21 = vld [vmem:[%s662_s29] sm:$0x1] }
 0x18e   : > { %5091 = vmatpush3.bf16.xpose.msra.mxu0 %v5090_v33  ;;  %v1122_v19 = vmul.f32 %v5804_v34, %v1082_v17  ;;  %v1121_v20 = vmul.f32 %v5804_v34, %v1081_v18  ;;  %v4760_v36 = vld [vmem:[%s5639_s23] sm:$0xff]   ;;  %v4791_v45 = vld [vmem:[%s5639_s23 + $0x8] sm:$0xff]   ;;  %v4792_v59 = vld [vmem:[%s5639_s23 + $0x10] sm:$0xff]  }
 0x18f   : > { %5092 = vmatprep.subr.bf16.mxu0 %v5425_v26  ;;  %4979 = vmatpush3.bf16.msra.mxu1 %v5093_v43  ;;  %v4761_v41 = vunpack.c.l.bf16 %v4760_v36  ;;  %v4762_v44 = vunpack.c.h.bf16 %v4760_v36  ;;  %v4770_v2 = vunpack.c.h.bf16 %v4792_v59  ;;  %v4769_v3 = vunpack.c.l.bf16 %v4792_v59 }
 0x190   : > { %4980 = vmatprep.subr.bf16.mxu1 %v5096_v50  ;;  %1133 = vadd.xlane.f32.xlu1 %v1112_v51 }
 0x191   : > { %1131 = vadd.xlane.f32.xlu0 %v1111_v54  ;;  %v4765_v54 = vunpack.c.l.bf16 %v4791_v45 }
 0x193   : > { %4981 = vmatpush3.bf16.msra.mxu1 %v5096_v50 }
 0x194   : > { %4982 = vmatprep.subr.bf16.mxu1 %v5099_v57  ;;  %1137 = vadd.xlane.f32.xlu1 %v1114_v58 }
 0x195   : > { %1135 = vadd.xlane.f32.xlu0 %v1113_v61 }
 0x196   : > { %5094 = vmatpush3.bf16.xpose.msra.mxu0 %v5093_v43 }
 0x197   : > { %5095 = vmatprep.subr.bf16.mxu0 %v5425_v26  ;;  %4983 = vmatpush3.bf16.msra.mxu1 %v5099_v57 }
 0x198   : > { %4984 = vmatprep.subr.bf16.mxu1 %v5102_v0  ;;  %1141 = vadd.xlane.f32.xlu1 %v1116_v1 }
 0x199   : > { %1139 = vadd.xlane.f32.xlu0 %v1115_v4 }
 0x19b   : > { %4985 = vmatpush3.bf16.msra.mxu1 %v5102_v0 }
 0x19c   : > { %4986 = vmatprep.subr.bf16.mxu1 %v5105_v7  ;;  %1145 = vadd.xlane.f32.xlu1 %v1118_v8  ;;  %v4793_v8 = vld [vmem:[%s5639_s23 + $0x18] sm:$0xff]  }
 0x19d   : > { %1143 = vadd.xlane.f32.xlu0 %v1117_v11  ;;  %v4774_v17 = vunpack.c.h.bf16 %v4793_v8  ;;  %v4773_v18 = vunpack.c.l.bf16 %v4793_v8 }
 0x19e   : > { %5097 = vmatpush3.bf16.xpose.msra.mxu0 %v5096_v50 }
 0x19f   : > { %5098 = vmatprep.subr.bf16.mxu0 %v5425_v26  ;;  %4987 = vmatpush3.bf16.msra.mxu1 %v5105_v7 }
 0x1a0   : > { %4988 = vmatprep.subr.bf16.mxu1 %v5108_v14  ;;  %1149 = vadd.xlane.f32.xlu1 %v1120_v15 }
 0x1a1   : > { %1147 = vadd.xlane.f32.xlu0 %v1119_v16 }
 0x1a3   : > { %4989 = vmatpush3.bf16.msra.mxu1 %v5108_v14 }
 0x1a4   : > { %1153 = vadd.xlane.f32.xlu1 %v1122_v19 }
 0x1a5   : > { %1151 = vadd.xlane.f32.xlu0 %v1121_v20 }
 0x1a6   : > { %5100 = vmatpush3.bf16.xpose.msra.mxu0 %v5099_v57  ;;  %v4766_v57 = vunpack.c.h.bf16 %v4791_v45 }
 0x1a7   : > { %5101 = vmatprep.subr.bf16.mxu0 %v5425_v26 }
 0x1ae   : > { %5103 = vmatpush3.bf16.xpose.msra.mxu0 %v5102_v0 }
 0x1af   : > { %5104 = vmatprep.subr.bf16.mxu0 %v5425_v26 }
 0x1b6   : > { %5106 = vmatpush3.bf16.xpose.msra.mxu0 %v5105_v7 }
 0x1b7   : > { %5107 = vmatprep.subr.bf16.mxu0 %v5425_v26 }
 0x1be   : > { %5109 = vmatpush3.bf16.xpose.msra.mxu0 %v5108_v14 }
 0x1c5   : > { %4972 = vmatmul.mubr.f32.vlgmr.msra.gmra.mrb[0].mxu0 %v1155_v21  ;;  %v4794_v21 = vld [vmem:[%s5639_s23 + $0x20] sm:$0xff]  }
 0x215   : > { %v1128_v22 = vpop.xlane.xlu1 %1127 }
 0x216   : > { %v1124_v23 = vpop.xlane.xlu0 %1123 }
 0x219   : > { %v1130_v24 = vpop.xlane.xlu1 %1129 }
 0x21a   : > { %v1126_v25 = vpop.xlane.xlu0 %1125 }
 0x21d   : > { %v1134_v28 = vpop.xlane.xlu1 %1133 }
 0x21e   : > { %v1132_v29 = vpop.xlane.xlu0 %1131 }
 0x221   : > { %v1138_v32 = vpop.xlane.xlu1 %1137 }
 0x222   : > { %v1136_v26 = vpop.xlane.xlu0 %1135 }
 0x225   : > { %v1142_v39 = vpop.xlane.xlu1 %1141 }
 0x226   : > { %v1140_v40 = vpop.xlane.xlu0 %1139 }
 0x229   : > { %v1146_v60 = vpop.xlane.xlu1 %1145 }
 0x22a   : > { %v1144_v61 = vpop.xlane.xlu0 %1143 }
 0x22d   : > { %v1150_v14 = vpop.xlane.xlu1 %1149 }
 0x22e   : > { %v1148_v15 = vpop.xlane.xlu0 %1147 }
 0x232   : > { %v1152_v36 = vpop.xlane.xlu0 %1151 }
 0x298   : > { %v1222_v33 = vpop.f32.mrb[0].mxu0 }
 0x299   : > { %v5866_v34 = vrot.slane %v1222_v33, %v1228_v31  ;;  %v4973_v35 = vpop.f32.mrb[1].mxu0 }
 0x29a   : > { %v1154_v35 = vpop.xlane.xlu1 %1153 }
 0x29b   : > { %v1230_v37 = vadd.f32 %v5866_v34, %v1124_v23  ;;  %v1231_v38 = vadd.f32 %v5866_v34, %v1126_v25  ;;  %v1232_v42 = vadd.f32 %v5866_v34, %v1128_v22  ;;  %v1233_v43 = vadd.f32 %v5866_v34, %v1130_v24 }
 0x29c   : > { %v1235_v46 = vadd.f32 %v5866_v34, %v1134_v28  ;;  %v1234_v49 = vadd.f32 %v5866_v34, %v1132_v29  ;;  %v1237_v1 = vadd.f32 %v5866_v34, %v1138_v32  ;;  %v1236_v4 = vadd.f32 %v5866_v34, %v1136_v26  ;;  %v4795_v26 = vld [vmem:[%s5639_s23 + $0x28] sm:$0xff]  }
 0x29d   : > { %vm1246_vm2 = vcmp.gt.f32.partialorder %v1230_v37, 0.0  ;;  %vm1247_vm3 = vcmp.gt.f32.partialorder %v1231_v38, 0.0  ;;  %v1262_v47 = vmul.f32 0.2, %v1230_v37  ;;  %v1263_v48 = vmul.f32 0.2, %v1231_v38 }
 0x29e   : > { %vm1248_vm4 = vcmp.gt.f32.partialorder %v1232_v42, 0.0  ;;  %v1264_v50 = vmul.f32 0.2, %v1232_v42  ;;  %vm1249_vm5 = vcmp.gt.f32.partialorder %v1233_v43, 0.0  ;;  %v1265_v51 = vmul.f32 0.2, %v1233_v43 }
 0x29f   : > { %v1278_v52 = vsel %vm1246_vm2, %v1230_v37, %v1262_v47  ;;  %v1279_v53 = vsel %vm1247_vm3, %v1231_v38, %v1263_v48  ;;  %v1267_v58 = vmul.f32 0.2, %v1235_v46  ;;  %vm1251_vm6 = vcmp.gt.f32.partialorder %v1235_v46, 0.0 }
 0x2a0   : > { %v5876_v55 = vadd.f32 %v4761_v41, %v1278_v52  ;;  %v5878_v56 = vadd.f32 %v4762_v44, %v1279_v53  ;;  %v1280_v62 = vsel %vm1248_vm4, %v1232_v42, %v1264_v50  ;;  %v1281_v63 = vsel %vm1249_vm5, %v1233_v43, %v1265_v51  ;;  %v4796_v50 = vld [vmem:[%s5639_s23 + $0x30] sm:$0xff]  }
 0x2a1   : > { %v1266_v0 = vmul.f32 0.2, %v1234_v49  ;;  %vm1250_vm7 = vcmp.gt.f32.partialorder %v1234_v49, 0.0  ;;  %v5885_v5 = vadd.f32 %v4765_v54, %v1280_v62  ;;  %v5887_v6 = vadd.f32 %v4766_v57, %v1281_v63 }
 0x2a2   : > { %1358 = vmax.xlane.f32.xlu0 %v5876_v55  ;;  %1360 = vmax.xlane.f32.xlu1 %v5878_v56  ;;  %v1283_v7 = vsel %vm1251_vm6, %v1235_v46, %v1267_v58  ;;  %v1239_v9 = vadd.f32 %v5866_v34, %v1142_v39  ;;  %v1269_v11 = vmul.f32 0.2, %v1237_v1  ;;  %v1268_v12 = vmul.f32 0.2, %v1236_v4 }
 0x2a3   : > { %v1282_v10 = vsel %vm1250_vm7, %v1234_v49, %v1266_v0  ;;  %v1238_v13 = vadd.f32 %v5866_v34, %v1140_v40  ;;  %vm1253_vm8 = vcmp.gt.f32.partialorder %v1237_v1, 0.0  ;;  %vm1252_vm9 = vcmp.gt.f32.partialorder %v1236_v4, 0.0 }
 0x2a4   : > { %v5894_v16 = vadd.f32 %v4770_v2, %v1283_v7  ;;  %v5896_v19 = vadd.f32 %v4769_v3, %v1282_v10  ;;  %v1271_v20 = vmul.f32 0.2, %v1239_v9  ;;  %v1241_v22 = vadd.f32 %v5866_v34, %v1146_v60  ;;  %v1342_v10 = vld [vmem:[#allocation4] sm:$0xff] }
 0x2a5   : > { %v1240_v23 = vadd.f32 %v5866_v34, %v1144_v61  ;;  %v1285_v24 = vsel %vm1253_vm8, %v1237_v1, %v1269_v11  ;;  %v1284_v25 = vsel %vm1252_vm9, %v1236_v4, %v1268_v12  ;;  %vm1255_vm10 = vcmp.gt.f32.partialorder %v1239_v9, 0.0  ;;  %v4797_v61 = vld [vmem:[%s5639_s23 + $0x38] sm:$0xff]  }
 0x2a6   : > { %1362 = vmax.xlane.f32.xlu0 %v5885_v5  ;;  %1364 = vmax.xlane.f32.xlu1 %v5887_v6  ;;  %v1270_v27 = vmul.f32 0.2, %v1238_v13  ;;  %vm1254_vm11 = vcmp.gt.f32.partialorder %v1238_v13, 0.0  ;;  %v4778_v28 = vunpack.c.h.bf16 %v4794_v21  ;;  %v4777_v29 = vunpack.c.l.bf16 %v4794_v21 }
 0x2a7   : > { %v5903_v30 = vadd.f32 %v4774_v17, %v1285_v24  ;;  %v5905_v31 = vadd.f32 %v4773_v18, %v1284_v25  ;;  %v1287_v32 = vsel %vm1255_vm10, %v1239_v9, %v1271_v20  ;;  %v1243_v33 = vadd.f32 %v5866_v34, %v1150_v14  ;;  %v5940_v9 = vld [vmem:[#allocation4 + $0x8] sm:$0xff]  ;;  %v5945_v17 = vld [vmem:[#allocation4 + $0x10] sm:$0xff]  ;;  %v5954_v24 = vld [vmem:[#allocation4 + $0x20] sm:$0xff] }
 0x2a8   : > { %v1286_v37 = vsel %vm1254_vm11, %v1238_v13, %v1270_v27  ;;  %v1273_v38 = vmul.f32 0.2, %v1241_v22  ;;  %v1272_v39 = vmul.f32 0.2, %v1240_v23  ;;  %v1242_v40 = vadd.f32 %v5866_v34, %v1148_v15  ;;  %v1345_v15 = vld [vmem:[#allocation4 + $0x18] sm:$0xff] }
 0x2a9   : > { %vm1257_vm12 = vcmp.gt.f32.partialorder %v1241_v22, 0.0  ;;  %vm1256_vm13 = vcmp.gt.f32.partialorder %v1240_v23, 0.0  ;;  %v4782_v41 = vunpack.c.h.bf16 %v4795_v26  ;;  %v4781_v42 = vunpack.c.l.bf16 %v4795_v26  ;;  %v5965_v26 = vld [vmem:[#allocation4 + $0x30] sm:$0xff] }
 0x2aa   : > { %1368 = vmax.xlane.f32.xlu1 %v5894_v16  ;;  %1366 = vmax.xlane.f32.xlu0 %v5896_v19  ;;  %v1245_v43 = vadd.f32 %v5866_v34, %v1154_v35  ;;  %v1244_v44 = vadd.f32 %v5866_v34, %v1152_v36  ;;  %v5914_v45 = vadd.f32 %v4778_v28, %v1287_v32  ;;  %v1275_v49 = vmul.f32 0.2, %v1243_v33  ;;  %v5963_v32 = vld [vmem:[#allocation4 + $0x38] sm:$0xff] }
 0x2ab   : > { %v5916_v46 = vadd.f32 %v4777_v29, %v1286_v37  ;;  %v1289_v47 = vsel %vm1257_vm12, %v1241_v22, %v1273_v38  ;;  %v1288_v48 = vsel %vm1256_vm13, %v1240_v23, %v1272_v39  ;;  %v1274_v51 = vmul.f32 0.2, %v1242_v40  ;;  %v1347_v23 = vld [vmem:[#allocation4 + $0x28] sm:$0xff]  ;;  %v5976_v39 = vld [vmem:[#allocation4 + $0x40] sm:$0xff] }
 0x2ac   : > { %vm1259_vm14 = vcmp.gt.f32.partialorder %v1243_v33, 0.0  ;;  %vm1258_vm15 = vcmp.gt.f32.partialorder %v1242_v40, 0.0  ;;  %v5921_v52 = vadd.f32 %v4782_v41, %v1289_v47  ;;  %v5923_v53 = vadd.f32 %v4781_v42, %v1288_v48  ;;  %v5974_v38 = vld [vmem:[#allocation4 + $0x48] sm:$0xff]  ;;  %v5986_v47 = vld [vmem:[#allocation4 + $0x58] sm:$0xff]  ;;  %v5988_v48 = vld [vmem:[#allocation4 + $0x50] sm:$0xff] }
 0x2ad   : > { %v4786_v34 = vunpack.c.h.bf16 %v4796_v50  ;;  %v4785_v54 = vunpack.c.l.bf16 %v4796_v50  ;;  %v1277_v57 = vmul.f32 0.2, %v1245_v43  ;;  %v1276_v58 = vmul.f32 0.2, %v1244_v44 }
 0x2ae   : > { %1372 = vmax.xlane.f32.xlu1 %v5903_v30  ;;  %1370 = vmax.xlane.f32.xlu0 %v5905_v31  ;;  %v1291_v59 = vsel %vm1259_vm14, %v1243_v33, %v1275_v49  ;;  %v1290_v60 = vsel %vm1258_vm15, %v1242_v40, %v1274_v51  ;;  %vm1261_vm0 = vcmp.gt.f32.partialorder %v1245_v43, 0.0  ;;  %vm1260_vm1 = vcmp.gt.f32.partialorder %v1244_v44, 0.0 }
 0x2af   : > { %v5928_v62 = vadd.f32 %v4786_v34, %v1291_v59  ;;  %v5930_v63 = vadd.f32 %v4785_v54, %v1290_v60  ;;  %v4790_v0 = vunpack.c.h.bf16 %v4797_v61  ;;  %v4789_v1 = vunpack.c.l.bf16 %v4797_v61  ;;  %v5999_v59 = vld [vmem:[#allocation4 + $0x60] sm:$0xff] }
 0x2b0   : > { %v5428_v2 = vmov 0   ;;  %v1293_v3 = vsel %vm1261_vm0, %v1245_v43, %v1277_v57  ;;  %v1292_v4 = vsel %vm1260_vm1, %v1244_v44, %v1276_v58  ;;  %vm1662_vm2 = vcmask 7168   ;;  %v5997_v58 = vld [vmem:[#allocation4 + $0x68] sm:$0xff] }
 0x2b1   : > { %5216 = vset.pattern.permute.xlu1 %v5428_v2  ;;  %5215 = vset.pattern.permute.xlu0 %v5428_v2  ;;  %v5934_v7 = vadd.f32 %v4790_v0, %v1293_v3  ;;  %v5936_v8 = vadd.f32 %v4789_v1, %v1292_v4  ;;  %v6009_v4 = vld [vmem:[#allocation4 + $0x78] sm:$0xff] }
 0x2b2   : > { %1376 = vmax.xlane.f32.xlu1 %v5914_v45  ;;  %1374 = vmax.xlane.f32.xlu0 %v5916_v46 }
 0x2b6   : > { %1380 = vmax.xlane.f32.xlu1 %v5921_v52  ;;  %1378 = vmax.xlane.f32.xlu0 %v5923_v53 }
 0x2ba   : > { %1384 = vmax.xlane.f32.xlu1 %v5928_v62  ;;  %1382 = vmax.xlane.f32.xlu0 %v5930_v63 }
 0x2be   : > { %1388 = vmax.xlane.f32.xlu1 %v5934_v7  ;;  %1386 = vmax.xlane.f32.xlu0 %v5936_v8 }
 0x32f   : > { %v1361_v11 = vpop.xlane.xlu1 %1360  ;;  %v1359_v12 = vpop.xlane.xlu0 %1358 }
 0x330   : > { %v5943_v13 = vmax.f32 %v5940_v9, %v1361_v11  ;;  %v1390_v14 = vmax.f32 %v1342_v10, %v1359_v12 }
 0x332   : > { %1937 = vst.msk [vmem:[#allocation4 + $0x8] sm:$0xff] %vm1662_vm2, %v5943_v13  ;;  %1936 = vst.msk [vmem:[#allocation4] sm:$0xff] %vm1662_vm2, %v1390_v14  ;;  %1461 = vperm.xlu1 %5216, %v5943_v13   ;;  %1456 = vperm.xlu0 %5215, %v1390_v14   ;;  %v1406_v40 = vsub.f32 %v1342_v10, %v1390_v14  ;;  %v6011_v10 = vld [vmem:[#allocation4 + $0x70] sm:$0xff]  ;;  %v1407_v11 = vsub.f32 %v5940_v9, %v5943_v13 }
 0x333   : > { %v1365_v18 = vpop.xlane.xlu1 %1364  ;;  %v1363_v20 = vpop.xlane.xlu0 %1362 }
 0x334   : > { %v1393_v21 = vmax.f32 %v1345_v15, %v1365_v18  ;;  %v5952_v22 = vmax.f32 %v5945_v17, %v1363_v20  ;;  %v1422_v49 = vmul.f32 1.442695, %v1406_v40  ;;  %v1424_v9 = vmul.f32 1.442695, %v1407_v11 }
 0x336   : > { %1939 = vst.msk [vmem:[#allocation4 + $0x18] sm:$0xff] %vm1662_vm2, %v1393_v21  ;;  %1938 = vst.msk [vmem:[#allocation4 + $0x10] sm:$0xff] %vm1662_vm2, %v5952_v22  ;;  %1466 = vperm.xlu1 %5216, %v5952_v22   ;;  %v1409_v50 = vsub.f32 %v1345_v15, %v1393_v21  ;;  %5217 = vpow2.f32 %v1422_v49  ;;  %v1408_v13 = vsub.f32 %v5945_v17, %v5952_v22 }
 0x337   : > { %v1369_v25 = vpop.xlane.xlu1 %1368  ;;  %v1367_v27 = vpop.xlane.xlu0 %1366 }
 0x338   : > { %v1395_v28 = vmax.f32 %v1347_v23, %v1369_v25  ;;  %v5961_v29 = vmax.f32 %v5954_v24, %v1367_v27  ;;  %v1428_v60 = vmul.f32 1.442695, %v1409_v50 }
 0x33a   : > { %1941 = vst.msk [vmem:[#allocation4 + $0x28] sm:$0xff] %vm1662_vm2, %v1395_v28  ;;  %1940 = vst.msk [vmem:[#allocation4 + $0x20] sm:$0xff] %vm1662_vm2, %v5961_v29  ;;  %1471 = vperm.xlu1 %5216, %v1393_v21   ;;  %v1411_v61 = vsub.f32 %v1347_v23, %v1395_v28  ;;  %5219 = vpow2.f32 %v1428_v60 }
 0x33b   : > { %v1373_v33 = vpop.xlane.xlu1 %1372  ;;  %v1371_v35 = vpop.xlane.xlu0 %1370 }
 0x33c   : > { %v1397_v36 = vmax.f32 %v5963_v32, %v1373_v33  ;;  %v5972_v37 = vmax.f32 %v5965_v26, %v1371_v35  ;;  %v1432_v12 = vmul.f32 1.442695, %v1411_v61 }
 0x33e   : > { %1943 = vst.msk [vmem:[#allocation4 + $0x38] sm:$0xff] %vm1662_vm2, %v1397_v36  ;;  %1942 = vst.msk [vmem:[#allocation4 + $0x30] sm:$0xff] %vm1662_vm2, %v5972_v37  ;;  %1476 = vperm.xlu1 %5216, %v5961_v29   ;;  %v1413_v14 = vsub.f32 %v5963_v32, %v1397_v36  ;;  %5221 = vpow2.f32 %v1432_v12  ;;  %v1410_v32 = vsub.f32 %v5954_v24, %v5961_v29 }
 0x33f   : > { %v1377_v41 = vpop.xlane.xlu1 %1376  ;;  %v1375_v42 = vpop.xlane.xlu0 %1374  ;;  %5223 = vpow2.f32 %v1424_v9 }
 0x340   : > { %v1399_v43 = vmax.f32 %v5974_v38, %v1377_v41  ;;  %v5984_v44 = vmax.f32 %v5976_v39, %v1375_v42  ;;  %v1436_v27 = vmul.f32 1.442695, %v1413_v14  ;;  %v6038_v22 = vpop.eup %5217  ;;  %v1430_v40 = vmul.f32 1.442695, %v1410_v32 }
 0x342   : > { %1945 = vst.msk [vmem:[#allocation4 + $0x48] sm:$0xff] %vm1662_vm2, %v1399_v43  ;;  %1944 = vst.msk [vmem:[#allocation4 + $0x40] sm:$0xff] %vm1662_vm2, %v5984_v44  ;;  %1501 = vperm.xlu0 %5215, %v1399_v43   ;;  %1481 = vperm.xlu1 %5216, %v1395_v28   ;;  %v1415_v17 = vsub.f32 %v5974_v38, %v1399_v43  ;;  %v1426_v28 = vmul.f32 1.442695, %v1408_v13  ;;  %5225 = vpow2.f32 %v1436_v27 }
 0x343   : > { %v1381_v51 = vpop.xlane.xlu1 %1380  ;;  %v1379_v34 = vpop.xlane.xlu0 %1378  ;;  %v1412_v38 = vsub.f32 %v5965_v26, %v5972_v37  ;;  %v1414_v43 = vsub.f32 %v5976_v39, %v5984_v44 }
 0x344   : > { %v1401_v54 = vmax.f32 %v5986_v47, %v1381_v51  ;;  %v5995_v57 = vmax.f32 %v5988_v48, %v1379_v34  ;;  %v1440_v33 = vmul.f32 1.442695, %v1415_v17  ;;  %5227 = vpow2.f32 %v1426_v28 }
 0x345   : > { %v1434_v42 = vmul.f32 1.442695, %v1412_v38  ;;  %v1438_v49 = vmul.f32 1.442695, %v1414_v43 }
 0x346   : > { %1947 = vst.msk [vmem:[#allocation4 + $0x58] sm:$0xff] %vm1662_vm2, %v1401_v54  ;;  %1946 = vst.msk [vmem:[#allocation4 + $0x50] sm:$0xff] %vm1662_vm2, %v5995_v57  ;;  %1511 = vperm.xlu0 %5215, %v1401_v54   ;;  %1486 = vperm.xlu1 %5216, %v5972_v37   ;;  %v1417_v35 = vsub.f32 %v5986_v47, %v1401_v54  ;;  %5229 = vpow2.f32 %v1440_v33  ;;  %v1416_v50 = vsub.f32 %v5988_v48, %v5995_v57 }
 0x347   : > { %v1385_v0 = vpop.xlane.xlu1 %1384  ;;  %v1383_v1 = vpop.xlane.xlu0 %1382  ;;  %5231 = vpow2.f32 %v1430_v40 }
 0x348   : > { %v1403_v2 = vmax.f32 %v5997_v58, %v1385_v0  ;;  %v6007_v3 = vmax.f32 %v5999_v59, %v1383_v1  ;;  %v1444_v24 = vmul.f32 1.442695, %v1417_v35  ;;  %v1442_v39 = vmul.f32 1.442695, %v1416_v50 }
 0x34a   : > { %1949 = vst.msk [vmem:[#allocation4 + $0x68] sm:$0xff] %vm1662_vm2, %v1403_v2  ;;  %1948 = vst.msk [vmem:[#allocation4 + $0x60] sm:$0xff] %vm1662_vm2, %v6007_v3  ;;  %1521 = vperm.xlu0 %5215, %v1403_v2   ;;  %1491 = vperm.xlu1 %5216, %v1397_v36   ;;  %v6045_v36 = vpop.eup %5219  ;;  %v1419_v29 = vsub.f32 %v5997_v58, %v1403_v2  ;;  %5233 = vpow2.f32 %v1444_v24 }
 0x34b   : > { %v1389_v15 = vpop.xlane.xlu1 %1388  ;;  %v1387_v18 = vpop.xlane.xlu0 %1386  ;;  %5235 = vpow2.f32 %v1434_v42 }
 0x34c   : > { %v6020_v20 = vmax.f32 %v6009_v4, %v1389_v15  ;;  %v6023_v21 = vmax.f32 %v6011_v10, %v1387_v18  ;;  %v6052_v41 = vpop.eup %5221  ;;  %v1448_v26 = vmul.f32 1.442695, %v1419_v29 }
 0x34d   : > { %v6058_v37 = vpop.eup %5223 }
 0x34e   : > { %v1421_v23 = vsub.f32 %v6009_v4, %v6020_v20  ;;  %1951 = vst.msk [vmem:[#allocation4 + $0x78] sm:$0xff] %vm1662_vm2, %v6020_v20  ;;  %v1420_v25 = vsub.f32 %v6011_v10, %v6023_v21  ;;  %1950 = vst.msk [vmem:[#allocation4 + $0x70] sm:$0xff] %vm1662_vm2, %v6023_v21  ;;  %1531 = vperm.xlu0 %5215, %v6020_v20   ;;  %1496 = vperm.xlu1 %5216, %v5984_v44   ;;  %v6060_v47 = vpop.eup %5225  ;;  %5237 = vpow2.f32 %v1448_v26 }
 0x34f   : > { %v6066_v51 = vpop.eup %5227  ;;  %5239 = vpow2.f32 %v1438_v49  ;;  %v1418_v44 = vsub.f32 %v5999_v59, %v6007_v3 }
 0x350   : > { %v6068_v34 = vpop.eup %5229  ;;  %5241 = vpow2.f32 %v1442_v39 }
 0x351   : > { %v6074_v54 = vpop.eup %5231  ;;  %v1446_v48 = vmul.f32 1.442695, %v1418_v44 }
 0x352   : > { %1697 = vperm.xlu0 %5215, %v6038_v22   ;;  %1506 = vperm.xlu1 %5216, %v5995_v57  }
 0x353   : > { %5243 = vpow2.f32 %v1446_v48 }
 0x354   : > { %v6076_v58 = vpop.eup %5233 }
 0x355   : > { %v6080_v57 = vpop.eup %5235 }
 0x356   : > { %1712 = vperm.xlu0 %5215, %v6045_v36   ;;  %1516 = vperm.xlu1 %5216, %v6007_v3  }
 0x358   : > { %v6082_v60 = vpop.eup %5237 }
 0x359   : > { %v6086_v59 = vpop.eup %5239 }
 0x35a   : > { %1722 = vperm.xlu0 %5215, %v6052_v41   ;;  %1526 = vperm.xlu1 %5216, %v6023_v21   ;;  %v6089_v61 = vpop.eup %5241 }
 0x35d   : > { %v6092_v0 = vpop.eup %5243 }
 0x35e   : > { %1732 = vperm.xlu0 %5215, %v6060_v47   ;;  %1702 = vperm.xlu1 %5216, %v6058_v37  }
 0x362   : > { %1742 = vperm.xlu0 %5215, %v6068_v34   ;;  %1707 = vperm.xlu1 %5216, %v6066_v51  }
 0x366   : > { %1752 = vperm.xlu0 %5215, %v6076_v58   ;;  %1717 = vperm.xlu1 %5216, %v6074_v54  }
 0x36a   : > { %1762 = vperm.xlu0 %5215, %v6082_v60   ;;  %1727 = vperm.xlu1 %5216, %v6080_v57  }
 0x36e   : > { %1737 = vperm.xlu1 %5216, %v6086_v59  }
 0x372   : > { %1747 = vperm.xlu1 %5216, %v6089_v61  }
 0x376   : > { %1757 = vperm.xlu1 %5216, %v6092_v0  }
 0x3b1   : > { %v1462_v1 = vpop.permute.xlu1 %1461  ;;  %v1457_v2 = vpop.permute.xlu0 %1456 }
 0x3b2   : > { %v1535_v3 = vsub.f32 %v5878_v56, %v1462_v1  ;;  %v1534_v11 = vsub.f32 %v5876_v55, %v1457_v2 }
 0x3b4   : > { %v1552_v12 = vmul.f32 1.442695, %v1535_v3  ;;  %v1550_v14 = vmul.f32 1.442695, %v1534_v11 }
 0x3b5   : > { %v1467_v15 = vpop.permute.xlu1 %1466 }
 0x3b6   : > { %5245 = vpow2.f32 %v1552_v12  ;;  %v1536_v18 = vsub.f32 %v5885_v5, %v1467_v15 }
 0x3b7   : > { %5247 = vpow2.f32 %v1550_v14 }
 0x3b8   : > { %v1554_v9 = vmul.f32 1.442695, %v1536_v18 }
 0x3b9   : > { %v1472_v13 = vpop.permute.xlu1 %1471 }
 0x3ba   : > { %5249 = vpow2.f32 %v1554_v9  ;;  %v1537_v27 = vsub.f32 %v5887_v6, %v1472_v13 }
 0x3bc   : > { %v1556_v17 = vmul.f32 1.442695, %v1537_v27 }
 0x3bd   : > { %v1477_v28 = vpop.permute.xlu1 %1476 }
 0x3be   : > { %5251 = vpow2.f32 %v1556_v17  ;;  %v1538_v32 = vsub.f32 %v5896_v19, %v1477_v28 }
 0x3c0   : > { %v5246_v56 = vpop.eup %5245  ;;  %v1558_v33 = vmul.f32 1.442695, %v1538_v32 }
 0x3c1   : > { %v5248_v55 = vpop.eup %5247  ;;  %1616 = vadd.xlane.f32.xlu0 %v5246_v56  ;;  %v1482_v35 = vpop.permute.xlu1 %1481 }
 0x3c2   : > { %v1502_v40 = vpop.permute.xlu0 %1501  ;;  %5253 = vpow2.f32 %v1558_v33  ;;  %v1539_v5 = vsub.f32 %v5894_v16, %v1482_v35  ;;  %1614 = vadd.xlane.f32.xlu1 %v5248_v55  ;;  %v1791_v38 = vpack.c.bf16 %v5246_v56, %v5248_v55 }
 0x3c3   : > { %v1543_v49 = vsub.f32 %v5914_v45, %v1502_v40 }
 0x3c4   : > { %v5250_v24 = vpop.eup %5249  ;;  %v1560_v29 = vmul.f32 1.442695, %v1539_v5  ;;  %4990 = vmatprep.mubr.bf16.mxu1 %v1791_v38 }
 0x3c5   : > { %1618 = vadd.xlane.f32.xlu0 %v5250_v24  ;;  %v1487_v6 = vpop.permute.xlu1 %1486  ;;  %v1568_v2 = vmul.f32 1.442695, %v1543_v49  ;;  %v1450_v49 = vmul.f32 1.442695, %v1420_v25 }
 0x3c6   : > { %5255 = vpow2.f32 %v1560_v29  ;;  %v1540_v42 = vsub.f32 %v5905_v31, %v1487_v6  ;;  %v1512_v19 = vpop.permute.xlu0 %1511 }
 0x3c7   : > { %v1545_v3 = vsub.f32 %v5921_v52, %v1512_v19 }
 0x3c8   : > { %v5252_v43 = vpop.eup %5251  ;;  %v1562_v26 = vmul.f32 1.442695, %v1540_v42 }
 0x3c9   : > { %v1492_v50 = vpop.permute.xlu1 %1491  ;;  %1620 = vadd.xlane.f32.xlu1 %v5252_v43  ;;  %v1792_v39 = vpack.c.bf16 %v5252_v43, %v5250_v24  ;;  %v1572_v14 = vmul.f32 1.442695, %v1545_v3 }
 0x3ca   : > { %5257 = vpow2.f32 %v1562_v26  ;;  %v1541_v16 = vsub.f32 %v5903_v30, %v1492_v50  ;;  %v1522_v1 = vpop.permute.xlu0 %1521  ;;  %v1452_v50 = vmul.f32 1.442695, %v1421_v23 }
 0x3cb   : > { %4991 = vmatmul.mubr.bf16.vlgmr.msra.gmra.mrb[0].mxu1 %v1792_v39  ;;  %v1547_v15 = vsub.f32 %v5928_v62, %v1522_v1 }
 0x3cc   : > { %v5254_v44 = vpop.eup %5253  ;;  %v1564_v48 = vmul.f32 1.442695, %v1541_v16 }
 0x3cd   : > { %1622 = vadd.xlane.f32.xlu0 %v5254_v44  ;;  %v1497_v31 = vpop.permute.xlu1 %1496  ;;  %v1576_v17 = vmul.f32 1.442695, %v1547_v15 }
 0x3ce   : > { %5259 = vpow2.f32 %v1564_v48  ;;  %v1542_v11 = vsub.f32 %v5916_v46, %v1497_v31  ;;  %v1532_v9 = vpop.permute.xlu0 %1531 }
 0x3cf   : > { %5261 = vpow2.f32 %v1568_v2  ;;  %v1549_v46 = vsub.f32 %v5934_v7, %v1532_v9  ;;  %v1584_v9 = vld [vmem:[#allocation5 + $0x10] sm:$0xff] }
 0x3d0   : > { %v5256_v12 = vpop.eup %5255  ;;  %v1566_v45 = vmul.f32 1.442695, %v1542_v11 }
 0x3d1   : > { %v1507_v18 = vpop.permute.xlu1 %1506  ;;  %1624 = vadd.xlane.f32.xlu1 %v5256_v12  ;;  %v1793_v30 = vpack.c.bf16 %v5256_v12, %v5254_v44  ;;  %v1580_v33 = vmul.f32 1.442695, %v1549_v46  ;;  %v1583_v12 = vld [vmem:[#allocation5 + $0x8] sm:$0xff] }
 0x3d2   : > { %5263 = vpow2.f32 %v1566_v45  ;;  %v1544_v13 = vsub.f32 %v5923_v53, %v1507_v18  ;;  %v6123_v44 = vpop.permute.xlu0 %1697  ;;  %v1599_v15 = vmul.f32 %v6058_v37, %v1583_v12 }
 0x3d3   : > { %4994 = vmatprep.mubr.bf16.mxu1 %v1793_v30  ;;  %5265 = vpow2.f32 %v1572_v14  ;;  %v1582_v14 = vld [vmem:[#allocation5] sm:$0xff] }
 0x3d4   : > { %v5258_v52 = vpop.eup %5257  ;;  %v1570_v27 = vmul.f32 1.442695, %v1544_v13  ;;  %v1598_v18 = vmul.f32 %v6038_v22, %v1582_v14  ;;  %v1586_v22 = vld [vmem:[#allocation5 + $0x20] sm:$0xff] }
 0x3d5   : > { %1626 = vadd.xlane.f32.xlu0 %v5258_v52  ;;  %v1517_v28 = vpop.permute.xlu1 %1516 }
 0x3d6   : > { %5267 = vpow2.f32 %v1570_v27  ;;  %v1546_v32 = vsub.f32 %v5930_v63, %v1517_v28  ;;  %v6127_v21 = vpop.permute.xlu0 %1712  ;;  %v1585_v28 = vld [vmem:[#allocation5 + $0x18] sm:$0xff] }
 0x3d7   : > { %5269 = vpow2.f32 %v1576_v17  ;;  %v1600_v17 = vmul.f32 %v6066_v51, %v1584_v9  ;;  %v1601_v37 = vmul.f32 %v6045_v36, %v1585_v28 }
 0x3d8   : > { %v5260_v62 = vpop.eup %5259  ;;  %v1574_v56 = vmul.f32 1.442695, %v1546_v32 }
 0x3d9   : > { %v1527_v55 = vpop.permute.xlu1 %1526  ;;  %1628 = vadd.xlane.f32.xlu1 %v5260_v62  ;;  %v1794_v35 = vpack.c.bf16 %v5260_v62, %v5258_v52  ;;  %v5262_v40 = vpop.eup %5261 }
 0x3da   : > { %5271 = vpow2.f32 %v1574_v56  ;;  %v1548_v53 = vsub.f32 %v5936_v8, %v1527_v55  ;;  %v6131_v4 = vpop.permute.xlu0 %1722 }
 0x3db   : > { %4995 = vmatmul.mubr.bf16.gmra.mrb[4].mxu1 %v1794_v35  ;;  %5273 = vpow2.f32 %v1580_v33  ;;  %v1602_v33 = vmul.f32 %v6074_v54, %v1586_v22  ;;  %v1587_v35 = vld [vmem:[#allocation5 + $0x28] sm:$0xff] }
 0x3dc   : > { %v5264_v5 = vpop.eup %5263  ;;  %v1578_v38 = vmul.f32 1.442695, %v1548_v53  ;;  %v1603_v51 = vmul.f32 %v6052_v41, %v1587_v35  ;;  %v1680_v35 = vld [vmem:[#allocation6 + $0x8] sm:$0xff] }
 0x3dd   : > { %1630 = vadd.xlane.f32.xlu0 %v5264_v5  ;;  %1632 = vadd.xlane.f32.xlu1 %v5262_v40  ;;  %v1795_v7 = vpack.c.bf16 %v5262_v40, %v5264_v5  ;;  %v5266_v63 = vpop.eup %5265  ;;  %v6125_v10 = vpop.permute.xlu1 %1702  ;;  %v1588_v5 = vld [vmem:[#allocation5 + $0x30] sm:$0xff] }
 0x3de   : > { %5275 = vpow2.f32 %v1578_v38  ;;  %v6135_v23 = vpop.permute.xlu0 %1732  ;;  %v1604_v36 = vmul.f32 %v6080_v57, %v1588_v5  ;;  %v1593_v57 = vld [vmem:[#allocation5 + $0x58] sm:$0xff] }
 0x3df   : > { %4998 = vmatprep.mubr.bf16.mxu1 %v1795_v7  ;;  %5277 = vpow2.f32 %v1450_v49  ;;  %v1592_v49 = vld [vmem:[#allocation5 + $0x50] sm:$0xff] }
 0x3e0   : > { %v5268_v24 = vpop.eup %5267  ;;  %5279 = vpow2.f32 %v1452_v50  ;;  %v1608_v14 = vmul.f32 %v6089_v61, %v1592_v49 }
 0x3e1   : > { %1634 = vadd.xlane.f32.xlu0 %v5268_v24  ;;  %1636 = vadd.xlane.f32.xlu1 %v5266_v63  ;;  %v1796_v29 = vpack.c.bf16 %v5266_v63, %v5268_v24  ;;  %v5270_v6 = vpop.eup %5269  ;;  %v6129_v25 = vpop.permute.xlu1 %1707  ;;  %v1589_v63 = vld [vmem:[#allocation5 + $0x38] sm:$0xff] }
 0x3e2   : > { %v6139_v1 = vpop.permute.xlu0 %1742  ;;  %v1605_v54 = vmul.f32 %v6060_v47, %v1589_v63  ;;  %v1609_v47 = vmul.f32 %v6076_v58, %v1593_v57  ;;  %v1596_v58 = vld [vmem:[#allocation5 + $0x70] sm:$0xff] }
 0x3e3   : > { %4999 = vmatmul.mubr.bf16.gmra.mrb[8].mxu1 %v1796_v29 }
 0x3e4   : > { %v5272_v42 = vpop.eup %5271 }
 0x3e5   : > { %1638 = vadd.xlane.f32.xlu0 %v5272_v42  ;;  %1640 = vadd.xlane.f32.xlu1 %v5270_v6  ;;  %v1797_v8 = vpack.c.bf16 %v5270_v6, %v5272_v42  ;;  %v5274_v19 = vpop.eup %5273  ;;  %v6133_v20 = vpop.permute.xlu1 %1717  ;;  %v1591_v6 = vld [vmem:[#allocation5 + $0x48] sm:$0xff]  ;;  %v1590_v42 = vld [vmem:[#allocation5 + $0x40] sm:$0xff] }
 0x3e6   : > { %v6143_v3 = vpop.permute.xlu0 %1752  ;;  %v1607_v41 = vmul.f32 %v6068_v34, %v1591_v6  ;;  %v1594_v34 = vld [vmem:[#allocation5 + $0x60] sm:$0xff]  ;;  %v1686_v6 = vld [vmem:[#allocation6 + $0x38] sm:$0xff] }
 0x3e7   : > { %5002 = vmatprep.mubr.bf16.mxu1 %v1797_v8 }
 0x3e8   : > { %v5276_v43 = vpop.eup %5275 }
 0x3e9   : > { %1642 = vadd.xlane.f32.xlu0 %v5276_v43  ;;  %1644 = vadd.xlane.f32.xlu1 %v5274_v19  ;;  %v1798_v26 = vpack.c.bf16 %v5274_v19, %v5276_v43  ;;  %v6117_v39 = vpop.eup %5277  ;;  %v6137_v48 = vpop.permute.xlu1 %1727  ;;  %v1606_v19 = vmul.f32 %v6086_v59, %v1590_v42 }
 0x3ea   : > { %v6120_v16 = vpop.eup %5279  ;;  %v6148_v11 = vpop.permute.xlu0 %1762 }
 0x3eb   : > { %5003 = vmatmul.mubr.bf16.gmra.mrb[12].mxu1 %v1798_v26 }
 0x3ed   : > { %v6141_v2 = vpop.permute.xlu1 %1737 }
 0x3f1   : > { %v6146_v31 = vpop.permute.xlu1 %1747 }
 0x3f5   : > { %v6150_v45 = vpop.permute.xlu1 %1757 }
 0x3fa   : > { %1767 = vperm.xlu1 %5216, %v6117_v39  }
 0x3ff   : > { %1772 = vperm.xlu0 %5215, %v6120_v16  }
 0x44e   : > { %v1617_v30 = vpop.xlane.xlu0 %1616 }
 0x44f   : > { %v1615_v13 = vpop.xlane.xlu1 %1614  ;;  %v1647_v52 = vadd.f32 %v1617_v30, %v1599_v15  ;;  %v1595_v30 = vld [vmem:[#allocation5 + $0x68] sm:$0xff] }
 0x450   : > { %v1646_v27 = vadd.f32 %v1615_v13, %v1598_v18  ;;  %v1611_v13 = vmul.f32 %v6082_v60, %v1595_v30 }
 0x451   : > { %1664 = vst.msk [vmem:[#allocation5 + $0x8] sm:$0xff] %vm1662_vm2, %v1647_v52  ;;  %v1610_v52 = vmul.f32 %v6092_v0, %v1594_v34  ;;  %v1681_v0 = vld [vmem:[#allocation6 + $0x10] sm:$0xff] }
 0x452   : > { %1663 = vst.msk [vmem:[#allocation5] sm:$0xff] %vm1662_vm2, %v1646_v27  ;;  %v1619_v46 = vpop.xlane.xlu0 %1618 }
 0x453   : > { %v1648_v32 = vadd.f32 %v1619_v46, %v1600_v17  ;;  %v1597_v46 = vld [vmem:[#allocation5 + $0x78] sm:$0xff] }
 0x455   : > { %1665 = vst.msk [vmem:[#allocation5 + $0x10] sm:$0xff] %vm1662_vm2, %v1648_v32  ;;  %v1613_v32 = vmul.f32 %v6120_v16, %v1597_v46 }
 0x456   : > { %v1621_v62 = vpop.xlane.xlu1 %1620 }
 0x457   : > { %v1649_v56 = vadd.f32 %v1621_v62, %v1601_v37  ;;  %v1612_v37 = vmul.f32 %v6117_v39, %v1596_v58 }
 0x459   : > { %1666 = vst.msk [vmem:[#allocation5 + $0x18] sm:$0xff] %vm1662_vm2, %v1649_v56 }
 0x45a   : > { %v1623_v55 = vpop.xlane.xlu0 %1622 }
 0x45b   : > { %v1650_v53 = vadd.f32 %v1623_v55, %v1602_v33  ;;  %v1679_v33 = vld [vmem:[#allocation6] sm:$0xff]  ;;  %v1682_v55 = vld [vmem:[#allocation6 + $0x18] sm:$0xff] }
 0x45c   : > { %v1778_v16 = vmul.f32 %v6127_v21, %v1682_v55 }
 0x45d   : > { %1667 = vst.msk [vmem:[#allocation5 + $0x20] sm:$0xff] %vm1662_vm2, %v1650_v53  ;;  %v1777_v53 = vmul.f32 %v6129_v25, %v1681_v0  ;;  %v1683_v25 = vld [vmem:[#allocation6 + $0x20] sm:$0xff] }
 0x45e   : > { %v1625_v40 = vpop.xlane.xlu1 %1624  ;;  %v1779_v21 = vmul.f32 %v6133_v20, %v1683_v25  ;;  %v1688_v20 = vld [vmem:[#allocation6 + $0x48] sm:$0xff] }
 0x45f   : > { %v1651_v38 = vadd.f32 %v1625_v40, %v1603_v51  ;;  %v1775_v51 = vmul.f32 %v6123_v44, %v1679_v33  ;;  %v1684_v44 = vld [vmem:[#allocation6 + $0x28] sm:$0xff] }
 0x461   : > { %1668 = vst.msk [vmem:[#allocation5 + $0x28] sm:$0xff] %vm1662_vm2, %v1651_v38  ;;  %v1776_v38 = vmul.f32 %v6125_v10, %v1680_v35  ;;  %v1782_v10 = vmul.f32 %v6135_v23, %v1686_v6 }
 0x462   : > { %v1627_v7 = vpop.xlane.xlu0 %1626 }
 0x463   : > { %v1652_v24 = vadd.f32 %v1627_v7, %v1604_v36 }
 0x465   : > { %1669 = vst.msk [vmem:[#allocation5 + $0x30] sm:$0xff] %vm1662_vm2, %v1652_v24 }
 0x466   : > { %v1629_v29 = vpop.xlane.xlu1 %1628 }
 0x467   : > { %v1653_v8 = vadd.f32 %v1629_v29, %v1605_v54  ;;  %v1685_v29 = vld [vmem:[#allocation6 + $0x30] sm:$0xff] }
 0x468   : > { %v1781_v42 = vmul.f32 %v6137_v48, %v1685_v29  ;;  %v1690_v48 = vld [vmem:[#allocation6 + $0x58] sm:$0xff] }
 0x469   : > { %1670 = vst.msk [vmem:[#allocation5 + $0x38] sm:$0xff] %vm1662_vm2, %v1653_v8 }
 0x46a   : > { %v1633_v43 = vpop.xlane.xlu1 %1632  ;;  %v1631_v26 = vpop.xlane.xlu0 %1630 }
 0x46b   : > { %v1655_v50 = vadd.f32 %v1633_v43, %v1607_v41  ;;  %v1654_v12 = vadd.f32 %v1631_v26, %v1606_v19  ;;  %v1780_v43 = vmul.f32 %v6131_v4, %v1684_v44  ;;  %v1786_v4 = vmul.f32 %v6143_v3, %v1690_v48 }
 0x46d   : > { %1672 = vst.msk [vmem:[#allocation5 + $0x48] sm:$0xff] %vm1662_vm2, %v1655_v50  ;;  %1671 = vst.msk [vmem:[#allocation5 + $0x40] sm:$0xff] %vm1662_vm2, %v1654_v12  ;;  %v1689_v12 = vld [vmem:[#allocation6 + $0x50] sm:$0xff] }
 0x46e   : > { %v1637_v15 = vpop.xlane.xlu1 %1636  ;;  %v1635_v18 = vpop.xlane.xlu0 %1634 }
 0x46f   : > { %v1657_v9 = vadd.f32 %v1637_v15, %v1609_v47  ;;  %v1656_v59 = vadd.f32 %v1635_v18, %v1608_v14  ;;  %v1687_v14 = vld [vmem:[#allocation6 + $0x40] sm:$0xff]  ;;  %v1785_v15 = vmul.f32 %v6146_v31, %v1689_v12  ;;  %v1694_v31 = vld [vmem:[#allocation6 + $0x78] sm:$0xff] }
 0x470   : > { %v1783_v23 = vmul.f32 %v6141_v2, %v1687_v14 }
 0x471   : > { %1674 = vst.msk [vmem:[#allocation5 + $0x58] sm:$0xff] %vm1662_vm2, %v1657_v9  ;;  %1673 = vst.msk [vmem:[#allocation5 + $0x50] sm:$0xff] %vm1662_vm2, %v1656_v59  ;;  %v1784_v9 = vmul.f32 %v6139_v1, %v1688_v20 }
 0x472   : > { %v1641_v27 = vpop.xlane.xlu1 %1640  ;;  %v1639_v17 = vpop.xlane.xlu0 %1638 }
 0x473   : > { %v1659_v28 = vadd.f32 %v1641_v27, %v1611_v13  ;;  %v1658_v61 = vadd.f32 %v1639_v17, %v1610_v52  ;;  %v1693_v17 = vld [vmem:[#allocation6 + $0x70] sm:$0xff] }
 0x475   : > { %1676 = vst.msk [vmem:[#allocation5 + $0x68] sm:$0xff] %vm1662_vm2, %v1659_v28  ;;  %1675 = vst.msk [vmem:[#allocation5 + $0x60] sm:$0xff] %vm1662_vm2, %v1658_v61  ;;  %v1691_v28 = vld [vmem:[#allocation6 + $0x60] sm:$0xff]  ;;  %v1692_v61 = vld [vmem:[#allocation6 + $0x68] sm:$0xff] }
 0x476   : > { %v1645_v62 = vpop.xlane.xlu1 %1644  ;;  %v1643_v22 = vpop.xlane.xlu0 %1642 }
 0x477   : > { %v1661_v56 = vadd.f32 %v1645_v62, %v1613_v32  ;;  %v1660_v60 = vadd.f32 %v1643_v22, %v1612_v37  ;;  %v1787_v32 = vmul.f32 %v6150_v45, %v1691_v28  ;;  %v1956_v45 = vld [vmem:[#allocation5] sm:$0xff] (!%p4747_p7) }
 0x478   : > { %v1967_v25 = vld [vmem:[#allocation5 + $0x58] sm:$0xff] (!%p4747_p7)  ;;  %v1966_v44 = vld [vmem:[#allocation5 + $0x50] sm:$0xff] (!%p4747_p7) }
 0x479   : > { %1678 = vst.msk [vmem:[#allocation5 + $0x78] sm:$0xff] %vm1662_vm2, %v1661_v56  ;;  %1677 = vst.msk [vmem:[#allocation5 + $0x70] sm:$0xff] %vm1662_vm2, %v1660_v60  ;;  %v1788_v56 = vmul.f32 %v6148_v11, %v1692_v61  ;;  %v1957_v11 = vld [vmem:[#allocation5 + $0x8] sm:$0xff] (!%p4747_p7) }
 0x47a   : > { %v1768_v46 = vpop.permute.xlu1 %1767 }
 0x47b   : > { %v1789_v3 = vmul.f32 %v1768_v46, %v1693_v17 }
 0x47e   : > { %v1773_v2 = vpop.permute.xlu0 %1772 }
 0x47f   : > { %v1790_v1 = vmul.f32 %v1773_v2, %v1694_v31 }
 0x49e   : > { %v4992_v40 = vpop.f32.mrb[0].mxu1 }
 0x49f   : > { %v1906_v39 = vadd.f32 %v4992_v40, %v1777_v53  ;;  %v1841_v5 = vpop.f32.mrb[1].mxu1  ;;  %v1958_v53 = vld [vmem:[#allocation5 + $0x10] sm:$0xff] (!%p4747_p7)  ;;  %v5429_v40 = vmov (!%p4747_p7), 0  }
 0x4a0   : > { %v1904_v36 = vadd.f32 %v1841_v5, %v1775_v51  ;;  %v4993_v7 = vpop.f32.mrb[2].mxu1  ;;  %v1959_v51 = vld [vmem:[#allocation5 + $0x18] sm:$0xff] (!%p4747_p7)  ;;  %5282 = vset.pattern.permute.xlu1 (!%p4747_p7), %v5429_v40  ;;  %5281 = vset.pattern.permute.xlu0 (!%p4747_p7), %v5429_v40  ;;  %5283 = vrcp.f32 (!%p4747_p7), %v1958_v53 }
 0x4a1   : > { %1922 = vst [vmem:[#allocation6 + $0x10] sm:$0xff] %v1906_v39  ;;  %v1907_v63 = vadd.f32 %v4993_v7, %v1778_v16  ;;  %v1844_v24 = vpop.f32.mrb[3].mxu1  ;;  %5285 = vrcp.f32 (!%p4747_p7), %v1956_v45  ;;  %v1961_v16 = vld [vmem:[#allocation5 + $0x28] sm:$0xff] (!%p4747_p7)  ;;  %v1960_v39 = vld [vmem:[#allocation5 + $0x20] sm:$0xff] (!%p4747_p7)  ;;  %v1963_v5 = vld [vmem:[#allocation5 + $0x38] sm:$0xff] (!%p4747_p7) }
 0x4a2   : > { %1920 = vst [vmem:[#allocation6] sm:$0xff] %v1904_v36  ;;  %v1905_v54 = vadd.f32 %v1844_v24, %v1776_v38  ;;  %5287 = vrcp.f32 (!%p4747_p7), %v1959_v51  ;;  %v1962_v38 = vld [vmem:[#allocation5 + $0x30] sm:$0xff] (!%p4747_p7) }
 0x4a3   : > { %1923 = vst [vmem:[#allocation6 + $0x18] sm:$0xff] %v1907_v63  ;;  %5289 = vrcp.f32 (!%p4747_p7), %v1957_v11  ;;  %v1965_v63 = vld [vmem:[#allocation5 + $0x48] sm:$0xff] (!%p4747_p7) }
 0x4a4   : > { %1921 = vst [vmem:[#allocation6 + $0x8] sm:$0xff] %v1905_v54  ;;  %5291 = vrcp.f32 (!%p4747_p7), %v1961_v16  ;;  %v1964_v54 = vld [vmem:[#allocation5 + $0x40] sm:$0xff] (!%p4747_p7) }
 0x4a5   : > { %5293 = vrcp.f32 (!%p4747_p7), %v1960_v39 }
 0x4a6   : > { %5295 = vrcp.f32 (!%p4747_p7), %v1963_v5 }
 0x4a7   : > { %5297 = vrcp.f32 (!%p4747_p7), %v1962_v38 }
 0x4a8   : > { %5299 = vrcp.f32 (!%p4747_p7), %v1965_v63  ;;  %v1990_v20 = vld [vmem:[#allocation6 + $0x10] sm:$0xff] (!%p4747_p7) }
 0x4a9   : > { %5301 = vrcp.f32 (!%p4747_p7), %v1964_v54 }
 0x4aa   : > { %v5284_v36 = vpop.eup (!%p4747_p7), %5283  ;;  %5303 = vrcp.f32 (!%p4747_p7), %v1967_v25 }
 0x4ab   : > { %v5286_v7 = vpop.eup (!%p4747_p7), %5285  ;;  %2016 = vperm.xlu1 (!%p4747_p7), %5282, %v5284_v36   ;;  %5305 = vrcp.f32 (!%p4747_p7), %v1966_v44 }
 0x4ac   : > { %v5288_v24 = vpop.eup (!%p4747_p7), %5287  ;;  %2006 = vperm.xlu0 (!%p4747_p7), %5281, %v5286_v7  }
 0x4ad   : > { %v5290_v29 = vpop.eup (!%p4747_p7), %5289 }
 0x4ae   : > { %v4996_v8 = vpop.f32.mrb[4].mxu1  ;;  %v5292_v6 = vpop.eup (!%p4747_p7), %5291 }
 0x4af   : > { %v1910_v41 = vadd.f32 %v4996_v8, %v1781_v42  ;;  %v1857_v19 = vpop.f32.mrb[5].mxu1  ;;  %2021 = vperm.xlu1 (!%p4747_p7), %5282, %v5288_v24   ;;  %v5294_v42 = vpop.eup (!%p4747_p7), %5293 }
 0x4b0   : > { %v1908_v26 = vadd.f32 %v1857_v19, %v1779_v21  ;;  %v4997_v57 = vpop.f32.mrb[6].mxu1  ;;  %2011 = vperm.xlu0 (!%p4747_p7), %5281, %v5290_v29   ;;  %v1969_v21 = vld [vmem:[#allocation5 + $0x68] sm:$0xff] (!%p4747_p7)  ;;  %v5296_v8 = vpop.eup (!%p4747_p7), %5295  ;;  %v1971_v19 = vld [vmem:[#allocation5 + $0x78] sm:$0xff] (!%p4747_p7) }
 0x4b1   : > { %1926 = vst [vmem:[#allocation6 + $0x30] sm:$0xff] %v1910_v41  ;;  %v1911_v49 = vadd.f32 %v4997_v57, %v1782_v10  ;;  %v1860_v50 = vpop.f32.mrb[7].mxu1  ;;  %v1968_v10 = vld [vmem:[#allocation5 + $0x60] sm:$0xff] (!%p4747_p7)  ;;  %v5298_v41 = vpop.eup (!%p4747_p7), %5297  ;;  %5307 = vrcp.f32 (!%p4747_p7), %v1969_v21 }
 0x4b2   : > { %1924 = vst [vmem:[#allocation6 + $0x20] sm:$0xff] %v1908_v26  ;;  %v1909_v47 = vadd.f32 %v1860_v50, %v1780_v43  ;;  %5309 = vrcp.f32 (!%p4747_p7), %v1968_v10  ;;  %v5300_v43 = vpop.eup (!%p4747_p7), %5299  ;;  %v1970_v26 = vld [vmem:[#allocation5 + $0x70] sm:$0xff] (!%p4747_p7) }
 0x4b3   : > { %1927 = vst [vmem:[#allocation6 + $0x38] sm:$0xff] %v1911_v49  ;;  %2031 = vperm.xlu1 (!%p4747_p7), %5282, %v5292_v6   ;;  %v5302_v57 = vpop.eup (!%p4747_p7), %5301  ;;  %5311 = vrcp.f32 (!%p4747_p7), %v1971_v19 }
 0x4b4   : > { %1925 = vst [vmem:[#allocation6 + $0x28] sm:$0xff] %v1909_v47  ;;  %2026 = vperm.xlu0 (!%p4747_p7), %5281, %v5294_v42   ;;  %5313 = vrcp.f32 (!%p4747_p7), %v1970_v26  ;;  %v5304_v49 = vpop.eup (!%p4747_p7), %5303 }
 0x4b5   : > { %v5306_v50 = vpop.eup (!%p4747_p7), %5305 }
 0x4b6   : > { %v5000_v18 = vpop.f32.mrb[8].mxu1 }
 0x4b7   : > { %v1914_v30 = vadd.f32 %v5000_v18, %v1785_v15  ;;  %v1873_v34 = vpop.f32.mrb[9].mxu1  ;;  %2041 = vperm.xlu1 (!%p4747_p7), %5282, %v5296_v8   ;;  %v1988_v15 = vld [vmem:[#allocation6] sm:$0xff] (!%p4747_p7) }
 0x4b8   : > { %v1912_v59 = vadd.f32 %v1873_v34, %v1783_v23  ;;  %v5001_v13 = vpop.f32.mrb[10].mxu1  ;;  %2036 = vperm.xlu0 (!%p4747_p7), %5281, %v5298_v41   ;;  %v6204_v23 = vld [vmem:[%s668_s24] ss:$0 sm:$0xff] (!%p4747_p7)  ;;  %s6210_s24 = scalar_lea.vmem (!%p4747_p7), [#allocation2], %s4744_s18 }
 0x4b9   : > { %1930 = vst [vmem:[#allocation6 + $0x50] sm:$0xff] %v1914_v30  ;;  %v1915_v52 = vadd.f32 %v5001_v13, %v1786_v4  ;;  %v1876_v27 = vpop.f32.mrb[11].mxu1  ;;  %v1989_v13 = vld [vmem:[#allocation6 + $0x8] sm:$0xff] (!%p4747_p7) }
 0x4ba   : > { %1928 = vst [vmem:[#allocation6 + $0x40] sm:$0xff] %v1912_v59  ;;  %v1913_v58 = vadd.f32 %v1876_v27, %v1784_v9  ;;  %v1991_v9 = vld [vmem:[#allocation6 + $0x18] sm:$0xff] (!%p4747_p7) }
 0x4bb   : > { %1931 = vst [vmem:[#allocation6 + $0x58] sm:$0xff] %v1915_v52  ;;  %2051 = vperm.xlu1 (!%p4747_p7), %5282, %v5300_v43   ;;  %v5308_v12 = vpop.eup (!%p4747_p7), %5307  ;;  %v1993_v2 = vld [vmem:[#allocation6 + $0x28] sm:$0xff] (!%p4747_p7) }
 0x4bc   : > { %1929 = vst [vmem:[#allocation6 + $0x48] sm:$0xff] %v1913_v58  ;;  %2046 = vperm.xlu0 (!%p4747_p7), %5281, %v5302_v57   ;;  %v5310_v47 = vpop.eup (!%p4747_p7), %5309 }
 0x4bd   : > { %v5312_v14 = vpop.eup (!%p4747_p7), %5311 }
 0x4be   : > { %v5004_v37 = vpop.f32.mrb[12].mxu1  ;;  %1955 = sbr.rel (%p4747_p7) target bundleno = 1359 (0x54f), region = 137  ;;  %v5314_v48 = vpop.eup (!%p4747_p7), %5313 }
 0x4bf   : > { %v1918_v62 = vadd.f32 %v5004_v37, %v1789_v3  ;;  %v1889_v22 = vpop.f32.mrb[13].mxu1  ;;  %2061 = vperm.xlu1 (!%p4747_p7), %5282, %v5304_v49   ;;  %v1992_v3 = vld [vmem:[#allocation6 + $0x20] sm:$0xff] (!%p4747_p7) }
 0x4c0   : > { %v1916_v60 = vadd.f32 %v1889_v22, %v1787_v32  ;;  %v5005_v0 = vpop.f32.mrb[14].mxu1  ;;  %2056 = vperm.xlu0 (!%p4747_p7), %5281, %v5306_v50   ;;  %v1998_v42 = vld [vmem:[#allocation6 + $0x50] sm:$0xff] (!%p4747_p7) }
 0x4c1   : > { %1934 = vst [vmem:[#allocation6 + $0x70] sm:$0xff] %v1918_v62  ;;  %v1919_v33 = vadd.f32 %v5005_v0, %v1790_v1  ;;  %v1892_v55 = vpop.f32.mrb[15].mxu1  ;;  %v1995_v0 = vld [vmem:[#allocation6 + $0x38] sm:$0xff] (!%p4747_p7)  ;;  %v1996_v38 = vld [vmem:[#allocation6 + $0x40] sm:$0xff] (!%p4747_p7) }
 0x4c2   : > { %1932 = vst [vmem:[#allocation6 + $0x60] sm:$0xff] %v1916_v60  ;;  %v1917_v35 = vadd.f32 %v1892_v55, %v1788_v56  ;;  %v1994_v55 = vld [vmem:[#allocation6 + $0x30] sm:$0xff] (!%p4747_p7)  ;;  %v1999_v6 = vld [vmem:[#allocation6 + $0x58] sm:$0xff] (!%p4747_p7) }
 0x4c3   : > { %1935 = vst [vmem:[#allocation6 + $0x78] sm:$0xff] %v1919_v33  ;;  %2071 = vperm.xlu1 (!%p4747_p7), %5282, %v5308_v12   ;;  %v1997_v39 = vld [vmem:[#allocation6 + $0x48] sm:$0xff] (!%p4747_p7) }
 0x4c4   : > { %1933 = vst [vmem:[#allocation6 + $0x68] sm:$0xff] %v1917_v35  ;;  %2066 = vperm.xlu0 (!%p4747_p7), %5281, %v5310_v47  }
 0x4c7   : > { %2081 = vperm.xlu1 %5282, %v5312_v14  }
 0x4c8   : > { %2076 = vperm.xlu0 %5281, %v5314_v48  }
 0x4c9   : > { %v2000_v50 = vld [vmem:[#allocation6 + $0x60] sm:$0xff] }
 0x4cb   : > { %v2001_v57 = vld [vmem:[#allocation6 + $0x68] sm:$0xff] }
 0x52a   : > { %v2017_v18 = vpop.permute.xlu1 %2016 }
 0x52b   : > { %v2086_v4 = vmul.f32 %v2017_v18, %v1990_v20  ;;  %v2007_v30 = vpop.permute.xlu0 %2006 }
 0x52c   : > { %v2084_v34 = vmul.f32 %v2007_v30, %v1988_v15 }
 0x52d   : > { %v2109_v59 = vadd.f32 %v6204_v23, %v2086_v4  ;;  %v2003_v4 = vld [vmem:[#allocation6 + $0x78] sm:$0xff] }
 0x52e   : > { %v2107_v52 = vadd.f32 %v6204_v23, %v2084_v34  ;;  %v2022_v27 = vpop.permute.xlu1 %2021  ;;  %v2002_v34 = vld [vmem:[#allocation6 + $0x70] sm:$0xff] }
 0x52f   : > { %v2125_v17 = vmax.f32 %v2109_v59, 0.0  ;;  %v2087_v46 = vmul.f32 %v2022_v27, %v1991_v9  ;;  %v2012_v58 = vpop.permute.xlu0 %2011 }
 0x530   : > { %v2123_v28 = vmax.f32 %v2107_v52, 0.0  ;;  %v2085_v31 = vmul.f32 %v2012_v58, %v1989_v13 }
 0x531   : > { %2142 = vst [vmem:[%s6210_s24 + $0x10] sm:$0xff] %v2125_v17  ;;  %v2110_v61 = vadd.f32 %v6204_v23, %v2087_v46 }
 0x532   : > { %2140 = vst [vmem:[%s6210_s24] sm:$0xff] %v2123_v28  ;;  %v2108_v32 = vadd.f32 %v6204_v23, %v2085_v31  ;;  %v2032_v37 = vpop.permute.xlu1 %2031 }
 0x533   : > { %v2126_v1 = vmax.f32 %v2110_v61, 0.0  ;;  %v2089_v62 = vmul.f32 %v2032_v37, %v1993_v2  ;;  %v2027_v22 = vpop.permute.xlu0 %2026 }
 0x534   : > { %v2124_v56 = vmax.f32 %v2108_v32, 0.0  ;;  %v2088_v60 = vmul.f32 %v2027_v22, %v1992_v3 }
 0x535   : > { %2143 = vst [vmem:[%s6210_s24 + $0x18] sm:$0xff] %v2126_v1  ;;  %v2112_v33 = vadd.f32 %v6204_v23, %v2089_v62 }
 0x536   : > { %2141 = vst [vmem:[%s6210_s24 + $0x8] sm:$0xff] %v2124_v56  ;;  %v2111_v35 = vadd.f32 %v6204_v23, %v2088_v60  ;;  %v2042_v53 = vpop.permute.xlu1 %2041 }
 0x537   : > { %v2128_v45 = vmax.f32 %v2112_v33, 0.0  ;;  %v2091_v51 = vmul.f32 %v2042_v53, %v1995_v0  ;;  %v2037_v40 = vpop.permute.xlu0 %2036 }
 0x538   : > { %v2127_v11 = vmax.f32 %v2111_v35, 0.0  ;;  %v2090_v16 = vmul.f32 %v2037_v40, %v1994_v55 }
 0x539   : > { %2145 = vst [vmem:[%s6210_s24 + $0x28] sm:$0xff] %v2128_v45  ;;  %v2114_v5 = vadd.f32 %v6204_v23, %v2091_v51 }
 0x53a   : > { %2144 = vst [vmem:[%s6210_s24 + $0x20] sm:$0xff] %v2127_v11  ;;  %v2113_v36 = vadd.f32 %v6204_v23, %v2090_v16  ;;  %v2052_v7 = vpop.permute.xlu1 %2051 }
 0x53b   : > { %v2130_v63 = vmax.f32 %v2114_v5, 0.0  ;;  %v2093_v24 = vmul.f32 %v2052_v7, %v1997_v39  ;;  %v2047_v54 = vpop.permute.xlu0 %2046 }
 0x53c   : > { %v2129_v29 = vmax.f32 %v2113_v36, 0.0  ;;  %v2092_v25 = vmul.f32 %v2047_v54, %v1996_v38 }
 0x53d   : > { %2147 = vst [vmem:[%s6210_s24 + $0x38] sm:$0xff] %v2130_v63  ;;  %v2116_v44 = vadd.f32 %v6204_v23, %v2093_v24 }
 0x53e   : > { %2146 = vst [vmem:[%s6210_s24 + $0x30] sm:$0xff] %v2129_v29  ;;  %v2115_v21 = vadd.f32 %v6204_v23, %v2092_v25  ;;  %v2062_v8 = vpop.permute.xlu1 %2061 }
 0x53f   : > { %v2132_v10 = vmax.f32 %v2116_v44, 0.0  ;;  %v2095_v41 = vmul.f32 %v2062_v8, %v1999_v6  ;;  %v2057_v19 = vpop.permute.xlu0 %2056 }
 0x540   : > { %v2131_v43 = vmax.f32 %v2115_v21, 0.0  ;;  %v2094_v26 = vmul.f32 %v2057_v19, %v1998_v42 }
 0x541   : > { %2149 = vst [vmem:[%s6210_s24 + $0x48] sm:$0xff] %v2132_v10  ;;  %v2118_v49 = vadd.f32 %v6204_v23, %v2095_v41 }
 0x542   : > { %2148 = vst [vmem:[%s6210_s24 + $0x40] sm:$0xff] %v2131_v43  ;;  %v2117_v12 = vadd.f32 %v6204_v23, %v2094_v26  ;;  %v2072_v47 = vpop.permute.xlu1 %2071 }
 0x543   : > { %v2134_v14 = vmax.f32 %v2118_v49, 0.0  ;;  %v2097_v48 = vmul.f32 %v2072_v47, %v2001_v57  ;;  %v2067_v20 = vpop.permute.xlu0 %2066 }
 0x544   : > { %v2133_v15 = vmax.f32 %v2117_v12, 0.0  ;;  %v2096_v18 = vmul.f32 %v2067_v20, %v2000_v50 }
 0x545   : > { %2151 = vst [vmem:[%s6210_s24 + $0x58] sm:$0xff] %v2134_v14  ;;  %v2120_v30 = vadd.f32 %v6204_v23, %v2097_v48 }
 0x546   : > { %2150 = vst [vmem:[%s6210_s24 + $0x50] sm:$0xff] %v2133_v15  ;;  %v2119_v9 = vadd.f32 %v6204_v23, %v2096_v18  ;;  %v2082_v59 = vpop.permute.xlu1 %2081 }
 0x547   : > { %v2136_v13 = vmax.f32 %v2120_v30, 0.0  ;;  %v2099_v52 = vmul.f32 %v2082_v59, %v2003_v4  ;;  %v2077_v27 = vpop.permute.xlu0 %2076 }
 0x548   : > { %v2135_v17 = vmax.f32 %v2119_v9, 0.0  ;;  %v2098_v46 = vmul.f32 %v2077_v27, %v2002_v34 }
 0x549   : > { %2153 = vst [vmem:[%s6210_s24 + $0x68] sm:$0xff] %v2136_v13  ;;  %v2122_v58 = vadd.f32 %v6204_v23, %v2099_v52 }
 0x54a   : > { %2152 = vst [vmem:[%s6210_s24 + $0x60] sm:$0xff] %v2135_v17  ;;  %v2121_v28 = vadd.f32 %v6204_v23, %v2098_v46 }
 0x54b   : > { %v2138_v31 = vmax.f32 %v2122_v58, 0.0 }
 0x54c   : > { %v2137_v2 = vmax.f32 %v2121_v28, 0.0 }
 0x54d   : > { %2155 = vst [vmem:[%s6210_s24 + $0x78] sm:$0xff] %v2138_v31 }
 0x54e   : > { %2154 = vst [vmem:[%s6210_s24 + $0x70] sm:$0xff] %v2137_v2 }
 0x54f PF: > { %p2156_p8 = scmp.eq.s32.totalorder %s5405_s22, 2  ;;  %p2157_p9 = scmp.eq.s32.totalorder %s5401_s21, 1 }
 0x551   : > { %p2158_p10 = pnand %p2157_p9, %p2156_p8 }
 0x553   : > { %p2159_p11 = pneg %p2158_p10 }
 0x555   : > { %p2160_p12 = pnand %p2159_p11, %p1952_p6 }
 0x557   : > { %2163 = sbr.rel (%p2160_p12) target bundleno = 2497 (0x9c1), region = 141 }
 0x55e   : > { %v2198_v61 = vld [vmem:[%s8342_s6 + $0x10] sm:$0xff]  ;;  %v2196_v23 = vld [vmem:[%s8342_s6] sm:$0xff]  ;;  %v5430_v3 = vmov 0   ;;  %v2199_v32 = vld [vmem:[%s8342_s6 + $0x18] sm:$0xff]  ;;  %vm5432_vm3 = vmmov 0   ;;  %s8534_s15 = sld [smem:[#allocation121_spill]] }
 0x55f   : > { %5316 = vset.pattern.permute.xlu1 %v5430_v3  ;;  %5315 = vset.pattern.permute.xlu0 %v5430_v3  ;;  %v2197_v37 = vld [vmem:[%s8342_s6 + $0x8] sm:$0xff]  ;;  %v2200_v62 = vld [vmem:[%s8342_s6 + $0x20] sm:$0xff]  ;;  %v2203_v22 = vld [vmem:[%s8342_s6 + $0x38] sm:$0xff]  ;;  %vm4339_vm4 = vcmask 1041409   ;;  %vm4341_vm5 = vcmask 1042434   ;;  %vm4343_vm6 = vcmask 1043459  }
 0x560   : > { %2464 = vperm.xlu1 %5316, %v2198_v61   ;;  %2454 = vperm.xlu0 %5315, %v2196_v23   ;;  %v2201_v1 = vld [vmem:[%s8342_s6 + $0x28] sm:$0xff]  ;;  %v2202_v56 = vld [vmem:[%s8342_s6 + $0x30] sm:$0xff]  ;;  %v2204_v0 = vld [vmem:[%s8342_s6 + $0x40] sm:$0xff]  ;;  %vm4345_vm7 = vcmask 1044484   ;;  %vm4347_vm8 = vcmask 1045509   ;;  %vm4349_vm9 = vcmask 1046534  }
 0x561   : > { %v2205_v60 = vld [vmem:[%s8342_s6 + $0x48] sm:$0xff]  ;;  %v2207_v33 = vld [vmem:[%s8342_s6 + $0x58] sm:$0xff]  ;;  %v2206_v55 = vld [vmem:[%s8342_s6 + $0x50] sm:$0xff]  ;;  %vm4351_vm10 = vcmask 1047559   ;;  %s8583_s29 = sld [smem:[#allocation122_spill]]  ;;  %s8585_s1 = sld [smem:[#allocation120_spill]] }
 0x562   : > { %v2209_v35 = vld [vmem:[%s8342_s6 + $0x68] sm:$0xff]  ;;  %v2208_v53 = vld [vmem:[%s8342_s6 + $0x60] sm:$0xff]  ;;  %v2211_v45 = vld [vmem:[%s8342_s6 + $0x78] sm:$0xff]  ;;  %s8586_s17 = sld [smem:[#allocation119_spill]]  ;;  %s8587_s30 = sld [smem:[#allocation123_spill]] }
 0x563   : > { %v2210_v51 = vld [vmem:[%s8342_s6 + $0x70] sm:$0xff]  ;;  %v2213_v40 = vld [vmem:[%s8342_s6 + $0x88] sm:$0xff]  ;;  %v2212_v11 = vld [vmem:[%s8342_s6 + $0x80] sm:$0xff] }
 0x564   : > { %2469 = vperm.xlu1 %5316, %v2199_v32   ;;  %2459 = vperm.xlu0 %5315, %v2197_v37   ;;  %v2215_v16 = vld [vmem:[%s8342_s6 + $0x98] sm:$0xff]  ;;  %v2214_v39 = vld [vmem:[%s8342_s6 + $0x90] sm:$0xff]  ;;  %v2217_v5 = vld [vmem:[%s8342_s6 + $0xa8] sm:$0xff] }
 0x565   : > { %v2216_v38 = vld [vmem:[%s8342_s6 + $0xa0] sm:$0xff]  ;;  %v2219_v36 = vld [vmem:[%s8342_s6 + $0xb8] sm:$0xff]  ;;  %v2218_v7 = vld [vmem:[%s8342_s6 + $0xb0] sm:$0xff] }
 0x566   : > { %v2221_v63 = vld [vmem:[%s8342_s6 + $0xc8] sm:$0xff]  ;;  %v2220_v24 = vld [vmem:[%s8342_s6 + $0xc0] sm:$0xff]  ;;  %v2223_v54 = vld [vmem:[%s8342_s6 + $0xd8] sm:$0xff] }
 0x567   : > { %v2222_v29 = vld [vmem:[%s8342_s6 + $0xd0] sm:$0xff]  ;;  %v2225_v25 = vld [vmem:[%s8342_s6 + $0xe8] sm:$0xff]  ;;  %v2224_v6 = vld [vmem:[%s8342_s6 + $0xe0] sm:$0xff] }
 0x568   : > { %2479 = vperm.xlu1 %5316, %v2201_v1   ;;  %2474 = vperm.xlu0 %5315, %v2200_v62   ;;  %v2227_v44 = vld [vmem:[%s8342_s6 + $0xf8] sm:$0xff]  ;;  %v2226_v42 = vld [vmem:[%s8342_s6 + $0xf0] sm:$0xff]  ;;  %v2229_v21 = vld [vmem:[%s8342_s6 + $0x108] sm:$0xff] }
 0x569   : > { %v2228_v8 = vld [vmem:[%s8342_s6 + $0x100] sm:$0xff]  ;;  %v2231_v10 = vld [vmem:[%s8342_s6 + $0x118] sm:$0xff]  ;;  %v2230_v41 = vld [vmem:[%s8342_s6 + $0x110] sm:$0xff] }
 0x56a   : > { %v2233_v19 = vld [vmem:[%s8342_s6 + $0x128] sm:$0xff]  ;;  %v2232_v43 = vld [vmem:[%s8342_s6 + $0x120] sm:$0xff]  ;;  %v2235_v26 = vld [vmem:[%s8342_s6 + $0x138] sm:$0xff] }
 0x56b   : > { %v2234_v57 = vld [vmem:[%s8342_s6 + $0x130] sm:$0xff]  ;;  %v2237_v49 = vld [vmem:[%s8342_s6 + $0x148] sm:$0xff]  ;;  %v2236_v50 = vld [vmem:[%s8342_s6 + $0x140] sm:$0xff] }
 0x56c   : > { %2489 = vperm.xlu1 %5316, %v2203_v22   ;;  %2484 = vperm.xlu0 %5315, %v2202_v56   ;;  %v2239_v12 = vld [vmem:[%s8342_s6 + $0x158] sm:$0xff]  ;;  %v2238_v47 = vld [vmem:[%s8342_s6 + $0x150] sm:$0xff]  ;;  %v2241_v14 = vld [vmem:[%s8342_s6 + $0x168] sm:$0xff] }
 0x56d   : > { %v2240_v48 = vld [vmem:[%s8342_s6 + $0x160] sm:$0xff]  ;;  %v2243_v20 = vld [vmem:[%s8342_s6 + $0x178] sm:$0xff]  ;;  %v2242_v15 = vld [vmem:[%s8342_s6 + $0x170] sm:$0xff] }
 0x56e   : > { %v2245_v18 = vld [vmem:[%s8342_s6 + $0x188] sm:$0xff]  ;;  %v2244_v4 = vld [vmem:[%s8342_s6 + $0x180] sm:$0xff]  ;;  %v2247_v30 = vld [vmem:[%s8342_s6 + $0x198] sm:$0xff] }
 0x56f   : > { %v2246_v34 = vld [vmem:[%s8342_s6 + $0x190] sm:$0xff]  ;;  %v2249_v9 = vld [vmem:[%s8342_s6 + $0x1a8] sm:$0xff]  ;;  %v2248_v59 = vld [vmem:[%s8342_s6 + $0x1a0] sm:$0xff] }
 0x570   : > { %2499 = vperm.xlu1 %5316, %v2205_v60   ;;  %2494 = vperm.xlu0 %5315, %v2204_v0   ;;  %v2251_v13 = vld [vmem:[%s8342_s6 + $0x1b8] sm:$0xff]  ;;  %v2250_v52 = vld [vmem:[%s8342_s6 + $0x1b0] sm:$0xff]  ;;  %v2253_v27 = vld [vmem:[%s8342_s6 + $0x1c8] sm:$0xff] }
 0x571   : > { %v2252_v17 = vld [vmem:[%s8342_s6 + $0x1c0] sm:$0xff]  ;;  %v2255_v46 = vld [vmem:[%s8342_s6 + $0x1d8] sm:$0xff]  ;;  %v2254_v58 = vld [vmem:[%s8342_s6 + $0x1d0] sm:$0xff] }
 0x572   : > { %v2257_v28 = vld [vmem:[%s8342_s6 + $0x1e8] sm:$0xff]  ;;  %v2256_v31 = vld [vmem:[%s8342_s6 + $0x1e0] sm:$0xff]  ;;  %v2259_v2 = vld [vmem:[%s8342_s6 + $0x1f8] sm:$0xff] }
 0x573   : > { %v2258_v61 = vld [vmem:[%s8342_s6 + $0x1f0] sm:$0xff]  ;;  %v2261_v23 = vld [vmem:[%s8342_s6 + $0x208] sm:$0xff]  ;;  %v2260_v3 = vld [vmem:[%s8342_s6 + $0x200] sm:$0xff] }
 0x574   : > { %2509 = vperm.xlu1 %5316, %v2207_v33   ;;  %2504 = vperm.xlu0 %5315, %v2206_v55   ;;  %v2263_v1 = vld [vmem:[%s8342_s6 + $0x218] sm:$0xff]  ;;  %v2262_v62 = vld [vmem:[%s8342_s6 + $0x210] sm:$0xff]  ;;  %v2265_v60 = vld [vmem:[%s8342_s6 + $0x228] sm:$0xff] }
 0x575   : > { %v2264_v0 = vld [vmem:[%s8342_s6 + $0x220] sm:$0xff] }
 0x578   : > { %2519 = vperm.xlu1 %5316, %v2209_v35   ;;  %2514 = vperm.xlu0 %5315, %v2208_v53   ;;  %v2267_v35 = vld [vmem:[%s8342_s6 + $0x238] sm:$0xff]  ;;  %v2266_v53 = vld [vmem:[%s8342_s6 + $0x230] sm:$0xff] }
 0x57c   : > { %2529 = vperm.xlu1 %5316, %v2211_v45   ;;  %2524 = vperm.xlu0 %5315, %v2210_v51  }
 0x580   : > { %2539 = vperm.xlu1 %5316, %v2213_v40   ;;  %2534 = vperm.xlu0 %5315, %v2212_v11   ;;  %v2269_v40 = vld [vmem:[%s8342_s6 + $0x248] sm:$0xff]  ;;  %v2268_v11 = vld [vmem:[%s8342_s6 + $0x240] sm:$0xff] }
 0x584   : > { %2549 = vperm.xlu1 %5316, %v2215_v16   ;;  %2544 = vperm.xlu0 %5315, %v2214_v39  }
 0x588   : > { %2559 = vperm.xlu1 %5316, %v2217_v5   ;;  %2554 = vperm.xlu0 %5315, %v2216_v38   ;;  %v2271_v5 = vld [vmem:[%s8342_s6 + $0x258] sm:$0xff]  ;;  %v2270_v38 = vld [vmem:[%s8342_s6 + $0x250] sm:$0xff] }
 0x58c   : > { %2569 = vperm.xlu1 %5316, %v2219_v36   ;;  %2564 = vperm.xlu0 %5315, %v2218_v7  }
 0x590   : > { %2579 = vperm.xlu1 %5316, %v2221_v63   ;;  %2574 = vperm.xlu0 %5315, %v2220_v24   ;;  %v2273_v63 = vld [vmem:[%s8342_s6 + $0x268] sm:$0xff]  ;;  %v2272_v24 = vld [vmem:[%s8342_s6 + $0x260] sm:$0xff] }
 0x594   : > { %2589 = vperm.xlu1 %5316, %v2223_v54   ;;  %2584 = vperm.xlu0 %5315, %v2222_v29  }
 0x598   : > { %2599 = vperm.xlu1 %5316, %v2225_v25   ;;  %2594 = vperm.xlu0 %5315, %v2224_v6   ;;  %v2275_v25 = vld [vmem:[%s8342_s6 + $0x278] sm:$0xff]  ;;  %v2274_v6 = vld [vmem:[%s8342_s6 + $0x270] sm:$0xff] }
 0x59c   : > { %2609 = vperm.xlu1 %5316, %v2227_v44   ;;  %2604 = vperm.xlu0 %5315, %v2226_v42  }
 0x5a0   : > { %2619 = vperm.xlu1 %5316, %v2229_v21   ;;  %2614 = vperm.xlu0 %5315, %v2228_v8   ;;  %v2277_v21 = vld [vmem:[%s8342_s6 + $0x288] sm:$0xff]  ;;  %v2276_v8 = vld [vmem:[%s8342_s6 + $0x280] sm:$0xff] }
 0x5a4   : > { %2629 = vperm.xlu1 %5316, %v2231_v10   ;;  %2624 = vperm.xlu0 %5315, %v2230_v41  }
 0x5a8   : > { %2639 = vperm.xlu1 %5316, %v2233_v19   ;;  %2634 = vperm.xlu0 %5315, %v2232_v43   ;;  %v2279_v19 = vld [vmem:[%s8342_s6 + $0x298] sm:$0xff]  ;;  %v2278_v43 = vld [vmem:[%s8342_s6 + $0x290] sm:$0xff] }
 0x5ac   : > { %2649 = vperm.xlu1 %5316, %v2235_v26   ;;  %2644 = vperm.xlu0 %5315, %v2234_v57  }
 0x5b0   : > { %2659 = vperm.xlu1 %5316, %v2237_v49   ;;  %2654 = vperm.xlu0 %5315, %v2236_v50   ;;  %v2281_v49 = vld [vmem:[%s8342_s6 + $0x2a8] sm:$0xff]  ;;  %v2280_v50 = vld [vmem:[%s8342_s6 + $0x2a0] sm:$0xff] }
 0x5b4   : > { %2669 = vperm.xlu1 %5316, %v2239_v12   ;;  %2664 = vperm.xlu0 %5315, %v2238_v47  }
 0x5b8   : > { %2679 = vperm.xlu1 %5316, %v2241_v14   ;;  %2674 = vperm.xlu0 %5315, %v2240_v48   ;;  %v2283_v14 = vld [vmem:[%s8342_s6 + $0x2b8] sm:$0xff]  ;;  %v2282_v48 = vld [vmem:[%s8342_s6 + $0x2b0] sm:$0xff] }
 0x5bc   : > { %2689 = vperm.xlu1 %5316, %v2243_v20   ;;  %2684 = vperm.xlu0 %5315, %v2242_v15  }
 0x5c0   : > { %2699 = vperm.xlu1 %5316, %v2245_v18   ;;  %2694 = vperm.xlu0 %5315, %v2244_v4   ;;  %v2285_v18 = vld [vmem:[%s8342_s6 + $0x2c8] sm:$0xff]  ;;  %v2284_v4 = vld [vmem:[%s8342_s6 + $0x2c0] sm:$0xff] }
 0x5c4   : > { %2709 = vperm.xlu1 %5316, %v2247_v30   ;;  %2704 = vperm.xlu0 %5315, %v2246_v34  }
 0x5c8   : > { %2719 = vperm.xlu1 %5316, %v2249_v9   ;;  %2714 = vperm.xlu0 %5315, %v2248_v59   ;;  %v2287_v9 = vld [vmem:[%s8342_s6 + $0x2d8] sm:$0xff]  ;;  %v2286_v59 = vld [vmem:[%s8342_s6 + $0x2d0] sm:$0xff] }
 0x5cc   : > { %2729 = vperm.xlu1 %5316, %v2251_v13   ;;  %2724 = vperm.xlu0 %5315, %v2250_v52  }
 0x5d0   : > { %2739 = vperm.xlu1 %5316, %v2253_v27   ;;  %2734 = vperm.xlu0 %5315, %v2252_v17   ;;  %v2289_v27 = vld [vmem:[%s8342_s6 + $0x2e8] sm:$0xff]  ;;  %v2288_v17 = vld [vmem:[%s8342_s6 + $0x2e0] sm:$0xff] }
 0x5d4   : > { %2749 = vperm.xlu1 %5316, %v2255_v46   ;;  %2744 = vperm.xlu0 %5315, %v2254_v58  }
 0x5d8   : > { %2759 = vperm.xlu1 %5316, %v2257_v28   ;;  %2754 = vperm.xlu0 %5315, %v2256_v31   ;;  %v2291_v28 = vld [vmem:[%s8342_s6 + $0x2f8] sm:$0xff]  ;;  %v2290_v31 = vld [vmem:[%s8342_s6 + $0x2f0] sm:$0xff] }
 0x5dc   : > { %2769 = vperm.xlu1 %5316, %v2259_v2   ;;  %2764 = vperm.xlu0 %5315, %v2258_v61  }
 0x5df   : > { %v6444_v32 = vpop.permute.xlu1 %2464  ;;  %v6446_v37 = vpop.permute.xlu0 %2454 }
 0x5e0   : > { %8378 = vst [vmem:[#allocation17_spill] sm:$0xff] %v6444_v32  ;;  %8379 = vst [vmem:[#allocation18_spill] sm:$0xff] %v6446_v37  ;;  %2779 = vperm.xlu1 %5316, %v2261_v23   ;;  %2774 = vperm.xlu0 %5315, %v2260_v3   ;;  %v2293_v23 = vld [vmem:[%s8342_s6 + $0x308] sm:$0xff]  ;;  %v2292_v3 = vld [vmem:[%s8342_s6 + $0x300] sm:$0xff] }
 0x5e3   : > { %v6454_v22 = vpop.permute.xlu1 %2469  ;;  %v6456_v56 = vpop.permute.xlu0 %2459 }
 0x5e4   : > { %8380 = vst [vmem:[#allocation19_spill] sm:$0xff] %v6454_v22  ;;  %8381 = vst [vmem:[#allocation20_spill] sm:$0xff] %v6456_v56  ;;  %2789 = vperm.xlu1 %5316, %v2263_v1   ;;  %2784 = vperm.xlu0 %5315, %v2262_v62  }
 0x5e7   : > { %v6464_v33 = vpop.permute.xlu1 %2479  ;;  %v6466_v55 = vpop.permute.xlu0 %2474 }
 0x5e8   : > { %8382 = vst [vmem:[#allocation21_spill] sm:$0xff] %v6464_v33  ;;  %8383 = vst [vmem:[#allocation22_spill] sm:$0xff] %v6466_v55  ;;  %2799 = vperm.xlu1 %5316, %v2265_v60   ;;  %2794 = vperm.xlu0 %5315, %v2264_v0   ;;  %v2295_v60 = vld [vmem:[%s8342_s6 + $0x318] sm:$0xff]  ;;  %v2294_v0 = vld [vmem:[%s8342_s6 + $0x310] sm:$0xff] }
 0x5e9   : > { %v2409_v55 = vld [vmem:[%s8342_s6 + $0x6a8] sm:$0xff] }
 0x5eb   : > { %v6474_v45 = vpop.permute.xlu1 %2489  ;;  %v6476_v51 = vpop.permute.xlu0 %2484 }
 0x5ec   : > { %8384 = vst [vmem:[#allocation23_spill] sm:$0xff] %v6474_v45  ;;  %8385 = vst [vmem:[#allocation24_spill] sm:$0xff] %v6476_v51  ;;  %2809 = vperm.xlu1 %5316, %v2267_v35   ;;  %2804 = vperm.xlu0 %5315, %v2266_v53  }
 0x5ef   : > { %v6484_v16 = vpop.permute.xlu1 %2499  ;;  %v6486_v39 = vpop.permute.xlu0 %2494 }
 0x5f0   : > { %8386 = vst [vmem:[#allocation25_spill] sm:$0xff] %v6484_v16  ;;  %8387 = vst [vmem:[#allocation26_spill] sm:$0xff] %v6486_v39  ;;  %2819 = vperm.xlu1 %5316, %v2269_v40   ;;  %2814 = vperm.xlu0 %5315, %v2268_v11   ;;  %v2297_v40 = vld [vmem:[%s8342_s6 + $0x328] sm:$0xff]  ;;  %v2296_v11 = vld [vmem:[%s8342_s6 + $0x320] sm:$0xff] }
 0x5f1   : > { %v2344_v16 = vld [vmem:[%s8342_s6 + $0x4a0] sm:$0xff] }
 0x5f3   : > { %v6494_v36 = vpop.permute.xlu1 %2509  ;;  %v6496_v7 = vpop.permute.xlu0 %2504 }
 0x5f4   : > { %8388 = vst [vmem:[#allocation27_spill] sm:$0xff] %v6494_v36  ;;  %8389 = vst [vmem:[#allocation28_spill] sm:$0xff] %v6496_v7  ;;  %2829 = vperm.xlu1 %5316, %v2271_v5   ;;  %2824 = vperm.xlu0 %5315, %v2270_v38  }
 0x5f7   : > { %v6504_v54 = vpop.permute.xlu1 %2519  ;;  %v6506_v29 = vpop.permute.xlu0 %2514 }
 0x5f8   : > { %8390 = vst [vmem:[#allocation29_spill] sm:$0xff] %v6504_v54  ;;  %8391 = vst [vmem:[#allocation30_spill] sm:$0xff] %v6506_v29  ;;  %2839 = vperm.xlu1 %5316, %v2273_v63   ;;  %2834 = vperm.xlu0 %5315, %v2272_v24   ;;  %v2299_v63 = vld [vmem:[%s8342_s6 + $0x338] sm:$0xff]  ;;  %v2298_v24 = vld [vmem:[%s8342_s6 + $0x330] sm:$0xff] }
 0x5fb   : > { %v6514_v44 = vpop.permute.xlu1 %2529  ;;  %v6516_v42 = vpop.permute.xlu0 %2524 }
 0x5fc   : > { %8392 = vst [vmem:[#allocation31_spill] sm:$0xff] %v6514_v44  ;;  %8393 = vst [vmem:[#allocation32_spill] sm:$0xff] %v6516_v42  ;;  %2849 = vperm.xlu1 %5316, %v2275_v25   ;;  %2844 = vperm.xlu0 %5315, %v2274_v6  }
 0x5ff   : > { %v6524_v10 = vpop.permute.xlu1 %2539  ;;  %v6526_v41 = vpop.permute.xlu0 %2534 }
 0x600   : > { %8394 = vst [vmem:[#allocation33_spill] sm:$0xff] %v6524_v10  ;;  %8395 = vst [vmem:[#allocation34_spill] sm:$0xff] %v6526_v41  ;;  %2859 = vperm.xlu1 %5316, %v2277_v21   ;;  %2854 = vperm.xlu0 %5315, %v2276_v8   ;;  %v2325_v21 = vld [vmem:[%s8342_s6 + $0x408] sm:$0xff]  ;;  %v2324_v8 = vld [vmem:[%s8342_s6 + $0x400] sm:$0xff] }
 0x603   : > { %v6534_v26 = vpop.permute.xlu1 %2549  ;;  %v6536_v57 = vpop.permute.xlu0 %2544 }
 0x604   : > { %8396 = vst [vmem:[#allocation35_spill] sm:$0xff] %v6534_v26  ;;  %8397 = vst [vmem:[#allocation36_spill] sm:$0xff] %v6536_v57  ;;  %2869 = vperm.xlu1 %5316, %v2279_v19   ;;  %2864 = vperm.xlu0 %5315, %v2278_v43  }
 0x607   : > { %v6544_v12 = vpop.permute.xlu1 %2559  ;;  %v6546_v47 = vpop.permute.xlu0 %2554 }
 0x608   : > { %8398 = vst [vmem:[#allocation37_spill] sm:$0xff] %v6544_v12  ;;  %8399 = vst [vmem:[#allocation38_spill] sm:$0xff] %v6546_v47  ;;  %2879 = vperm.xlu1 %5316, %v2281_v49   ;;  %2874 = vperm.xlu0 %5315, %v2280_v50   ;;  %v2357_v49 = vld [vmem:[%s8342_s6 + $0x508] sm:$0xff]  ;;  %v2356_v50 = vld [vmem:[%s8342_s6 + $0x500] sm:$0xff] }
 0x609   : > { %v2303_v47 = vld [vmem:[%s8342_s6 + $0x358] sm:$0xff] }
 0x60b   : > { %v6554_v20 = vpop.permute.xlu1 %2569  ;;  %v6556_v15 = vpop.permute.xlu0 %2564 }
 0x60c   : > { %8400 = vst [vmem:[#allocation39_spill] sm:$0xff] %v6554_v20  ;;  %8401 = vst [vmem:[#allocation40_spill] sm:$0xff] %v6556_v15  ;;  %2889 = vperm.xlu1 %5316, %v2283_v14   ;;  %2884 = vperm.xlu0 %5315, %v2282_v48   ;;  %v2365_v15 = vld [vmem:[%s8342_s6 + $0x548] sm:$0xff] }
 0x60f   : > { %v6564_v30 = vpop.permute.xlu1 %2579  ;;  %v6566_v34 = vpop.permute.xlu0 %2574 }
 0x610   : > { %8402 = vst [vmem:[#allocation41_spill] sm:$0xff] %v6564_v30  ;;  %8403 = vst [vmem:[#allocation42_spill] sm:$0xff] %v6566_v34  ;;  %2899 = vperm.xlu1 %5316, %v2285_v18   ;;  %2894 = vperm.xlu0 %5315, %v2284_v4   ;;  %v2388_v18 = vld [vmem:[%s8342_s6 + $0x600] sm:$0xff]  ;;  %v2326_v4 = vld [vmem:[%s8342_s6 + $0x410] sm:$0xff] }
 0x611   : > { %v2427_v34 = vld [vmem:[%s8342_s6 + $0x738] sm:$0xff] }
 0x613   : > { %v6574_v13 = vpop.permute.xlu1 %2589  ;;  %v6576_v52 = vpop.permute.xlu0 %2584 }
 0x614   : > { %8404 = vst [vmem:[#allocation43_spill] sm:$0xff] %v6574_v13  ;;  %8405 = vst [vmem:[#allocation44_spill] sm:$0xff] %v6576_v52  ;;  %2909 = vperm.xlu1 %5316, %v2287_v9   ;;  %2904 = vperm.xlu0 %5315, %v2286_v59   ;;  %v2332_v52 = vld [vmem:[%s8342_s6 + $0x440] sm:$0xff] }
 0x617   : > { %v6584_v46 = vpop.permute.xlu1 %2599  ;;  %v6586_v58 = vpop.permute.xlu0 %2594 }
 0x618   : > { %8406 = vst [vmem:[#allocation45_spill] sm:$0xff] %v6584_v46  ;;  %8407 = vst [vmem:[#allocation46_spill] sm:$0xff] %v6586_v58  ;;  %2919 = vperm.xlu1 %5316, %v2289_v27   ;;  %2914 = vperm.xlu0 %5315, %v2288_v17   ;;  %v2358_v27 = vld [vmem:[%s8342_s6 + $0x510] sm:$0xff]  ;;  %v2389_v17 = vld [vmem:[%s8342_s6 + $0x608] sm:$0xff] }
 0x619   : > { %v2393_v46 = vld [vmem:[%s8342_s6 + $0x628] sm:$0xff] }
 0x61b   : > { %v6594_v2 = vpop.permute.xlu1 %2609  ;;  %v6596_v61 = vpop.permute.xlu0 %2604 }
 0x61c   : > { %8408 = vst [vmem:[#allocation47_spill] sm:$0xff] %v6594_v2  ;;  %8409 = vst [vmem:[#allocation48_spill] sm:$0xff] %v6596_v61  ;;  %2929 = vperm.xlu1 %5316, %v2291_v28   ;;  %2924 = vperm.xlu0 %5315, %v2290_v31   ;;  %v2424_v2 = vld [vmem:[%s8342_s6 + $0x720] sm:$0xff] }
 0x61f   : > { %v6604_v1 = vpop.permute.xlu1 %2619  ;;  %v6606_v62 = vpop.permute.xlu0 %2614 }
 0x620   : > { %8410 = vst [vmem:[#allocation49_spill] sm:$0xff] %v6604_v1  ;;  %8411 = vst [vmem:[#allocation50_spill] sm:$0xff] %v6606_v62  ;;  %2939 = vperm.xlu1 %5316, %v2293_v23   ;;  %2934 = vperm.xlu0 %5315, %v2292_v3   ;;  %v2421_v23 = vld [vmem:[%s8342_s6 + $0x708] sm:$0xff]  ;;  %v2420_v3 = vld [vmem:[%s8342_s6 + $0x700] sm:$0xff] }
 0x621   : > { %v7192_v62 = vld [vmem:[#allocation2 + $0x20] sm:$0xff] }
 0x623   : > { %v6614_v35 = vpop.permute.xlu1 %2629  ;;  %v6616_v53 = vpop.permute.xlu0 %2624 }
 0x624   : > { %8412 = vst [vmem:[#allocation51_spill] sm:$0xff] %v6614_v35  ;;  %8413 = vst [vmem:[#allocation52_spill] sm:$0xff] %v6616_v53  ;;  %2949 = vperm.xlu1 %5316, %v2295_v60   ;;  %2944 = vperm.xlu0 %5315, %v2294_v0  }
 0x627   : > { %v6624_v5 = vpop.permute.xlu1 %2639  ;;  %v6626_v38 = vpop.permute.xlu0 %2634 }
 0x628   : > { %8414 = vst [vmem:[#allocation53_spill] sm:$0xff] %v6624_v5  ;;  %8415 = vst [vmem:[#allocation54_spill] sm:$0xff] %v6626_v38  ;;  %2959 = vperm.xlu1 %5316, %v2297_v40   ;;  %2954 = vperm.xlu0 %5315, %v2296_v11   ;;  %v2390_v40 = vld [vmem:[%s8342_s6 + $0x610] sm:$0xff]  ;;  %v2327_v11 = vld [vmem:[%s8342_s6 + $0x418] sm:$0xff] }
 0x629   : > { %v2346_v5 = vld [vmem:[%s8342_s6 + $0x4b0] sm:$0xff] }
 0x62b   : > { %v6634_v25 = vpop.permute.xlu1 %2649  ;;  %v6636_v6 = vpop.permute.xlu0 %2644 }
 0x62c   : > { %8416 = vst [vmem:[#allocation55_spill] sm:$0xff] %v6634_v25  ;;  %8417 = vst [vmem:[#allocation56_spill] sm:$0xff] %v6636_v6  ;;  %2969 = vperm.xlu1 %5316, %v2299_v63   ;;  %2964 = vperm.xlu0 %5315, %v2298_v24   ;;  %v2439_v25 = vld [vmem:[%s8342_s6 + $0x798] sm:$0xff]  ;;  %v2377_v6 = vld [vmem:[%s8342_s6 + $0x5a8] sm:$0xff] }
 0x62f   : > { %v6644_v19 = vpop.permute.xlu1 %2659  ;;  %v6646_v43 = vpop.permute.xlu0 %2654 }
 0x630   : > { %8418 = vst [vmem:[#allocation57_spill] sm:$0xff] %v6644_v19  ;;  %8419 = vst [vmem:[#allocation58_spill] sm:$0xff] %v6646_v43  ;;  %3099 = vperm.xlu1 %5316, %v2325_v21   ;;  %3094 = vperm.xlu0 %5315, %v2324_v8   ;;  %v2422_v21 = vld [vmem:[%s8342_s6 + $0x710] sm:$0xff]  ;;  %v2359_v8 = vld [vmem:[%s8342_s6 + $0x518] sm:$0xff] }
 0x631   : > { %v2375_v19 = vld [vmem:[%s8342_s6 + $0x598] sm:$0xff]  ;;  %v2313_v43 = vld [vmem:[%s8342_s6 + $0x3a8] sm:$0xff] }
 0x633   : > { %v6654_v14 = vpop.permute.xlu1 %2669  ;;  %v6656_v48 = vpop.permute.xlu0 %2664 }
 0x634   : > { %8420 = vst [vmem:[#allocation59_spill] sm:$0xff] %v6654_v14  ;;  %8421 = vst [vmem:[#allocation60_spill] sm:$0xff] %v6656_v48  ;;  %3259 = vperm.xlu1 %5316, %v2357_v49   ;;  %3254 = vperm.xlu0 %5315, %v2356_v50   ;;  %v2311_v14 = vld [vmem:[%s8342_s6 + $0x398] sm:$0xff]  ;;  %v2406_v48 = vld [vmem:[%s8342_s6 + $0x690] sm:$0xff] }
 0x637   : > { %v6664_v9 = vpop.permute.xlu1 %2679  ;;  %v6666_v59 = vpop.permute.xlu0 %2674 }
 0x638   : > { %8422 = vst [vmem:[#allocation61_spill] sm:$0xff] %v6664_v9  ;;  %8423 = vst [vmem:[#allocation62_spill] sm:$0xff] %v6666_v59  ;;  %3414 = vperm.xlu1 %5316, %v2388_v18   ;;  %3104 = vperm.xlu0 %5315, %v2326_v4   ;;  %v2391_v18 = vld [vmem:[%s8342_s6 + $0x618] sm:$0xff]  ;;  %v2328_v4 = vld [vmem:[%s8342_s6 + $0x420] sm:$0xff] }
 0x639   : > { %v2404_v9 = vld [vmem:[%s8342_s6 + $0x680] sm:$0xff]  ;;  %v2342_v59 = vld [vmem:[%s8342_s6 + $0x490] sm:$0xff] }
 0x63b   : > { %v6674_v28 = vpop.permute.xlu1 %2689  ;;  %v6676_v31 = vpop.permute.xlu0 %2684 }
 0x63c   : > { %8424 = vst [vmem:[#allocation63_spill] sm:$0xff] %v6674_v28  ;;  %8425 = vst [vmem:[#allocation64_spill] sm:$0xff] %v6676_v31  ;;  %3264 = vperm.xlu1 %5316, %v2358_v27   ;;  %3419 = vperm.xlu0 %5315, %v2389_v17   ;;  %v2435_v31 = vld [vmem:[%s8342_s6 + $0x778] sm:$0xff] }
 0x63f   : > { %v6684_v60 = vpop.permute.xlu1 %2699  ;;  %v6686_v0 = vpop.permute.xlu0 %2694 }
 0x640   : > { %8426 = vst [vmem:[#allocation65_spill] sm:$0xff] %v6684_v60  ;;  %8427 = vst [vmem:[#allocation66_spill] sm:$0xff] %v6686_v0  ;;  %3579 = vperm.xlu1 %5316, %v2421_v23   ;;  %3574 = vperm.xlu0 %5315, %v2420_v3   ;;  %v2423_v23 = vld [vmem:[%s8342_s6 + $0x718] sm:$0xff]  ;;  %v2360_v3 = vld [vmem:[%s8342_s6 + $0x520] sm:$0xff] }
 0x641   : > { %v2371_v0 = vld [vmem:[%s8342_s6 + $0x578] sm:$0xff] }
 0x643   : > { %v6694_v63 = vpop.permute.xlu1 %2709  ;;  %v6696_v24 = vpop.permute.xlu0 %2704 }
 0x644   : > { %8428 = vst [vmem:[#allocation67_spill] sm:$0xff] %v6694_v63  ;;  %8429 = vst [vmem:[#allocation68_spill] sm:$0xff] %v6696_v24  ;;  %3424 = vperm.xlu1 %5316, %v2390_v40   ;;  %3109 = vperm.xlu0 %5315, %v2327_v11   ;;  %v2429_v63 = vld [vmem:[%s8342_s6 + $0x748] sm:$0xff]  ;;  %v2307_v24 = vld [vmem:[%s8342_s6 + $0x378] sm:$0xff] }
 0x647   : > { %v6704_v49 = vpop.permute.xlu1 %2719  ;;  %v6706_v50 = vpop.permute.xlu0 %2714 }
 0x648   : > { %8430 = vst [vmem:[#allocation69_spill] sm:$0xff] %v6704_v49  ;;  %8431 = vst [vmem:[#allocation70_spill] sm:$0xff] %v6706_v50  ;;  %3584 = vperm.xlu1 %5316, %v2422_v21   ;;  %3269 = vperm.xlu0 %5315, %v2359_v8   ;;  %v2392_v21 = vld [vmem:[%s8342_s6 + $0x620] sm:$0xff]  ;;  %v2329_v8 = vld [vmem:[%s8342_s6 + $0x428] sm:$0xff] }
 0x649   : > { %v2334_v49 = vld [vmem:[%s8342_s6 + $0x450] sm:$0xff] }
 0x64b   : > { %v6714_v27 = vpop.permute.xlu1 %2729  ;;  %v6716_v17 = vpop.permute.xlu0 %2724 }
 0x64c   : > { %8432 = vst [vmem:[#allocation71_spill] sm:$0xff] %v6714_v27  ;;  %8433 = vst [vmem:[#allocation72_spill] sm:$0xff] %v6716_v17  ;;  %3429 = vperm.xlu1 %5316, %v2391_v18   ;;  %3114 = vperm.xlu0 %5315, %v2328_v4   ;;  %v2396_v27 = vld [vmem:[%s8342_s6 + $0x640] sm:$0xff] }
 0x64f   : > { %v6724_v40 = vpop.permute.xlu1 %2739  ;;  %v6726_v11 = vpop.permute.xlu0 %2734 }
 0x650   : > { %8434 = vst [vmem:[#allocation73_spill] sm:$0xff] %v6724_v40  ;;  %8435 = vst [vmem:[#allocation74_spill] sm:$0xff] %v6726_v11  ;;  %3589 = vperm.xlu1 %5316, %v2423_v23   ;;  %3274 = vperm.xlu0 %5315, %v2360_v3   ;;  %v2361_v23 = vld [vmem:[%s8342_s6 + $0x528] sm:$0xff] }
 0x651   : > { %v2301_v40 = vld [vmem:[%s8342_s6 + $0x348] sm:$0xff] }
 0x653   : > { %v6734_v18 = vpop.permute.xlu1 %2749  ;;  %v6736_v4 = vpop.permute.xlu0 %2744 }
 0x654   : > { %8436 = vst [vmem:[#allocation75_spill] sm:$0xff] %v6734_v18  ;;  %8437 = vst [vmem:[#allocation76_spill] sm:$0xff] %v6736_v4  ;;  %3434 = vperm.xlu1 %5316, %v2392_v21   ;;  %3119 = vperm.xlu0 %5315, %v2329_v8   ;;  %v2330_v21 = vld [vmem:[%s8342_s6 + $0x430] sm:$0xff]  ;;  %v2363_v18 = vld [vmem:[%s8342_s6 + $0x538] sm:$0xff] }
 0x657   : > { %v6744_v3 = vpop.permute.xlu1 %2759  ;;  %v6746_v61 = vpop.permute.xlu0 %2754 }
 0x658   : > { %8438 = vst [vmem:[#allocation77_spill] sm:$0xff] %v6744_v3  ;;  %8439 = vst [vmem:[#allocation78_spill] sm:$0xff] %v6746_v61  ;;  %3594 = vperm.xlu1 %5316, %v2424_v2   ;;  %3279 = vperm.xlu0 %5315, %v2361_v23   ;;  %v2425_v3 = vld [vmem:[%s8342_s6 + $0x728] sm:$0xff]  ;;  %v2362_v2 = vld [vmem:[%s8342_s6 + $0x530] sm:$0xff] }
 0x65b   : > { %v6754_v8 = vpop.permute.xlu1 %2769  ;;  %v6756_v58 = vpop.permute.xlu0 %2764 }
 0x65c   : > { %8440 = vst [vmem:[#allocation79_spill] sm:$0xff] %v6754_v8  ;;  %8441 = vst [vmem:[#allocation80_spill] sm:$0xff] %v6756_v58  ;;  %3439 = vperm.xlu1 %5316, %v2393_v46   ;;  %3124 = vperm.xlu0 %5315, %v2330_v21   ;;  %v2394_v8 = vld [vmem:[%s8342_s6 + $0x630] sm:$0xff]  ;;  %v2331_v46 = vld [vmem:[%s8342_s6 + $0x438] sm:$0xff] }
 0x65f   : > { %v6764_v23 = vpop.permute.xlu1 %2779  ;;  %v6766_v61 = vpop.permute.xlu0 %2774 }
 0x660   : > { %8442 = vst [vmem:[#allocation81_spill] sm:$0xff] %v6764_v23  ;;  %8443 = vst [vmem:[#allocation82_spill] sm:$0xff] %v6766_v61  ;;  %3599 = vperm.xlu1 %5316, %v2425_v3   ;;  %3284 = vperm.xlu0 %5315, %v2362_v2   ;;  %v2300_v3 = vld [vmem:[%s8342_s6 + $0x340] sm:$0xff]  ;;  %v2441_v61 = vld [vmem:[%s8342_s6 + $0x7a8] sm:$0xff] }
 0x663   : > { %v6774_v21 = vpop.permute.xlu1 %2789  ;;  %v6776_v58 = vpop.permute.xlu0 %2784 }
 0x664   : > { %8444 = vst [vmem:[#allocation83_spill] sm:$0xff] %v6774_v21  ;;  %8445 = vst [vmem:[#allocation84_spill] sm:$0xff] %v6776_v58  ;;  %3444 = vperm.xlu1 %5316, %v2394_v8   ;;  %3129 = vperm.xlu0 %5315, %v2331_v46   ;;  %v2426_v8 = vld [vmem:[%s8342_s6 + $0x730] sm:$0xff]  ;;  %v2315_v21 = vld [vmem:[%s8342_s6 + $0x3b8] sm:$0xff] }
 0x667   : > { %v6784_v2 = vpop.permute.xlu1 %2799  ;;  %v6786_v13 = vpop.permute.xlu0 %2794 }
 0x668   : > { %8446 = vst [vmem:[#allocation85_spill] sm:$0xff] %v6784_v2  ;;  %8447 = vst [vmem:[#allocation86_spill] sm:$0xff] %v6786_v13  ;;  %3289 = vperm.xlu1 %5316, %v2363_v18   ;;  %2974 = vperm.xlu0 %5315, %v2300_v3   ;;  %v2395_v18 = vld [vmem:[%s8342_s6 + $0x638] sm:$0xff]  ;;  %v2408_v2 = vld [vmem:[%s8342_s6 + $0x6a0] sm:$0xff] }
 0x66b   : > { %v6794_v46 = vpop.permute.xlu1 %2809  ;;  %v6796_v4 = vpop.permute.xlu0 %2804 }
 0x66c   : > { %8448 = vst [vmem:[#allocation87_spill] sm:$0xff] %v6794_v46  ;;  %8449 = vst [vmem:[#allocation88_spill] sm:$0xff] %v6796_v4  ;;  %3134 = vperm.xlu1 %5316, %v2332_v52   ;;  %3604 = vperm.xlu0 %5315, %v2426_v8   ;;  %v2364_v52 = vld [vmem:[%s8342_s6 + $0x540] sm:$0xff] }
 0x66f   : > { %v6804_v3 = vpop.permute.xlu1 %2819  ;;  %v6806_v30 = vpop.permute.xlu0 %2814 }
 0x670   : > { %8450 = vst [vmem:[#allocation89_spill] sm:$0xff] %v6804_v3  ;;  %8451 = vst [vmem:[#allocation90_spill] sm:$0xff] %v6806_v30  ;;  %2979 = vperm.xlu1 %5316, %v2301_v40   ;;  %3449 = vperm.xlu0 %5315, %v2395_v18   ;;  %v2333_v40 = vld [vmem:[%s8342_s6 + $0x448] sm:$0xff] }
 0x671   : > { %v2437_v3 = vld [vmem:[%s8342_s6 + $0x788] sm:$0xff] }
 0x673   : > { %v6814_v8 = vpop.permute.xlu1 %2829  ;;  %v6816_v11 = vpop.permute.xlu0 %2824 }
 0x674   : > { %8452 = vst [vmem:[#allocation91_spill] sm:$0xff] %v6814_v8  ;;  %8453 = vst [vmem:[#allocation92_spill] sm:$0xff] %v6816_v11  ;;  %3609 = vperm.xlu1 %5316, %v2427_v34   ;;  %3294 = vperm.xlu0 %5315, %v2364_v52   ;;  %v2302_v34 = vld [vmem:[%s8342_s6 + $0x350] sm:$0xff]  ;;  %v2373_v8 = vld [vmem:[%s8342_s6 + $0x588] sm:$0xff] }
 0x677   : > { %v6824_v18 = vpop.permute.xlu1 %2839  ;;  %v6826_v20 = vpop.permute.xlu0 %2834 }
 0x678   : > { %8454 = vst [vmem:[#allocation93_spill] sm:$0xff] %v6824_v18  ;;  %8455 = vst [vmem:[#allocation94_spill] sm:$0xff] %v6826_v20  ;;  %3454 = vperm.xlu1 %5316, %v2396_v27   ;;  %3139 = vperm.xlu0 %5315, %v2333_v40   ;;  %v2428_v27 = vld [vmem:[%s8342_s6 + $0x740] sm:$0xff]  ;;  %v2309_v18 = vld [vmem:[%s8342_s6 + $0x388] sm:$0xff] }
 0x67b   : > { %v6834_v52 = vpop.permute.xlu1 %2849  ;;  %v6836_v17 = vpop.permute.xlu0 %2844 }
 0x67c   : > { %8456 = vst [vmem:[#allocation95_spill] sm:$0xff] %v6834_v52  ;;  %8457 = vst [vmem:[#allocation96_spill] sm:$0xff] %v6836_v17  ;;  %3299 = vperm.xlu1 %5316, %v2365_v15   ;;  %2984 = vperm.xlu0 %5315, %v2302_v34   ;;  %v2397_v15 = vld [vmem:[%s8342_s6 + $0x648] sm:$0xff]  ;;  %v2402_v52 = vld [vmem:[%s8342_s6 + $0x670] sm:$0xff] }
 0x67d   : > { %v2340_v17 = vld [vmem:[%s8342_s6 + $0x480] sm:$0xff] }
 0x67f   : > { %v6844_v40 = vpop.permute.xlu1 %2859  ;;  %v6846_v12 = vpop.permute.xlu0 %2854 }
 0x680   : > { %8458 = vst [vmem:[#allocation97_spill] sm:$0xff] %v6844_v40  ;;  %8459 = vst [vmem:[#allocation98_spill] sm:$0xff] %v6846_v12  ;;  %3144 = vperm.xlu1 %5316, %v2334_v49   ;;  %3614 = vperm.xlu0 %5315, %v2428_v27   ;;  %v2366_v49 = vld [vmem:[%s8342_s6 + $0x550] sm:$0xff]  ;;  %v2433_v12 = vld [vmem:[%s8342_s6 + $0x768] sm:$0xff] }
 0x681   : > { %v2338_v40 = vld [vmem:[%s8342_s6 + $0x470] sm:$0xff] }
 0x683   : > { %v6854_v34 = vpop.permute.xlu1 %2869  ;;  %v6856_v50 = vpop.permute.xlu0 %2864 }
 0x684   : > { %8460 = vst [vmem:[#allocation99_spill] sm:$0xff] %v6854_v34  ;;  %8461 = vst [vmem:[#allocation100_spill] sm:$0xff] %v6856_v50  ;;  %2989 = vperm.xlu1 %5316, %v2303_v47   ;;  %3459 = vperm.xlu0 %5315, %v2397_v15   ;;  %v2398_v34 = vld [vmem:[%s8342_s6 + $0x650] sm:$0xff]  ;;  %v2335_v47 = vld [vmem:[%s8342_s6 + $0x458] sm:$0xff] }
 0x687   : > { %v6864_v27 = vpop.permute.xlu1 %2879  ;;  %v6866_v26 = vpop.permute.xlu0 %2874 }
 0x688   : > { %8462 = vst [vmem:[#allocation101_spill] sm:$0xff] %v6864_v27  ;;  %8463 = vst [vmem:[#allocation102_spill] sm:$0xff] %v6866_v26  ;;  %3619 = vperm.xlu1 %5316, %v2429_v63   ;;  %3304 = vperm.xlu0 %5315, %v2366_v49   ;;  %v2367_v27 = vld [vmem:[%s8342_s6 + $0x558] sm:$0xff]  ;;  %v2304_v63 = vld [vmem:[%s8342_s6 + $0x360] sm:$0xff] }
 0x68b   : > { %v6874_v15 = vpop.permute.xlu1 %2889  ;;  %v6876_v50 = vpop.permute.xlu0 %2884 }
 0x68c   : > { %8464 = vst [vmem:[#allocation103_spill] sm:$0xff] %v6874_v15  ;;  %8465 = vst [vmem:[#allocation104_spill] sm:$0xff] %v6876_v50  ;;  %3464 = vperm.xlu1 %5316, %v2398_v34   ;;  %3149 = vperm.xlu0 %5315, %v2335_v47   ;;  %v2336_v15 = vld [vmem:[%s8342_s6 + $0x460] sm:$0xff]  ;;  %v2430_v34 = vld [vmem:[%s8342_s6 + $0x750] sm:$0xff] }
 0x68f   : > { %v6884_v49 = vpop.permute.xlu1 %2899  ;;  %v6886_v26 = vpop.permute.xlu0 %2894 }
 0x690   : > { %8466 = vst [vmem:[#allocation105_spill] sm:$0xff] %v6884_v49  ;;  %8467 = vst [vmem:[#allocation106_spill] sm:$0xff] %v6886_v26  ;;  %3309 = vperm.xlu1 %5316, %v2367_v27   ;;  %2994 = vperm.xlu0 %5315, %v2304_v63   ;;  %v2305_v49 = vld [vmem:[%s8342_s6 + $0x368] sm:$0xff]  ;;  %v2399_v27 = vld [vmem:[%s8342_s6 + $0x658] sm:$0xff] }
 0x693   : > { %v6894_v47 = vpop.permute.xlu1 %2909  ;;  %v6896_v50 = vpop.permute.xlu0 %2904 }
 0x694   : > { %8468 = vst [vmem:[#allocation107_spill] sm:$0xff] %v6894_v47  ;;  %8469 = vst [vmem:[#allocation108_spill] sm:$0xff] %v6896_v50  ;;  %3154 = vperm.xlu1 %5316, %v2336_v15   ;;  %3624 = vperm.xlu0 %5315, %v2430_v34   ;;  %v2431_v47 = vld [vmem:[%s8342_s6 + $0x758] sm:$0xff]  ;;  %v2368_v15 = vld [vmem:[%s8342_s6 + $0x560] sm:$0xff] }
 0x697   : > { %v6904_v63 = vpop.permute.xlu1 %2919  ;;  %v6906_v26 = vpop.permute.xlu0 %2914 }
 0x698   : > { %8470 = vst [vmem:[#allocation109_spill] sm:$0xff] %v6904_v63  ;;  %8471 = vst [vmem:[#allocation110_spill] sm:$0xff] %v6906_v26  ;;  %2999 = vperm.xlu1 %5316, %v2305_v49   ;;  %3469 = vperm.xlu0 %5315, %v2399_v27   ;;  %v2400_v63 = vld [vmem:[%s8342_s6 + $0x660] sm:$0xff]  ;;  %v2337_v49 = vld [vmem:[%s8342_s6 + $0x468] sm:$0xff] }
 0x69b   : > { %v6914_v34 = vpop.permute.xlu1 %2929  ;;  %v6916_v50 = vpop.permute.xlu0 %2924 }
 0x69c   : > { %8472 = vst [vmem:[#allocation111_spill] sm:$0xff] %v6914_v34  ;;  %8473 = vst [vmem:[#allocation112_spill] sm:$0xff] %v6916_v50  ;;  %3629 = vperm.xlu1 %5316, %v2431_v47   ;;  %3314 = vperm.xlu0 %5315, %v2368_v15   ;;  %v2369_v34 = vld [vmem:[%s8342_s6 + $0x568] sm:$0xff]  ;;  %v2306_v47 = vld [vmem:[%s8342_s6 + $0x370] sm:$0xff] }
 0x69f   : > { %v6924_v27 = vpop.permute.xlu1 %2939  ;;  %v6926_v26 = vpop.permute.xlu0 %2934 }
 0x6a0   : > { %3474 = vperm.xlu1 %5316, %v2400_v63   ;;  %3159 = vperm.xlu0 %5315, %v2337_v49   ;;  %v2432_v63 = vld [vmem:[%s8342_s6 + $0x760] sm:$0xff] }
 0x6a3   : > { %v6934_v15 = vpop.permute.xlu1 %2949  ;;  %v6936_v50 = vpop.permute.xlu0 %2944 }
 0x6a4   : > { %3319 = vperm.xlu1 %5316, %v2369_v34   ;;  %3004 = vperm.xlu0 %5315, %v2306_v47   ;;  %v2401_v34 = vld [vmem:[%s8342_s6 + $0x668] sm:$0xff] }
 0x6a7   : > { %v6944_v49 = vpop.permute.xlu1 %2959  ;;  %v6946_v57 = vpop.permute.xlu0 %2954 }
 0x6a8   : > { %3164 = vperm.xlu1 %5316, %v2338_v40   ;;  %3634 = vperm.xlu0 %5315, %v2432_v63   ;;  %v2370_v40 = vld [vmem:[%s8342_s6 + $0x570] sm:$0xff] }
 0x6ab   : > { %v6954_v47 = vpop.permute.xlu1 %2969  ;;  %v6956_v60 = vpop.permute.xlu0 %2964 }
 0x6ac   : > { %3009 = vperm.xlu1 %5316, %v2307_v24   ;;  %3479 = vperm.xlu0 %5315, %v2401_v34   ;;  %v2339_v24 = vld [vmem:[%s8342_s6 + $0x478] sm:$0xff] }
 0x6af   : > { %v6964_v63 = vpop.permute.xlu1 %3099  ;;  %v6966_v10 = vpop.permute.xlu0 %3094 }
 0x6b0   : > { %3639 = vperm.xlu1 %5316, %v2433_v12   ;;  %3324 = vperm.xlu0 %5315, %v2370_v40   ;;  %v2308_v12 = vld [vmem:[%s8342_s6 + $0x380] sm:$0xff] }
 0x6b3   : > { %v6974_v34 = vpop.permute.xlu1 %3259  ;;  %v6976_v41 = vpop.permute.xlu0 %3254 }
 0x6b4   : > { %3484 = vperm.xlu1 %5316, %v2402_v52   ;;  %3169 = vperm.xlu0 %5315, %v2339_v24   ;;  %v2434_v52 = vld [vmem:[%s8342_s6 + $0x770] sm:$0xff] }
 0x6b7   : > { %v6984_v40 = vpop.permute.xlu1 %3414  ;;  %v6986_v28 = vpop.permute.xlu0 %3104 }
 0x6b8   : > { %3329 = vperm.xlu1 %5316, %v2371_v0   ;;  %3014 = vperm.xlu0 %5315, %v2308_v12   ;;  %v2403_v0 = vld [vmem:[%s8342_s6 + $0x678] sm:$0xff] }
 0x6bb   : > { %v6994_v24 = vpop.permute.xlu1 %3264  ;;  %v6996_v44 = vpop.permute.xlu0 %3419 }
 0x6bc   : > { %3174 = vperm.xlu1 %5316, %v2340_v17   ;;  %3644 = vperm.xlu0 %5315, %v2434_v52   ;;  %v2372_v17 = vld [vmem:[%s8342_s6 + $0x580] sm:$0xff] }
 0x6bf   : > { %v7004_v12 = vpop.permute.xlu1 %3579  ;;  %v7006_v42 = vpop.permute.xlu0 %3574 }
 0x6c0   : > { %3019 = vperm.xlu1 %5316, %v2309_v18   ;;  %3489 = vperm.xlu0 %5315, %v2403_v0   ;;  %v2341_v18 = vld [vmem:[%s8342_s6 + $0x488] sm:$0xff] }
 0x6c3   : > { %v7014_v52 = vpop.permute.xlu1 %3424  ;;  %v7016_v20 = vpop.permute.xlu0 %3109 }
 0x6c4   : > { %3649 = vperm.xlu1 %5316, %v2435_v31   ;;  %3334 = vperm.xlu0 %5315, %v2372_v17   ;;  %v2310_v31 = vld [vmem:[%s8342_s6 + $0x390] sm:$0xff] }
 0x6c7   : > { %v7024_v0 = vpop.permute.xlu1 %3584  ;;  %v7026_v54 = vpop.permute.xlu0 %3269 }
 0x6c8   : > { %3494 = vperm.xlu1 %5316, %v2404_v9   ;;  %3179 = vperm.xlu0 %5315, %v2341_v18   ;;  %v2436_v9 = vld [vmem:[%s8342_s6 + $0x780] sm:$0xff] }
 0x6cb   : > { %v7034_v17 = vpop.permute.xlu1 %3429  ;;  %v7036_v29 = vpop.permute.xlu0 %3114 }
 0x6cc   : > { %3339 = vperm.xlu1 %5316, %v2373_v8   ;;  %3024 = vperm.xlu0 %5315, %v2310_v31   ;;  %v2405_v8 = vld [vmem:[%s8342_s6 + $0x688] sm:$0xff] }
 0x6cf   : > { %v7044_v18 = vpop.permute.xlu1 %3589  ;;  %v7046_v11 = vpop.permute.xlu0 %3274 }
 0x6d0   : > { %3184 = vperm.xlu1 %5316, %v2342_v59   ;;  %3654 = vperm.xlu0 %5315, %v2436_v9   ;;  %v2374_v59 = vld [vmem:[%s8342_s6 + $0x590] sm:$0xff] }
 0x6d3   : > { %v7054_v31 = vpop.permute.xlu1 %3434  ;;  %v7056_v36 = vpop.permute.xlu0 %3119 }
 0x6d4   : > { %3029 = vperm.xlu1 %5316, %v2311_v14   ;;  %3499 = vperm.xlu0 %5315, %v2405_v8   ;;  %v2343_v14 = vld [vmem:[%s8342_s6 + $0x498] sm:$0xff] }
 0x6d7   : > { %v7064_v9 = vpop.permute.xlu1 %3594  ;;  %v7066_v7 = vpop.permute.xlu0 %3279 }
 0x6d8   : > { %3659 = vperm.xlu1 %5316, %v2437_v3   ;;  %3344 = vperm.xlu0 %5315, %v2374_v59   ;;  %v2312_v3 = vld [vmem:[%s8342_s6 + $0x3a0] sm:$0xff] }
 0x6db   : > { %v7074_v8 = vpop.permute.xlu1 %3439  ;;  %v7076_v30 = vpop.permute.xlu0 %3124 }
 0x6dc   : > { %3504 = vperm.xlu1 %5316, %v2406_v48   ;;  %3189 = vperm.xlu0 %5315, %v2343_v14   ;;  %v2438_v48 = vld [vmem:[%s8342_s6 + $0x790] sm:$0xff] }
 0x6df   : > { %v7084_v59 = vpop.permute.xlu1 %3599  ;;  %v7086_v46 = vpop.permute.xlu0 %3284 }
 0x6e0   : > { %3349 = vperm.xlu1 %5316, %v2375_v19   ;;  %3034 = vperm.xlu0 %5315, %v2312_v3   ;;  %v2407_v19 = vld [vmem:[%s8342_s6 + $0x698] sm:$0xff] }
 0x6e3   : > { %v7094_v14 = vpop.permute.xlu1 %3444  ;;  %v7096_v39 = vpop.permute.xlu0 %3129 }
 0x6e4   : > { %3194 = vperm.xlu1 %5316, %v2344_v16   ;;  %3664 = vperm.xlu0 %5315, %v2438_v48   ;;  %v2376_v16 = vld [vmem:[%s8342_s6 + $0x5a0] sm:$0xff] }
 0x6e7   : > { %v7104_v3 = vpop.permute.xlu1 %3289  ;;  %v7106_v4 = vpop.permute.xlu0 %2974 }
 0x6e8   : > { %3039 = vperm.xlu1 %5316, %v2313_v43   ;;  %3509 = vperm.xlu0 %5315, %v2407_v19   ;;  %v2345_v43 = vld [vmem:[%s8342_s6 + $0x4a8] sm:$0xff] }
 0x6eb   : > { %v7114_v48 = vpop.permute.xlu1 %3134  ;;  %v7116_v45 = vpop.permute.xlu0 %3604 }
 0x6ec   : > { %3669 = vperm.xlu1 %5316, %v2439_v25   ;;  %3354 = vperm.xlu0 %5315, %v2376_v16   ;;  %v2314_v25 = vld [vmem:[%s8342_s6 + $0x3b0] sm:$0xff] }
 0x6ef   : > { %v7124_v19 = vpop.permute.xlu1 %2979  ;;  %v7126_v51 = vpop.permute.xlu0 %3449 }
 0x6f0   : > { %3514 = vperm.xlu1 %5316, %v2408_v2   ;;  %3199 = vperm.xlu0 %5315, %v2345_v43   ;;  %v2440_v2 = vld [vmem:[%s8342_s6 + $0x7a0] sm:$0xff] }
 0x6f3   : > { %v7134_v16 = vpop.permute.xlu1 %3609  ;;  %v7136_v13 = vpop.permute.xlu0 %3294 }
 0x6f4   : > { %3359 = vperm.xlu1 %5316, %v2377_v6   ;;  %3044 = vperm.xlu0 %5315, %v2314_v25   ;;  %v7151_v6 = vld [vmem:[#allocation2] sm:$0xff]  ;;  %v7153_v25 = vld [vmem:[#allocation2 + $0x8] sm:$0xff] }
 0x6f5   : > { %8474 = vst [vmem:[#allocation113_spill] sm:$0xff] %v7153_v25  ;;  %v3829_v38 = vmul.f32 %v6924_v27, %v7153_v25  ;;  %v3828_v58 = vmul.f32 %v6926_v26, %v7151_v6  ;;  %v2378_v27 = vld [vmem:[%s8342_s6 + $0x5b0] sm:$0xff] }
 0x6f7   : > { %v7144_v43 = vpop.permute.xlu1 %3454  ;;  %v7146_v33 = vpop.permute.xlu0 %3139  ;;  %v4099_v26 = vmax.f32 %v3828_v58, %v3829_v38 }
 0x6f8   : > { %3204 = vperm.xlu1 %5316, %v2346_v5   ;;  %3674 = vperm.xlu0 %5315, %v2440_v2   ;;  %v7164_v2 = vld [vmem:[#allocation2 + $0x10] sm:$0xff] }
 0x6f9   : > { %v3830_v22 = vmul.f32 %v6936_v50, %v7164_v2  ;;  %v7183_v50 = vld [vmem:[#allocation2 + $0x18] sm:$0xff] }
 0x6fa   : > { %v3831_v58 = vmul.f32 %v6934_v15, %v7183_v50  ;;  %v2316_v15 = vld [vmem:[%s8342_s6 + $0x3c0] sm:$0xff] }
 0x6fb   : > { %v7162_v5 = vpop.permute.xlu1 %3299  ;;  %v7166_v35 = vpop.permute.xlu0 %2984  ;;  %v4100_v53 = vmax.f32 %v4099_v26, %v3830_v22  ;;  %v3832_v22 = vmul.f32 %v6946_v57, %v7192_v62  ;;  %v2379_v26 = vld [vmem:[%s8342_s6 + $0x5b8] sm:$0xff]  ;;  %v2348_v57 = vld [vmem:[%s8342_s6 + $0x4c0] sm:$0xff] }
 0x6fc   : > { %3049 = vperm.xlu1 %5316, %v2315_v21   ;;  %3519 = vperm.xlu0 %5315, %v2409_v55   ;;  %v2410_v55 = vld [vmem:[%s8342_s6 + $0x6b0] sm:$0xff]  ;;  %v2347_v21 = vld [vmem:[%s8342_s6 + $0x4b8] sm:$0xff] }
 0x6ff   : > { %v7176_v23 = vpop.permute.xlu1 %3144  ;;  %v7178_v32 = vpop.permute.xlu0 %3614 }
 0x700   : > { %3679 = vperm.xlu1 %5316, %v2441_v61   ;;  %3364 = vperm.xlu0 %5315, %v2378_v27   ;;  %v4101_v27 = vmax.f32 %v4100_v53, %v3831_v58  ;;  %v7211_v53 = vld [vmem:[#allocation2 + $0x28] sm:$0xff]  ;;  %v2442_v58 = vld [vmem:[%s8342_s6 + $0x7b0] sm:$0xff] }
 0x702   : > { %v4102_v56 = vmax.f32 %v4101_v27, %v3832_v22  ;;  %v3833_v22 = vmul.f32 %v6944_v49, %v7211_v53  ;;  %v3861_v27 = vmul.f32 %v6964_v63, %v7153_v25  ;;  %v3862_v63 = vmul.f32 %v6986_v28, %v7164_v2 }
 0x703   : > { %v7190_v38 = vpop.permute.xlu1 %2989  ;;  %v7194_v61 = vpop.permute.xlu0 %3459 }
 0x704   : > { %8475 = vst [vmem:[#allocation114_spill] sm:$0xff] %v7190_v38  ;;  %8476 = vst [vmem:[#allocation115_spill] sm:$0xff] %v7194_v61  ;;  %3524 = vperm.xlu1 %5316, %v2410_v55   ;;  %3209 = vperm.xlu0 %5315, %v2347_v21   ;;  %v3893_v55 = vmul.f32 %v6974_v34, %v7153_v25  ;;  %v3892_v21 = vmul.f32 %v6976_v41, %v7151_v6  ;;  %v7228_v61 = vld [vmem:[#allocation2 + $0x30] sm:$0xff]  ;;  %v7234_v38 = vld [vmem:[#allocation2 + $0x38] sm:$0xff] }
 0x705   : > { %v3894_v41 = vmul.f32 %v6994_v24, %v7164_v2  ;;  %v3834_v49 = vmul.f32 %v6956_v60, %v7228_v61  ;;  %v7245_v24 = vmul.f32 %v6954_v47, %v7234_v38  ;;  %v3895_v60 = vmul.f32 %v7026_v54, %v7183_v50 }
 0x706   : > { %v3863_v47 = vmul.f32 %v7016_v20, %v7183_v50  ;;  %v3958_v20 = vmul.f32 %v7024_v0, %v7164_v2  ;;  %v2380_v0 = vld [vmem:[%s8342_s6 + $0x5c0] sm:$0xff] }
 0x707   : > { %v7204_v1 = vpop.permute.xlu1 %3619  ;;  %v7206_v37 = vpop.permute.xlu0 %3304 }
 0x708   : > { %8477 = vst [vmem:[#allocation116_spill] sm:$0xff] %v7204_v1  ;;  %3369 = vperm.xlu1 %5316, %v2379_v26   ;;  %3054 = vperm.xlu0 %5315, %v2316_v15   ;;  %v3860_v26 = vmul.f32 %v6966_v10, %v7151_v6  ;;  %v4103_v1 = vmax.f32 %v4102_v56, %v3833_v22  ;;  %v2317_v10 = vld [vmem:[%s8342_s6 + $0x3c8] sm:$0xff]  ;;  %v2411_v56 = vld [vmem:[%s8342_s6 + $0x6b8] sm:$0xff] }
 0x709   : > { %v3956_v22 = vmul.f32 %v7006_v42, %v7151_v6 }
 0x70a   : > { %v4136_v28 = vmax.f32 %v3860_v26, %v3861_v27  ;;  %v3896_v27 = vmul.f32 %v7046_v11, %v7192_v62  ;;  %v3927_v11 = vmul.f32 %v7034_v17, %v7183_v50  ;;  %v3928_v17 = vmul.f32 %v7054_v31, %v7192_v62 }
 0x70b   : > { %v7226_v15 = vpop.permute.xlu1 %3464  ;;  %v7232_v34 = vpop.permute.xlu0 %3149 }
 0x70c   : > { %8478 = vst [vmem:[#allocation117_spill] sm:$0xff] %v7226_v15  ;;  %3214 = vperm.xlu1 %5316, %v2348_v57   ;;  %3684 = vperm.xlu0 %5315, %v2442_v58   ;;  %v4173_v15 = vmax.f32 %v3892_v21, %v3893_v55  ;;  %v3925_v57 = vmul.f32 %v6996_v44, %v7153_v25 }
 0x70d   : > { %v3957_v58 = vmul.f32 %v7004_v12, %v7153_v25  ;;  %v3924_v44 = vmul.f32 %v6984_v40, %v7151_v6  ;;  %v3926_v21 = vmul.f32 %v7014_v52, %v7164_v2  ;;  %v7270_v12 = vmax.f32 %v4103_v1, %v3834_v49  ;;  %v2443_v40 = vld [vmem:[%s8342_s6 + $0x7b8] sm:$0xff] }
 0x70e   : > { %v4174_v54 = vmax.f32 %v4173_v15, %v3894_v41  ;;  %v4137_v42 = vmax.f32 %v4136_v28, %v3862_v63  ;;  %v3864_v25 = vmul.f32 %v7036_v29, %v7192_v62  ;;  %v3897_v1 = vmul.f32 %v7066_v7, %v7211_v53 }
 0x70f   : > { %v7260_v55 = vpop.permute.xlu1 %3309  ;;  %v7268_v26 = vpop.permute.xlu0 %2994  ;;  %v4210_v52 = vmax.f32 %v3924_v44, %v3925_v57  ;;  %v4247_v41 = vmax.f32 %v3956_v22, %v3957_v58  ;;  %v3959_v29 = vmul.f32 %v7044_v18, %v7183_v50  ;;  %v3865_v63 = vmul.f32 %v7056_v36, %v7211_v53  ;;  %v2412_v22 = vld [vmem:[%s8342_s6 + $0x6c0] sm:$0xff] }
 0x710   : > { %3059 = vperm.xlu1 %5316, %v2317_v10   ;;  %3529 = vperm.xlu0 %5315, %v2411_v56   ;;  %v4175_v15 = vmax.f32 %v4174_v54, %v3895_v60  ;;  %v4138_v49 = vmax.f32 %v4137_v42, %v3863_v47  ;;  %v3898_v7 = vmul.f32 %v7086_v46, %v7228_v61 }
 0x711   : > { %v4211_v57 = vmax.f32 %v4210_v52, %v3926_v21  ;;  %v4248_v28 = vmax.f32 %v4247_v41, %v3958_v20  ;;  %v3960_v18 = vmul.f32 %v7064_v9, %v7192_v62  ;;  %v3866_v36 = vmul.f32 %v7076_v30, %v7228_v61  ;;  %v2349_v9 = vld [vmem:[%s8342_s6 + $0x4c8] sm:$0xff] }
 0x712   : > { %v4176_v60 = vmax.f32 %v4175_v15, %v3896_v27  ;;  %v4139_v58 = vmax.f32 %v4138_v49, %v3864_v25  ;;  %v3929_v46 = vmul.f32 %v7074_v8, %v7211_v53  ;;  %v3899_v44 = vmul.f32 %v7104_v3, %v7234_v38  ;;  %v7312_v25 = vld [vmem:[#allocation2 + $0x40] sm:$0xff]  ;;  %v7326_v15 = vld [vmem:[#allocation2 + $0x48] sm:$0xff]  ;;  %v7342_v49 = vld [vmem:[#allocation2 + $0x50] sm:$0xff] }
 0x713   : > { %v7290_v10 = vpop.permute.xlu1 %3154  ;;  %v7296_v56 = vpop.permute.xlu0 %3624  ;;  %v4212_v31 = vmax.f32 %v4211_v57, %v3927_v11  ;;  %v4249_v30 = vmax.f32 %v4248_v28, %v3959_v29  ;;  %v3961_v21 = vmul.f32 %v7084_v59, %v7211_v53  ;;  %v3867_v27 = vmul.f32 %v7096_v39, %v7234_v38 }
 0x714   : > { %3689 = vperm.xlu1 %5316, %v2443_v40   ;;  %3374 = vperm.xlu0 %5315, %v2380_v0   ;;  %v4177_v47 = vmax.f32 %v4176_v60, %v3897_v1  ;;  %v4140_v54 = vmax.f32 %v4139_v58, %v3865_v63  ;;  %v4105_v3 = vmax.f32 %v7270_v12, %v7245_v24  ;;  %v2381_v24 = vld [vmem:[%s8342_s6 + $0x5c8] sm:$0xff]  ;;  %v7354_v58 = vld [vmem:[#allocation2 + $0x58] sm:$0xff] }
 0x715   : > { %v4213_v8 = vmax.f32 %v4212_v31, %v3928_v17  ;;  %v3900_v40 = vmul.f32 %v7136_v13, %v7312_v25  ;;  %v4250_v11 = vmax.f32 %v4249_v30, %v3960_v18  ;;  %v3930_v39 = vmul.f32 %v7094_v14, %v7228_v61  ;;  %v2318_v14 = vld [vmem:[%s8342_s6 + $0x3d0] sm:$0xff] }
 0x716   : > { %v4178_v20 = vmax.f32 %v4177_v47, %v3898_v7  ;;  %v4141_v59 = vmax.f32 %v4140_v54, %v3866_v36  ;;  %v3868_v1 = vmul.f32 %v7114_v48, %v7312_v25  ;;  %v3836_v0 = vmul.f32 %v7106_v4, %v7312_v25  ;;  %v7370_v47 = vld [vmem:[#allocation2 + $0x60] sm:$0xff] }
 0x717   : > { %v7318_v42 = vpop.permute.xlu1 %2999  ;;  %v7324_v52 = vpop.permute.xlu0 %3469  ;;  %v4214_v12 = vmax.f32 %v4213_v8, %v3929_v46  ;;  %v3901_v41 = vmul.f32 %v7162_v5, %v7326_v15  ;;  %v4251_v48 = vmax.f32 %v4250_v11, %v3961_v21  ;;  %v3962_v63 = vmul.f32 %v7116_v45, %v7228_v61 }
 0x718   : > { %3534 = vperm.xlu1 %5316, %v2412_v22   ;;  %3219 = vperm.xlu0 %5315, %v2349_v9   ;;  %v4179_v13 = vmax.f32 %v4178_v20, %v3899_v44  ;;  %v4142_v29 = vmax.f32 %v4141_v59, %v3867_v27  ;;  %v3869_v57 = vmul.f32 %v7146_v33, %v7326_v15  ;;  %v8480_v59 = vld [vmem:[#allocation114_spill] sm:$0xff] }
 0x719   : > { %v3837_v4 = vmul.f32 %v7124_v19, %v7326_v15  ;;  %v3931_v5 = vmul.f32 %v7126_v51, %v7234_v38  ;;  %v3902_v7 = vmul.f32 %v7206_v37, %v7342_v49  ;;  %v4215_v18 = vmax.f32 %v4214_v12, %v3930_v39  ;;  %v2350_v51 = vld [vmem:[%s8342_s6 + $0x4d0] sm:$0xff]  ;;  %v7391_v12 = vld [vmem:[#allocation2 + $0x68] sm:$0xff] }
 0x71a   : > { %v4180_v17 = vmax.f32 %v4179_v13, %v3900_v40  ;;  %v4143_v45 = vmax.f32 %v4142_v29, %v3868_v1  ;;  %v3963_v33 = vmul.f32 %v7134_v16, %v7234_v38  ;;  %v3870_v36 = vmul.f32 %v7176_v23, %v7342_v49  ;;  %v2444_v16 = vld [vmem:[%s8342_s6 + $0x7c0] sm:$0xff] }
 0x71b   : > { %v3630_v60 = vpop.permute.xlu1 %3629  ;;  %v3315_v28 = vpop.permute.xlu0 %3314  ;;  %v4106_v19 = vmax.f32 %v4105_v3, %v3836_v0  ;;  %v3838_v37 = vmul.f32 %v7166_v35, %v7342_v49  ;;  %v3903_v31 = vmul.f32 %v7260_v55, %v7354_v58  ;;  %v4252_v23 = vmax.f32 %v4251_v48, %v3962_v63  ;;  %v8479_v40 = vld [vmem:[#allocation116_spill] sm:$0xff]  ;;  %v8481_v0 = vld [vmem:[#allocation115_spill] sm:$0xff] }
 0x71c   : > { %3379 = vperm.xlu1 %5316, %v2381_v24   ;;  %3064 = vperm.xlu0 %5315, %v2318_v14   ;;  %v4181_v22 = vmax.f32 %v4180_v17, %v3901_v41  ;;  %v4144_v46 = vmax.f32 %v4143_v45, %v3869_v57  ;;  %v3964_v44 = vmul.f32 %v7178_v32, %v7312_v25  ;;  %v2319_v32 = vld [vmem:[%s8342_s6 + $0x3d8] sm:$0xff] }
 0x71d   : > { %v3871_v9 = vmul.f32 %v7232_v34, %v7354_v58  ;;  %v4107_v54 = vmax.f32 %v4106_v19, %v3837_v4  ;;  %v4216_v35 = vmax.f32 %v4215_v18, %v3931_v5  ;;  %v3904_v55 = vmul.f32 %v3315_v28, %v7370_v47  ;;  %v8482_v28 = vld [vmem:[#allocation117_spill] sm:$0xff]  ;;  %v2382_v19 = vld [vmem:[%s8342_s6 + $0x5d0] sm:$0xff] }
 0x71e   : > { %v4182_v21 = vmax.f32 %v4181_v22, %v3902_v7  ;;  %v4253_v8 = vmax.f32 %v4252_v23, %v3963_v33  ;;  %v3932_v20 = vmul.f32 %v7144_v43, %v7312_v25  ;;  %v4145_v3 = vmax.f32 %v4144_v46, %v3870_v36  ;;  %v2413_v43 = vld [vmem:[%s8342_s6 + $0x6c8] sm:$0xff]  ;;  %v7412_v22 = vld [vmem:[#allocation2 + $0x70] sm:$0xff] }
 0x71f   : > { %v3475_v30 = vpop.permute.xlu1 %3474  ;;  %v3160_v27 = vpop.permute.xlu0 %3159  ;;  %v3965_v11 = vmul.f32 %v8479_v40, %v7326_v15  ;;  %v4108_v34 = vmax.f32 %v4107_v54, %v3838_v37  ;;  %v3839_v39 = vmul.f32 %v8480_v59, %v7354_v58  ;;  %v3872_v24 = vmul.f32 %v7290_v10, %v7370_v47 }
 0x720   : > { %3224 = vperm.xlu1 %5316, %v2350_v51   ;;  %3694 = vperm.xlu0 %5315, %v2444_v16   ;;  %v4183_v1 = vmax.f32 %v4182_v21, %v3903_v31  ;;  %v4254_v13 = vmax.f32 %v4253_v8, %v3964_v44  ;;  %v3933_v41 = vmul.f32 %v8481_v0, %v7326_v15 }
 0x721   : > { %v4146_v14 = vmax.f32 %v4145_v3, %v3871_v9  ;;  %v3966_v48 = vmul.f32 %v7296_v56, %v7342_v49  ;;  %v3840_v63 = vmul.f32 %v7268_v26, %v7370_v47  ;;  %v3873_v10 = vmul.f32 %v3160_v27, %v7391_v12  ;;  %v2445_v56 = vld [vmem:[%s8342_s6 + $0x7c8] sm:$0xff]  ;;  %v7428_v3 = vld [vmem:[#allocation2 + $0x78] sm:$0xff] }
 0x722   : > { %v4184_v57 = vmax.f32 %v4183_v1, %v3904_v55  ;;  %v4217_v17 = vmax.f32 %v4216_v35, %v3932_v20  ;;  %v4255_v7 = vmax.f32 %v4254_v13, %v3965_v11  ;;  %v3934_v18 = vmul.f32 %v8482_v28, %v7342_v49  ;;  %v2351_v20 = vld [vmem:[%s8342_s6 + $0x4d8] sm:$0xff]  ;;  %v2320_v13 = vld [vmem:[%s8342_s6 + $0x3e0] sm:$0xff] }
 0x723   : > { %v3320_v29 = vpop.permute.xlu1 %3319  ;;  %v3005_v5 = vpop.permute.xlu0 %3004  ;;  %v3967_v45 = vmul.f32 %v3630_v60, %v7354_v58  ;;  %v4109_v26 = vmax.f32 %v4108_v34, %v3839_v39  ;;  %v4147_v33 = vmax.f32 %v4146_v14, %v3872_v24  ;;  %v3841_v36 = vmul.f32 %v7318_v42, %v7391_v12  ;;  %v2383_v24 = vld [vmem:[%s8342_s6 + $0x5d8] sm:$0xff] }
 0x724   : > { %v3905_v4 = vmul.f32 %v3320_v29, %v7391_v12  ;;  %3069 = vperm.xlu1 %5316, %v2319_v32   ;;  %3539 = vperm.xlu0 %5315, %v2413_v43   ;;  %v4218_v37 = vmax.f32 %v4217_v17, %v3933_v41  ;;  %v4256_v31 = vmax.f32 %v4255_v7, %v3966_v48 }
 0x725   : > { %v3935_v60 = vmul.f32 %v7324_v52, %v7354_v58  ;;  %v4110_v23 = vmax.f32 %v4109_v26, %v3840_v63  ;;  %v4148_v46 = vmax.f32 %v4147_v33, %v3873_v10  ;;  %v3842_v44 = vmul.f32 %v3005_v5, %v7412_v22  ;;  %v2414_v52 = vld [vmem:[%s8342_s6 + $0x6d0] sm:$0xff]  ;;  %v2352_v63 = vld [vmem:[%s8342_s6 + $0x4e0] sm:$0xff] }
 0x726   : > { %v4185_v51 = vmax.f32 %v4184_v57, %v3905_v4  ;;  %v4219_v54 = vmax.f32 %v4218_v37, %v3934_v18  ;;  %v4257_v35 = vmax.f32 %v4256_v31, %v3967_v45  ;;  %v3936_v21 = vmul.f32 %v3475_v30, %v7370_v47  ;;  %v2446_v10 = vld [vmem:[%s8342_s6 + $0x7d0] sm:$0xff]  ;;  %v2321_v18 = vld [vmem:[%s8342_s6 + $0x3e8] sm:$0xff] }
 0x727   : > { %v3165_v16 = vpop.permute.xlu1 %3164  ;;  %v3635_v42 = vpop.permute.xlu0 %3634  ;;  %v4111_v27 = vmax.f32 %v4110_v23, %v3841_v36  ;;  %v8483_v45 = vld [vmem:[#allocation113_spill] sm:$0xff]  ;;  %v2415_v36 = vld [vmem:[%s8342_s6 + $0x6d8] sm:$0xff]  ;;  %v8485_v37 = vld [vmem:[#allocation18_spill] sm:$0xff] }
 0x728   : > { %v3874_v9 = vmul.f32 %v3165_v16, %v7412_v22  ;;  %3699 = vperm.xlu1 %5316, %v2445_v56   ;;  %v3968_v55 = vmul.f32 %v3635_v42, %v7370_v47  ;;  %3384 = vperm.xlu0 %5315, %v2382_v19   ;;  %v4220_v40 = vmax.f32 %v4219_v54, %v3935_v60  ;;  %v8484_v56 = vld [vmem:[#allocation20_spill] sm:$0xff] }
 0x729   : > { %v4112_v32 = vmax.f32 %v4111_v27, %v3842_v44  ;;  %v3733_v26 = vmul.f32 %v8484_v56, %v8483_v45  ;;  %v3732_v31 = vmul.f32 %v8485_v37, %v7151_v6  ;;  %v7466_v60 = vld [vmem:[#allocation2 + $0x80] sm:$0xff]  ;;  %v8495_v37 = vld [vmem:[#allocation54_spill] sm:$0xff] }
 0x72a   : > { %v7423_v8 = vmax.f32 %v4148_v46, %v3874_v9  ;;  %v7430_v11 = vmax.f32 %v4257_v35, %v3968_v55  ;;  %v4221_v39 = vmax.f32 %v4220_v40, %v3936_v21  ;;  %v8486_v46 = vld [vmem:[#allocation49_spill] sm:$0xff]  ;;  %v8487_v9 = vld [vmem:[#allocation50_spill] sm:$0xff]  ;;  %v2447_v35 = vld [vmem:[%s8342_s6 + $0x7d8] sm:$0xff] }
 0x72b   : > { %v3010_v30 = vpop.permute.xlu1 %3009  ;;  %v3480_v59 = vpop.permute.xlu0 %3479  ;;  %v3765_v44 = vmul.f32 %v8486_v46, %v8483_v45  ;;  %v3764_v42 = vmul.f32 %v8487_v9, %v7151_v6  ;;  %v3988_v21 = vmax.f32 %v3732_v31, %v3733_v26  ;;  %v8488_v27 = vld [vmem:[#allocation52_spill] sm:$0xff]  ;;  %v3768_v31 = vmul.f32 %v8495_v37, %v7192_v62  ;;  %v2386_v37 = vld [vmem:[%s8342_s6 + $0x5f0] sm:$0xff] }
 0x72c   : > { %v3843_v34 = vmul.f32 %v3010_v30, %v7428_v3  ;;  %3544 = vperm.xlu1 %5316, %v2414_v52   ;;  %v3937_v1 = vmul.f32 %v3480_v59, %v7391_v12  ;;  %3229 = vperm.xlu0 %5315, %v2351_v20   ;;  %v2384_v52 = vld [vmem:[%s8342_s6 + $0x5e0] sm:$0xff] }
 0x72d   : > { %v4025_v59 = vmax.f32 %v3764_v42, %v3765_v44  ;;  %v8494_v26 = vld [vmem:[#allocation84_spill] sm:$0xff]  ;;  %v8496_v44 = vld [vmem:[#allocation22_spill] sm:$0xff] }
 0x72e   : > { %v4113_v43 = vmax.f32 %v4112_v32, %v3843_v34  ;;  %v4222_v0 = vmax.f32 %v4221_v39, %v3937_v1  ;;  %v2416_v1 = vld [vmem:[%s8342_s6 + $0x6e0] sm:$0xff]  ;;  %v3736_v9 = vmul.f32 %v8496_v44, %v7192_v62  ;;  %v8504_v44 = vld [vmem:[#allocation23_spill] sm:$0xff] }
 0x72f   : > { %v3640_v41 = vpop.permute.xlu1 %3639  ;;  %v3325_v48 = vpop.permute.xlu0 %3324 }
 0x730   : > { %v3969_v14 = vmul.f32 %v3640_v41, %v7391_v12  ;;  %3389 = vperm.xlu1 %5316, %v2383_v24   ;;  %v3906_v29 = vmul.f32 %v3325_v48, %v7412_v22  ;;  %3074 = vperm.xlu0 %5315, %v2320_v13  }
 0x732   : > { %v4259_v57 = vmax.f32 %v7430_v11, %v3969_v14  ;;  %v7449_v4 = vmax.f32 %v4185_v51, %v3906_v29  ;;  %v8489_v11 = vld [vmem:[#allocation17_spill] sm:$0xff]  ;;  %v8491_v29 = vld [vmem:[#allocation82_spill] sm:$0xff] }
 0x733   : > { %v3485_v5 = vpop.permute.xlu1 %3484  ;;  %v3170_v7 = vpop.permute.xlu0 %3169  ;;  %v3734_v30 = vmul.f32 %v8489_v11, %v7164_v2  ;;  %v8490_v14 = vld [vmem:[#allocation81_spill] sm:$0xff] }
 0x734   : > { %v3938_v17 = vmul.f32 %v3485_v5, %v7412_v22  ;;  %3234 = vperm.xlu1 %5316, %v2352_v63   ;;  %v3875_v28 = vmul.f32 %v3170_v7, %v7428_v3  ;;  %3704 = vperm.xlu0 %5315, %v2446_v10   ;;  %v3797_v48 = vmul.f32 %v8490_v14, %v8483_v45  ;;  %v8492_v5 = vld [vmem:[#allocation19_spill] sm:$0xff] }
 0x735   : > { %v3989_v24 = vmax.f32 %v3988_v21, %v3734_v30  ;;  %v3796_v63 = vmul.f32 %v8491_v29, %v7151_v6  ;;  %v3798_v45 = vmul.f32 %v8494_v26, %v7164_v2  ;;  %v2385_v6 = vld [vmem:[%s8342_s6 + $0x5e8] sm:$0xff] }
 0x736   : > { %v7458_v33 = vmax.f32 %v4222_v0, %v3938_v17  ;;  %v4150_v51 = vmax.f32 %v7423_v8, %v3875_v28  ;;  %v3766_v8 = vmul.f32 %v8488_v27, %v7164_v2  ;;  %v7497_v0 = vld [vmem:[#allocation2 + $0x88] sm:$0xff]  ;;  %v3735_v17 = vmul.f32 %v8492_v5, %v7183_v50 }
 0x737   : > { %v3330_v19 = vpop.permute.xlu1 %3329  ;;  %v3015_v23 = vpop.permute.xlu0 %3014  ;;  %v4062_v2 = vmax.f32 %v3796_v63, %v3797_v48 }
 0x738   : > { %v3907_v16 = vmul.f32 %v3330_v19, %v7428_v3  ;;  %3079 = vperm.xlu1 %5316, %v2321_v18   ;;  %v3844_v54 = vmul.f32 %v3015_v23, %v7466_v60  ;;  %3549 = vperm.xlu0 %5315, %v2415_v36   ;;  %v4026_v41 = vmax.f32 %v4025_v59, %v3766_v8  ;;  %v8493_v18 = vld [vmem:[#allocation51_spill] sm:$0xff]  ;;  %v2322_v19 = vld [vmem:[%s8342_s6 + $0x3f0] sm:$0xff]  ;;  %v2448_v8 = vld [vmem:[%s8342_s6 + $0x7e0] sm:$0xff] }
 0x739   : > { %v3767_v56 = vmul.f32 %v8493_v18, %v7183_v50 }
 0x73a   : > { %v4187_v55 = vmax.f32 %v7449_v4, %v3907_v16  ;;  %v7483_v20 = vmax.f32 %v4113_v43, %v3844_v54  ;;  %v2353_v43 = vld [vmem:[%s8342_s6 + $0x4e8] sm:$0xff] }
 0x73b   : > { %v3175_v40 = vpop.permute.xlu1 %3174  ;;  %v3645_v34 = vpop.permute.xlu0 %3644  ;;  %v4027_v16 = vmax.f32 %v4026_v41, %v3767_v56  ;;  %v8500_v41 = vld [vmem:[#allocation86_spill] sm:$0xff] }
 0x73c   : > { %v3876_v32 = vmul.f32 %v3175_v40, %v7466_v60  ;;  %3709 = vperm.xlu1 %5316, %v2447_v35   ;;  %v3970_v39 = vmul.f32 %v3645_v34, %v7412_v22  ;;  %3394 = vperm.xlu0 %5315, %v2384_v52   ;;  %v4063_v35 = vmax.f32 %v4062_v2, %v3798_v45  ;;  %v2354_v52 = vld [vmem:[%s8342_s6 + $0x4f0] sm:$0xff]  ;;  %v8497_v40 = vld [vmem:[#allocation83_spill] sm:$0xff]  ;;  %v8498_v34 = vld [vmem:[#allocation21_spill] sm:$0xff] }
 0x73d   : > { %v3799_v11 = vmul.f32 %v8497_v40, %v7183_v50  ;;  %v3737_v59 = vmul.f32 %v8498_v34, %v7211_v53  ;;  %v3800_v14 = vmul.f32 %v8500_v41, %v7192_v62  ;;  %v2323_v50 = vld [vmem:[%s8342_s6 + $0x3f8] sm:$0xff]  ;;  %v7565_v56 = vld [vmem:[#allocation2 + $0x90] sm:$0xff] }
 0x73e   : > { %v7492_v13 = vmax.f32 %v4150_v51, %v3876_v32  ;;  %v7503_v10 = vmax.f32 %v4259_v57, %v3970_v39  ;;  %v3990_v57 = vmax.f32 %v3989_v24, %v3735_v17  ;;  %v8499_v24 = vld [vmem:[#allocation53_spill] sm:$0xff]  ;;  %v2355_v34 = vld [vmem:[%s8342_s6 + $0x4f8] sm:$0xff] }
 0x73f   : > { %v3020_v4 = vpop.permute.xlu1 %3019  ;;  %v3490_v28 = vpop.permute.xlu0 %3489  ;;  %v4064_v48 = vmax.f32 %v4063_v35, %v3799_v11  ;;  %v8506_v35 = vld [vmem:[#allocation88_spill] sm:$0xff] }
 0x740   : > { %v7508_v7 = vmul.f32 %v3020_v4, %v7497_v0  ;;  %3554 = vperm.xlu1 %5316, %v2416_v1   ;;  %v3939_v36 = vmul.f32 %v3490_v28, %v7428_v3  ;;  %3239 = vperm.xlu0 %5315, %v2353_v43   ;;  %v3991_v27 = vmax.f32 %v3990_v57, %v3736_v9  ;;  %v8501_v4 = vld [vmem:[#allocation56_spill] sm:$0xff]  ;;  %v2449_v57 = vld [vmem:[%s8342_s6 + $0x7e8] sm:$0xff] }
 0x741   : > { %v3769_v43 = vmul.f32 %v8499_v24, %v7211_v53  ;;  %v3770_v5 = vmul.f32 %v8501_v4, %v7228_v61  ;;  %v8502_v28 = vld [vmem:[#allocation24_spill] sm:$0xff]  ;;  %v3739_v9 = vmul.f32 %v8504_v44, %v7234_v38  ;;  %v4294_v44 = vld [vmem:[%s8344_s8 + $0x10] sm:$0xff] }
 0x742   : > { %v4115_v51 = vmax.f32 %v7483_v20, %v7508_v7  ;;  %v4224_v23 = vmax.f32 %v7458_v33, %v3939_v36  ;;  %v4028_v20 = vmax.f32 %v4027_v16, %v3768_v31  ;;  %v3738_v18 = vmul.f32 %v8502_v28, %v7228_v61  ;;  %v8503_v16 = vld [vmem:[#allocation85_spill] sm:$0xff]  ;;  %v2450_v28 = vld [vmem:[%s8342_s6 + $0x7f0] sm:$0xff] }
 0x743   : > { %v3650_v46 = vpop.permute.xlu1 %3649  ;;  %v3335_v54 = vpop.permute.xlu0 %3334  ;;  %v4065_v36 = vmax.f32 %v4064_v48, %v3800_v14  ;;  %v3801_v2 = vmul.f32 %v8503_v16, %v7211_v53  ;;  %v4398_v53 = vld [vmem:[%s8346_s10] sm:$0xff] }
 0x744   : > { %v7529_v42 = vmul.f32 %v3650_v46, %v7428_v3  ;;  %3399 = vperm.xlu1 %5316, %v2385_v6   ;;  %v3908_v21 = vmul.f32 %v3335_v54, %v7466_v60  ;;  %3084 = vperm.xlu0 %5315, %v2322_v19   ;;  %v4029_v17 = vmax.f32 %v4028_v20, %v3769_v43  ;;  %v4292_v48 = vld [vmem:[%s8344_s8] sm:$0xff] }
 0x746   : > { %v4261_v33 = vmax.f32 %v7503_v10, %v7529_v42  ;;  %v7542_v30 = vmax.f32 %v4187_v55, %v3908_v21  ;;  %v3992_v55 = vmax.f32 %v3991_v27, %v3737_v59  ;;  %v2417_v10 = vld [vmem:[%s8342_s6 + $0x6e8] sm:$0xff]  ;;  %v4030_v31 = vmax.f32 %v4029_v17, %v3770_v5  ;;  %v8505_v42 = vld [vmem:[#allocation55_spill] sm:$0xff]  ;;  %v4400_v5 = vld [vmem:[%s8346_s10 + $0x10] sm:$0xff] }
 0x747   : > { %v3495_v32 = vpop.permute.xlu1 %3494  ;;  %v3180_v1 = vpop.permute.xlu0 %3179  ;;  %v3771_v54 = vmul.f32 %v8505_v42, %v7234_v38  ;;  %v3802_v21 = vmul.f32 %v8506_v35, %v7228_v61  ;;  %v2418_v61 = vld [vmem:[%s8342_s6 + $0x6f0] sm:$0xff]  ;;  %v8362_v59 = vmov 0.0   ;;  %v4401_v17 = vld [vmem:[%s8346_s10 + $0x18] sm:$0xff]  ;;  %v8511_v42 = vld [vmem:[#allocation57_spill] sm:$0xff] }
 0x748   : > { %v3940_v39 = vmul.f32 %v3495_v32, %v7466_v60  ;;  %3244 = vperm.xlu1 %5316, %v2354_v52   ;;  %v3877_v29 = vmul.f32 %v3180_v1, %v7497_v0  ;;  %3714 = vperm.xlu0 %5315, %v2448_v8   ;;  %v4066_v8 = vmax.f32 %v4065_v36, %v3801_v2  ;;  %v8507_v1 = vld [vmem:[#allocation58_spill] sm:$0xff] }
 0x749   : > { %5026 = vmatprep.subr.bf16.mxu1 %v8362_v59  ;;  %5006 = vmatprep.subr.bf16.mxu0 %v8362_v59  ;;  %v3772_v24 = vmul.f32 %v8507_v1, %v7312_v25  ;;  %v4031_v43 = vmax.f32 %v4030_v31, %v3771_v54  ;;  %v8510_v31 = vld [vmem:[#allocation87_spill] sm:$0xff]  ;;  %v3773_v54 = vmul.f32 %v8511_v42, %v7326_v15 }
 0x74a   : > { %v7555_v63 = vmax.f32 %v4224_v23, %v3940_v39  ;;  %v4152_v62 = vmax.f32 %v7492_v13, %v3877_v29  ;;  %v3993_v13 = vmax.f32 %v3992_v55, %v3738_v18  ;;  %v7607_v39 = vld [vmem:[#allocation2 + $0x98] sm:$0xff]  ;;  %v4293_v29 = vld [vmem:[%s8344_s8 + $0x8] sm:$0xff]  ;;  %v4415_v18 = vpack.c.bf16 %v4401_v17, %v4400_v5  ;;  %5042 = vmatprep.mubr.msk.bf16.mxu1 %vm5432_vm3, %v8362_v59 }
 0x74b   : > { %v3340_v7 = vpop.permute.xlu1 %3339  ;;  %v3025_v45 = vpop.permute.xlu0 %3024  ;;  %v3803_v16 = vmul.f32 %v8510_v31, %v7234_v38  ;;  %v4299_v31 = vld [vmem:[%s8344_s8 + $0x38] sm:$0xff]  ;;  %5022 = vmatprep.mubr.msk.bf16.mxu0 %vm5432_vm3, %v8362_v59 }
 0x74c   : > { %v7568_v26 = vmul.f32 %v3340_v7, %v7497_v0  ;;  %3089 = vperm.xlu1 %5316, %v2323_v50   ;;  %v3846_v6 = vmul.f32 %v3025_v45, %v7565_v56  ;;  %3559 = vperm.xlu0 %5315, %v2417_v10   ;;  %v3994_v11 = vmax.f32 %v3993_v13, %v3739_v9  ;;  %v8508_v50 = vld [vmem:[#allocation26_spill] sm:$0xff]  ;;  %v8509_v45 = vld [vmem:[#allocation25_spill] sm:$0xff]  ;;  %v2387_v13 = vld [vmem:[%s8342_s6 + $0x5f8] sm:$0xff] }
 0x74d   : > { %v3740_v55 = vmul.f32 %v8508_v50, %v7312_v25  ;;  %v3741_v36 = vmul.f32 %v8509_v45, %v7326_v15  ;;  %v4295_v9 = vld [vmem:[%s8344_s8 + $0x18] sm:$0xff]  ;;  %v8514_v50 = vld [vmem:[#allocation28_spill] sm:$0xff]  ;;  %v8515_v45 = vld [vmem:[#allocation89_spill] sm:$0xff] }
 0x74e   : > { %v4189_v19 = vmax.f32 %v7542_v30, %v7568_v26  ;;  %v7581_v23 = vmax.f32 %v4115_v51, %v3846_v6  ;;  %v4399_v51 = vld [vmem:[%s8346_s10 + $0x8] sm:$0xff] }
 0x74f   : > { %v3185_v46 = vpop.permute.xlu1 %3184  ;;  %v3655_v27 = vpop.permute.xlu0 %3654  ;;  %v4414_v40 = vpack.c.bf16 %v4399_v51, %v4398_v53  ;;  %v3995_v6 = vmax.f32 %v3994_v11, %v3740_v55  ;;  %v3742_v55 = vmul.f32 %v8514_v50, %v7342_v49 }
 0x750   : > { %v3878_v52 = vmul.f32 %v3185_v46, %v7565_v56  ;;  %3719 = vperm.xlu1 %5316, %v2449_v57   ;;  %v3972_v20 = vmul.f32 %v3655_v27, %v7466_v60  ;;  %3404 = vperm.xlu0 %5315, %v2386_v37   ;;  %v4032_v37 = vmax.f32 %v4031_v43, %v3772_v24  ;;  %v8512_v27 = vld [vmem:[#allocation90_spill] sm:$0xff] }
 0x751   : > { %5027 = vmatpush3.bf16.msra.mxu1 %v4414_v40  ;;  %v3804_v53 = vmul.f32 %v8512_v27, %v7312_v25  ;;  %v3996_v40 = vmax.f32 %v3995_v6, %v3741_v36  ;;  %v8513_v25 = vld [vmem:[#allocation60_spill] sm:$0xff]  ;;  %v3805_v36 = vmul.f32 %v8515_v45, %v7326_v15  ;;  %v8517_v15 = vld [vmem:[#allocation59_spill] sm:$0xff] }
 0x752   : > { %v7600_v32 = vmax.f32 %v4152_v62, %v3878_v52  ;;  %v7611_v41 = vmax.f32 %v4261_v33, %v3972_v20  ;;  %v4308_v33 = vpack.c.bf16 %v4293_v29, %v4292_v48  ;;  %5028 = vmatprep.subr.bf16.mxu1 %v8362_v59  ;;  %v4067_v62 = vmax.f32 %v4066_v8, %v3802_v21  ;;  %v4402_v21 = vld [vmem:[%s8346_s10 + $0x20] sm:$0xff]  ;;  %v4403_v52 = vld [vmem:[%s8346_s10 + $0x28] sm:$0xff]  ;;  %v2451_v20 = vld [vmem:[%s8342_s6 + $0x7f8] sm:$0xff] }
 0x753   : > { %v3030_v14 = vpop.permute.xlu1 %3029  ;;  %v3500_v4 = vpop.permute.xlu0 %3499  ;;  %v3774_v1 = vmul.f32 %v8513_v25, %v7342_v49  ;;  %v4033_v24 = vmax.f32 %v4032_v37, %v3773_v54  ;;  %v4296_v48 = vld [vmem:[%s8344_s8 + $0x20] sm:$0xff]  ;;  %v4297_v29 = vld [vmem:[%s8344_s8 + $0x28] sm:$0xff]  ;;  %v4298_v37 = vld [vmem:[%s8344_s8 + $0x30] sm:$0xff] }
 0x754   : > { %v7622_v10 = vmul.f32 %v3030_v14, %v7607_v39  ;;  %3564 = vperm.xlu1 %5316, %v2418_v61   ;;  %v3941_v7 = vmul.f32 %v3500_v4, %v7497_v0  ;;  %3249 = vperm.xlu0 %5315, %v2355_v34   ;;  %v4068_v51 = vmax.f32 %v4067_v62, %v3803_v16  ;;  %v2419_v34 = vld [vmem:[%s8342_s6 + $0x6f8] sm:$0xff]  ;;  %v4406_v54 = vld [vmem:[%s8346_s10 + $0x40] sm:$0xff] }
 0x755   : > { %5007 = vmatpush3.bf16.msra.mxu0 %v4308_v33  ;;  %5029 = vmatpush3.bf16.msra.mxu1 %v4415_v18  ;;  %v4416_v61 = vpack.c.bf16 %v4403_v52, %v4402_v21  ;;  %v4310_v26 = vpack.c.bf16 %v4297_v29, %v4296_v48  ;;  %v4405_v33 = vld [vmem:[%s8346_s10 + $0x38] sm:$0xff]  ;;  %v4034_v18 = vmax.f32 %v4033_v24, %v3774_v1  ;;  %v4301_v1 = vld [vmem:[%s8344_s8 + $0x48] sm:$0xff]  ;;  %v8520_v24 = vld [vmem:[#allocation30_spill] sm:$0xff] }
 0x756   : > { %v4117_v57 = vmax.f32 %v7581_v23, %v7622_v10  ;;  %v4226_v2 = vmax.f32 %v7555_v63, %v3941_v7  ;;  %5008 = vmatprep.subr.bf16.mxu0 %v8362_v59  ;;  %v4309_v63 = vpack.c.bf16 %v4295_v9, %v4294_v44  ;;  %5030 = vmatprep.subr.bf16.mxu1 %v8362_v59  ;;  %v8516_v16 = vld [vmem:[#allocation27_spill] sm:$0xff] }
 0x757   : > { %v3660_v46 = vpop.permute.xlu1 %3659  ;;  %v3345_v38 = vpop.permute.xlu0 %3344  ;;  %v4069_v5 = vmax.f32 %v4068_v51, %v3804_v53  ;;  %v3997_v7 = vmax.f32 %v3996_v40, %v3742_v55  ;;  %v4311_v42 = vpack.c.bf16 %v4299_v31, %v4298_v37  ;;  %v4409_v29 = vld [vmem:[%s8346_s10 + $0x58] sm:$0xff]  ;;  %v4410_v37 = vld [vmem:[%s8346_s10 + $0x60] sm:$0xff]  ;;  %v4411_v31 = vld [vmem:[%s8346_s10 + $0x68] sm:$0xff] }
 0x758   : > { %v7655_v35 = vmul.f32 %v3660_v46, %v7497_v0  ;;  %3724 = vperm.xlu1 %5316, %v2450_v28   ;;  %v3910_v8 = vmul.f32 %v3345_v38, %v7565_v56  ;;  %3409 = vperm.xlu0 %5315, %v2387_v13   ;;  %v7714_v46 = vld [vmem:[#allocation2 + $0xa0] sm:$0xff]  ;;  %v4407_v38 = vld [vmem:[%s8346_s10 + $0x48] sm:$0xff]  ;;  %v4303_v45 = vld [vmem:[%s8344_s8 + $0x58] sm:$0xff] }
 0x759   : > { %5009 = vmatpush3.bf16.msra.mxu0 %v4309_v63  ;;  %5031 = vmatpush3.bf16.msra.mxu1 %v4416_v61  ;;  %v8518_v63 = vld [vmem:[#allocation92_spill] sm:$0xff]  ;;  %v4070_v52 = vmax.f32 %v4069_v5, %v3805_v36  ;;  %v4418_v53 = vpack.c.bf16 %v4407_v38, %v4406_v54  ;;  %v8521_v5 = vld [vmem:[#allocation91_spill] sm:$0xff]  ;;  %v8522_v36 = vld [vmem:[#allocation29_spill] sm:$0xff] }
 0x75a   : > { %v4263_v11 = vmax.f32 %v7611_v41, %v7655_v35  ;;  %v7680_v43 = vmax.f32 %v4189_v19, %v3910_v8  ;;  %5010 = vmatprep.subr.bf16.mxu0 %v8362_v59  ;;  %5032 = vmatprep.subr.bf16.mxu1 %v8362_v59  ;;  %v4404_v19 = vld [vmem:[%s8346_s10 + $0x30] sm:$0xff]  ;;  %v3806_v21 = vmul.f32 %v8518_v63, %v7342_v49  ;;  %v4300_v49 = vld [vmem:[%s8344_s8 + $0x40] sm:$0xff] }
 0x75b   : > { %v3505_v14 = vpop.permute.xlu1 %3504  ;;  %v3190_v30 = vpop.permute.xlu0 %3189  ;;  %v4417_v62 = vpack.c.bf16 %v4405_v33, %v4404_v19  ;;  %v4312_v10 = vpack.c.bf16 %v4301_v1, %v4300_v49  ;;  %v7760_v19 = vld [vmem:[#allocation2 + $0xa8] sm:$0xff]  ;;  %v8525_v38 = vld [vmem:[#allocation64_spill] sm:$0xff]  ;;  %v4413_v49 = vld [vmem:[%s8346_s10 + $0x78] sm:$0xff] }
 0x75c   : > { %v3942_v4 = vmul.f32 %v3505_v14, %v7565_v56  ;;  %3729 = vperm.xlu1 %5316, %v2451_v20   ;;  %v3879_v17 = vmul.f32 %v3190_v30, %v7607_v39  ;;  %3569 = vperm.xlu0 %5315, %v2419_v34   ;;  %v8519_v20 = vld [vmem:[#allocation62_spill] sm:$0xff]  ;;  %v3744_v14 = vmul.f32 %v8520_v24, %v7370_v47 }
 0x75d   : > { %5011 = vmatpush3.bf16.msra.mxu0 %v4310_v26  ;;  %5033 = vmatpush3.bf16.msra.mxu1 %v4417_v62  ;;  %v3776_v61 = vmul.f32 %v8519_v20, %v7370_v47  ;;  %v4071_v50 = vmax.f32 %v4070_v52, %v3806_v21  ;;  %v3778_v63 = vmul.f32 %v8525_v38, %v7412_v22 }
 0x75e   : > { %v7700_v28 = vmax.f32 %v4226_v2, %v3942_v4  ;;  %v4154_v6 = vmax.f32 %v7600_v32, %v3879_v17  ;;  %5012 = vmatprep.subr.bf16.mxu0 %v8362_v59  ;;  %v3743_v2 = vmul.f32 %v8516_v16, %v7354_v58  ;;  %v3775_v32 = vmul.f32 %v8517_v15, %v7354_v58  ;;  %v8524_v16 = vld [vmem:[#allocation94_spill] sm:$0xff] }
 0x75f   : > { %v3350_v13 = vpop.permute.xlu1 %3349  ;;  %v3035_v9 = vpop.permute.xlu0 %3034  ;;  %5034 = vmatprep.subr.bf16.mxu1 %v8362_v59  ;;  %v3807_v17 = vmul.f32 %v8521_v5, %v7354_v58  ;;  %v3745_v58 = vmul.f32 %v8522_v36, %v7391_v12  ;;  %v8528_v5 = vld [vmem:[#allocation31_spill] sm:$0xff] }
 0x760   : > { %v7719_v44 = vmul.f32 %v3350_v13, %v7607_v39  ;;  %v3848_v27 = vmul.f32 %v3035_v9, %v7714_v46  ;;  %v3998_v51 = vmax.f32 %v3997_v7, %v3743_v2  ;;  %v4035_v40 = vmax.f32 %v4034_v18, %v3775_v32  ;;  %v4302_v18 = vld [vmem:[%s8344_s8 + $0x50] sm:$0xff]  ;;  %v8530_v36 = vld [vmem:[#allocation63_spill] sm:$0xff] }
 0x761   : > { %5013 = vmatpush3.bf16.msra.mxu0 %v4311_v42  ;;  %5035 = vmatpush3.bf16.msra.mxu1 %v4418_v53  ;;  %v4313_v13 = vpack.c.bf16 %v4303_v45, %v4302_v18  ;;  %v3808_v2 = vmul.f32 %v8524_v16, %v7370_v47  ;;  %v4072_v15 = vmax.f32 %v4071_v50, %v3807_v17  ;;  %v4304_v47 = vld [vmem:[%s8344_s8 + $0x60] sm:$0xff]  ;;  %v4305_v53 = vld [vmem:[%s8344_s8 + $0x68] sm:$0xff] }
 0x762   : > { %v4191_v8 = vmax.f32 %v7680_v43, %v7719_v44  ;;  %v7738_v34 = vmax.f32 %v4117_v57, %v3848_v27  ;;  %5014 = vmatprep.subr.bf16.mxu0 %v8362_v59  ;;  %5036 = vmatprep.subr.bf16.mxu1 %v8362_v59  ;;  %v4408_v57 = vld [vmem:[%s8346_s10 + $0x50] sm:$0xff]  ;;  %v3999_v30 = vmax.f32 %v3998_v51, %v3744_v14  ;;  %v8526_v51 = vld [vmem:[#allocation32_spill] sm:$0xff] }
 0x763   : > { %v3195_v25 = vpop.permute.xlu1 %3194  ;;  %v3665_v23 = vpop.permute.xlu0 %3664  ;;  %v4419_v4 = vpack.c.bf16 %v4409_v29, %v4408_v57  ;;  %v4036_v33 = vmax.f32 %v4035_v40, %v3776_v61  ;;  %v4420_v9 = vpack.c.bf16 %v4411_v31, %v4410_v37  ;;  %v3746_v20 = vmul.f32 %v8526_v51, %v7412_v22  ;;  %v8527_v57 = vld [vmem:[#allocation93_spill] sm:$0xff]  ;;  %v8531_v37 = vld [vmem:[#allocation66_spill] sm:$0xff] }
 0x764   : > { %v3880_v48 = vmul.f32 %v3195_v25, %v7714_v46  ;;  %v3974_v55 = vmul.f32 %v3665_v23, %v7565_v56  ;;  %v4000_v42 = vmax.f32 %v3999_v30, %v3745_v58  ;;  %v4412_v25 = vld [vmem:[%s8346_s10 + $0x70] sm:$0xff]  ;;  %v4073_v1 = vmax.f32 %v4072_v15, %v3808_v2  ;;  %v4307_v30 = vld [vmem:[%s8344_s8 + $0x78] sm:$0xff]  ;;  %v4472_v51 = vld [vmem:[%s8534_s15 + $0x8] sm:$0xff] }
 0x765   : > { %5015 = vmatpush3.bf16.msra.mxu0 %v4312_v10  ;;  %5037 = vmatpush3.bf16.msra.mxu1 %v4419_v4  ;;  %v4421_v14 = vpack.c.bf16 %v4413_v49, %v4412_v25  ;;  %v3809_v29 = vmul.f32 %v8527_v57, %v7391_v12  ;;  %v4306_v4 = vld [vmem:[%s8344_s8 + $0x70] sm:$0xff]  ;;  %v3747_v17 = vmul.f32 %v8528_v5, %v7428_v3 }
 0x766   : > { %v7758_v26 = vmax.f32 %v4154_v6, %v3880_v48  ;;  %v7767_v62 = vmax.f32 %v4263_v11, %v3974_v55  ;;  %5016 = vmatprep.subr.bf16.mxu0 %v8362_v59  ;;  %v8523_v6 = vld [vmem:[#allocation61_spill] sm:$0xff]  ;;  %5038 = vmatprep.subr.bf16.mxu1 %v8362_v59  ;;  %v4001_v48 = vmax.f32 %v4000_v42, %v3746_v20 }
 0x767   : > { %v3040_v7 = vpop.permute.xlu1 %3039  ;;  %v3777_v41 = vmul.f32 %v8523_v6, %v7391_v12  ;;  %v3510_v11 = vpop.permute.xlu0 %3509  ;;  %v4396_v12 = vld [vmem:[%s8343_s7] sm:$0xff]  ;;  %v4074_v18 = vmax.f32 %v4073_v1, %v3809_v29  ;;  %v3779_v58 = vmul.f32 %v8530_v36, %v7428_v3  ;;  %v3780_v31 = vmul.f32 %v8531_v37, %v7466_v60  ;;  %v8537_v1 = vld [vmem:[#allocation65_spill] sm:$0xff] }
 0x768   : > { %v7781_v35 = vmul.f32 %v3040_v7, %v7760_v19  ;;  %v3943_v32 = vmul.f32 %v3510_v11, %v7607_v39 }
 0x769   : > { %5017 = vmatpush3.bf16.msra.mxu0 %v4313_v13  ;;  %v4037_v21 = vmax.f32 %v4036_v33, %v3777_v41  ;;  %5039 = vmatpush3.bf16.msra.mxu1 %v4420_v9  ;;  %v4397_v33 = vpack.c.bf16 %v4396_v12, %v4396_v12  ;;  %v4002_v41 = vmax.f32 %v4001_v48, %v3747_v17 }
 0x76a   : > { %v4119_v54 = vmax.f32 %v7738_v34, %v7781_v35  ;;  %v4228_v52 = vmax.f32 %v7700_v28, %v3943_v32  ;;  %5018 = vmatprep.subr.bf16.mxu0 %v8362_v59  ;;  %v4314_v28 = vpack.c.bf16 %v4305_v53, %v4304_v47  ;;  %5040 = vmatprep.subr.bf16.mxu1 %v8362_v59  ;;  %v8532_v32 = vld [vmem:[#allocation34_spill] sm:$0xff]  ;;  %v4471_v53 = vld [vmem:[%s8534_s15] sm:$0xff] }
 0x76b   : > { %v3670_v27 = vpop.permute.xlu1 %3669  ;;  %v3355_v40 = vpop.permute.xlu0 %3354  ;;  %v4038_v10 = vmax.f32 %v4037_v21, %v3778_v63  ;;  %v3748_v9 = vmul.f32 %v8532_v32, %v7466_v60  ;;  %v8533_v21 = vld [vmem:[#allocation95_spill] sm:$0xff]  ;;  %v8536_v34 = vld [vmem:[#allocation98_spill] sm:$0xff] }
 0x76c   : > { %v7808_v61 = vmul.f32 %v3670_v27, %v7607_v39  ;;  %v3912_v24 = vmul.f32 %v3355_v40, %v7714_v46  ;;  %v3812_v35 = vmul.f32 %v8536_v34, %v7466_v60  ;;  %v4473_v60 = vld [vmem:[%s8534_s15 + $0x10] sm:$0xff] }
 0x76d   : > { %5019 = vmatpush3.bf16.msra.mxu0 %v4314_v28  ;;  %5041 = vmatpush3.bf16.msra.mxu1 %v4421_v14  ;;  %v4039_v16 = vmax.f32 %v4038_v10, %v3779_v58  ;;  %v4003_v63 = vmax.f32 %v4002_v41, %v3748_v9  ;;  %v4487_v28 = vpack.c.bf16 %v4472_v51, %v4471_v53  ;;  %v7888_v10 = vld [vmem:[#allocation2 + $0xb8] sm:$0xff]  ;;  %v4475_v58 = vld [vmem:[%s8534_s15 + $0x20] sm:$0xff]  ;;  %v4476_v41 = vld [vmem:[%s8534_s15 + $0x28] sm:$0xff] }
 0x76e   : > { %v4265_v23 = vmax.f32 %v7767_v62, %v7808_v61  ;;  %v7825_v50 = vmax.f32 %v4191_v8, %v3912_v24  ;;  %5020 = vmatprep.subr.bf16.mxu0 %v8362_v59  ;;  %v4315_v8 = vpack.c.bf16 %v4307_v30, %v4306_v4  ;;  %v8529_v62 = vld [vmem:[#allocation96_spill] sm:$0xff]  ;;  %5066 = vmatprep.subr.bf16.mxu1 %v8362_v59  ;;  %v8543_v9 = vld [vmem:[#allocation67_spill] sm:$0xff] }
 0x76f   : > { %v3515_v55 = vpop.permute.xlu1 %3514  ;;  %v3200_v44 = vpop.permute.xlu0 %3199  ;;  %v3810_v7 = vmul.f32 %v8529_v62, %v7412_v22  ;;  %v7856_v22 = vld [vmem:[#allocation2 + $0xb0] sm:$0xff]  ;;  %v4040_v20 = vmax.f32 %v4039_v16, %v3780_v31  ;;  %v3781_v24 = vmul.f32 %v8537_v1, %v7497_v0  ;;  %v4489_v31 = vpack.c.bf16 %v4476_v41, %v4475_v58  ;;  %v8542_v16 = vld [vmem:[#allocation100_spill] sm:$0xff] }
 0x770   : > { %v3944_v43 = vmul.f32 %v3515_v55, %v7714_v46  ;;  %v3881_v45 = vmul.f32 %v3200_v44, %v7760_v19  ;;  %5043 = vmatmul.mubr.bf16.vlgmr.msra.gmra.mrb[0].mxu1 %v4397_v33  ;;  %v8538_v55 = vld [vmem:[#allocation68_spill] sm:$0xff] }
 0x771   : > { %5021 = vmatpush3.bf16.msra.mxu0 %v4315_v8  ;;  %5082 = vmatprep.mubr.msk.bf16.mxu1 %vm5432_vm3, %v8362_v59  ;;  %v4075_v42 = vmax.f32 %v4074_v18, %v3810_v7  ;;  %v3782_v4 = vmul.f32 %v8538_v55, %v7565_v56  ;;  %v4041_v30 = vmax.f32 %v4040_v20, %v3781_v24  ;;  %v8539_v44 = vld [vmem:[#allocation36_spill] sm:$0xff]  ;;  %v8540_v7 = vld [vmem:[#allocation97_spill] sm:$0xff] }
 0x772   : > { %v7850_v6 = vmax.f32 %v4228_v52, %v3944_v43  ;;  %v4156_v11 = vmax.f32 %v7758_v26, %v3881_v45  ;;  %5046 = vmatprep.subr.bf16.mxu0 %v8362_v59  ;;  %v3811_v52 = vmul.f32 %v8533_v21, %v7428_v3  ;;  %v8535_v3 = vld [vmem:[#allocation33_spill] sm:$0xff]  ;;  %5067 = vmatpush3.bf16.msra.mxu1 %v4487_v28  ;;  %v4479_v24 = vld [vmem:[%s8534_s15 + $0x40] sm:$0xff] }
 0x773   : > { %v3360_v13 = vpop.permute.xlu1 %3359  ;;  %v3045_v15 = vpop.permute.xlu0 %3044  ;;  %v3749_v25 = vmul.f32 %v8535_v3, %v7497_v0  ;;  %5068 = vmatprep.subr.bf16.mxu1 %v8362_v59  ;;  %v3750_v8 = vmul.f32 %v8539_v44, %v7565_v56  ;;  %v3813_v18 = vmul.f32 %v8540_v7, %v7497_v0  ;;  %v8541_v0 = vld [vmem:[#allocation35_spill] sm:$0xff]  ;;  %v8545_v3 = vld [vmem:[#allocation38_spill] sm:$0xff]  ;;  %v8548_v44 = vld [vmem:[#allocation37_spill] sm:$0xff] }
 0x774   : > { %v3913_v2 = vmul.f32 %v3360_v13, %v7760_v19  ;;  %v3850_v26 = vmul.f32 %v3045_v15, %v7856_v22  ;;  %v8550_v58 = vld [vmem:[#allocation72_spill] sm:$0xff] }
 0x775   : > { %v4004_v48 = vmax.f32 %v4003_v63, %v3749_v25  ;;  %v3752_v25 = vmul.f32 %v8545_v3, %v7714_v46  ;;  %v3786_v41 = vmul.f32 %v8550_v58, %v7856_v22 }
 0x776   : > { %v4193_v38 = vmax.f32 %v7825_v50, %v3913_v2  ;;  %v7870_v27 = vmax.f32 %v4119_v54, %v3850_v26  ;;  %v4076_v54 = vmax.f32 %v4075_v42, %v3811_v52  ;;  %v4474_v50 = vld [vmem:[%s8534_s15 + $0x18] sm:$0xff]  ;;  %v3814_v2 = vmul.f32 %v8542_v16, %v7565_v56  ;;  %v4477_v56 = vld [vmem:[%s8534_s15 + $0x30] sm:$0xff]  ;;  %v8552_v16 = vld [vmem:[#allocation101_spill] sm:$0xff] }
 0x777   : > { %v3205_v47 = vpop.permute.xlu1 %3204  ;;  %v3675_v40 = vpop.permute.xlu0 %3674  ;;  %v4005_v62 = vmax.f32 %v4004_v48, %v3750_v8  ;;  %v3783_v42 = vmul.f32 %v8543_v9, %v7607_v39  ;;  %v4480_v48 = vld [vmem:[%s8534_s15 + $0x48] sm:$0xff]  ;;  %v3753_v8 = vmul.f32 %v8548_v44, %v7760_v19 }
 0x778   : > { %v3882_v61 = vmul.f32 %v3205_v47, %v7856_v22  ;;  %v3976_v49 = vmul.f32 %v3675_v40, %v7714_v46  ;;  %v4077_v33 = vmax.f32 %v4076_v54, %v3812_v35  ;;  %v8544_v47 = vld [vmem:[#allocation70_spill] sm:$0xff]  ;;  %v8546_v35 = vld [vmem:[#allocation99_spill] sm:$0xff] }
 0x779   : > { %v3784_v53 = vmul.f32 %v8544_v47, %v7714_v46  ;;  %v3815_v54 = vmul.f32 %v8546_v35, %v7607_v39  ;;  %v8557_v35 = vld [vmem:[#allocation42_spill] sm:$0xff] }
 0x77a   : > { %v7886_v14 = vmax.f32 %v4156_v11, %v3882_v61  ;;  %v7890_v57 = vmax.f32 %v4265_v23, %v3976_v49  ;;  %v4488_v23 = vpack.c.bf16 %v4474_v50, %v4473_v60  ;;  %v4042_v11 = vmax.f32 %v4041_v30, %v3782_v4  ;;  %v7958_v60 = vld [vmem:[#allocation2 + $0xc0] sm:$0xff]  ;;  %v8547_v30 = vld [vmem:[#allocation102_spill] sm:$0xff] }
 0x77b   : > { %v3050_v29 = vpop.permute.xlu1 %3049  ;;  %v3520_v43 = vpop.permute.xlu0 %3519  ;;  %v4078_v15 = vmax.f32 %v4077_v33, %v3813_v18  ;;  %v4491_v4 = vpack.c.bf16 %v4480_v48, %v4479_v24  ;;  %v8549_v33 = vld [vmem:[#allocation69_spill] sm:$0xff]  ;;  %v8558_v24 = vld [vmem:[#allocation103_spill] sm:$0xff] }
 0x77c   : > { %v3851_v12 = vmul.f32 %v3050_v29, %v7888_v10  ;;  %v3945_v5 = vmul.f32 %v3520_v43, %v7760_v19  ;;  %5069 = vmatpush3.bf16.msra.mxu1 %v4488_v23  ;;  %v4043_v51 = vmax.f32 %v4042_v11, %v3783_v42  ;;  %v3819_v48 = vmul.f32 %v8558_v24, %v7888_v10 }
 0x77d   : > { %5070 = vmatprep.subr.bf16.mxu1 %v8362_v59  ;;  %v4079_v40 = vmax.f32 %v4078_v15, %v3814_v2  ;;  %v3817_v2 = vmul.f32 %v8552_v16, %v7760_v19  ;;  %v8564_v16 = vld [vmem:[#allocation105_spill] sm:$0xff] }
 0x77e   : > { %v4121_v17 = vmax.f32 %v7870_v27, %v3851_v12  ;;  %v4230_v45 = vmax.f32 %v7850_v6, %v3945_v5  ;;  %v3751_v6 = vmul.f32 %v8541_v0, %v7607_v39  ;;  %v4478_v27 = vld [vmem:[%s8534_s15 + $0x38] sm:$0xff]  ;;  %v4044_v50 = vmax.f32 %v4043_v51, %v3784_v53  ;;  %v8551_v0 = vld [vmem:[#allocation40_spill] sm:$0xff] }
 0x77f   : > { %v3680_v36 = vpop.permute.xlu1 %3679  ;;  %v3365_v37 = vpop.permute.xlu0 %3364  ;;  %v3816_v12 = vmul.f32 %v8547_v30, %v7714_v46  ;;  %v4080_v43 = vmax.f32 %v4079_v40, %v3815_v54  ;;  %v3785_v5 = vmul.f32 %v8549_v33, %v7760_v19  ;;  %v4481_v46 = vld [vmem:[%s8534_s15 + $0x50] sm:$0xff]  ;;  %v8555_v53 = vld [vmem:[#allocation71_spill] sm:$0xff]  ;;  %v3756_v54 = vmul.f32 %v8557_v35, %v7958_v60 }
 0x780   : > { %v7917_v13 = vmul.f32 %v3680_v36, %v7760_v19  ;;  %v3914_v32 = vmul.f32 %v3365_v37, %v7856_v22  ;;  %5071 = vmatpush3.bf16.msra.mxu1 %v4489_v31  ;;  %v4006_v63 = vmax.f32 %v4005_v62, %v3751_v6  ;;  %v3754_v6 = vmul.f32 %v8551_v0, %v7856_v22  ;;  %v8559_v30 = vld [vmem:[#allocation106_spill] sm:$0xff] }
 0x781   : > { %5072 = vmatprep.subr.bf16.mxu1 %v8362_v59  ;;  %v4045_v11 = vmax.f32 %v4044_v50, %v3785_v5  ;;  %v4081_v31 = vmax.f32 %v4080_v43, %v3816_v12  ;;  %v3787_v51 = vmul.f32 %v8555_v53, %v7888_v10  ;;  %v3820_v12 = vmul.f32 %v8559_v30, %v7958_v60  ;;  %v8024_v5 = vld [vmem:[#allocation2 + $0xd0] sm:$0xff]  ;;  %v8566_v53 = vld [vmem:[#allocation43_spill] sm:$0xff] }
 0x782   : > { %v7928_v21 = vmax.f32 %v4193_v38, %v3914_v32  ;;  %v4490_v38 = vpack.c.bf16 %v4478_v27, %v4477_v56  ;;  %v4007_v29 = vmax.f32 %v4006_v63, %v3752_v25  ;;  %v8553_v63 = vld [vmem:[#allocation104_spill] sm:$0xff]  ;;  %v8554_v27 = vld [vmem:[#allocation39_spill] sm:$0xff]  ;;  %v8568_v35 = vld [vmem:[#allocation78_spill] sm:$0xff] }
 0x783   : > { %v3525_v52 = vpop.permute.xlu1 %3524  ;;  %v3210_v61 = vpop.permute.xlu0 %3209  ;;  %v4046_v9 = vmax.f32 %v4045_v11, %v3786_v41  ;;  %v4082_v56 = vmax.f32 %v4081_v31, %v3817_v2  ;;  %v3755_v47 = vmul.f32 %v8554_v27, %v7888_v10  ;;  %v8563_v31 = vld [vmem:[#allocation44_spill] sm:$0xff] }
 0x784   : > { %v3946_v20 = vmul.f32 %v3525_v52, %v7856_v22  ;;  %v7941_v28 = vmul.f32 %v3210_v61, %v7888_v10  ;;  %5073 = vmatpush3.bf16.msra.mxu1 %v4490_v38  ;;  %v4008_v36 = vmax.f32 %v4007_v29, %v3753_v8  ;;  %v3818_v52 = vmul.f32 %v8553_v63, %v7856_v22  ;;  %v8556_v61 = vld [vmem:[#allocation74_spill] sm:$0xff]  ;;  %v8561_v8 = vld [vmem:[#allocation73_spill] sm:$0xff] }
 0x785   : > { %5074 = vmatprep.subr.bf16.mxu1 %v8362_v59  ;;  %v3788_v38 = vmul.f32 %v8556_v61, %v7958_v60  ;;  %v4047_v40 = vmax.f32 %v4046_v9, %v3787_v51  ;;  %v3758_v0 = vmul.f32 %v8563_v31, %v8024_v5 }
 0x786   : > { %v7945_v34 = vmax.f32 %v4230_v45, %v3946_v20  ;;  %v4158_v49 = vmax.f32 %v7886_v14, %v7941_v28  ;;  %v4482_v45 = vld [vmem:[%s8534_s15 + $0x58] sm:$0xff]  ;;  %v4009_v32 = vmax.f32 %v4008_v36, %v3754_v6  ;;  %v4083_v25 = vmax.f32 %v4082_v56, %v3818_v52  ;;  %v8562_v36 = vld [vmem:[#allocation76_spill] sm:$0xff] }
 0x787   : > { %v3370_v1 = vpop.permute.xlu1 %3369  ;;  %v3055_v55 = vpop.permute.xlu0 %3054  ;;  %v3790_v58 = vmul.f32 %v8562_v36, %v8024_v5  ;;  %v8034_v6 = vld [vmem:[#allocation2 + $0xd8] sm:$0xff]  ;;  %v8565_v56 = vld [vmem:[#allocation108_spill] sm:$0xff]  ;;  %v8571_v36 = vld [vmem:[#allocation110_spill] sm:$0xff] }
 0x788   : > { %v7961_v39 = vmul.f32 %v3370_v1, %v7888_v10  ;;  %v3852_v23 = vmul.f32 %v3055_v55, %v7958_v60  ;;  %5075 = vmatpush3.bf16.msra.mxu1 %v4491_v4  ;;  %v4010_v19 = vmax.f32 %v4009_v32, %v3755_v47  ;;  %v8010_v1 = vld [vmem:[#allocation2 + $0xc8] sm:$0xff]  ;;  %v4048_v55 = vmax.f32 %v4047_v40, %v3788_v38  ;;  %v8048_v38 = vld [vmem:[#allocation2 + $0xe0] sm:$0xff] }
 0x789   : > { %5076 = vmatprep.subr.bf16.mxu1 %v8362_v59  ;;  %v4084_v43 = vmax.f32 %v4083_v25, %v3819_v48  ;;  %v3789_v33 = vmul.f32 %v8561_v8, %v8010_v1  ;;  %v3821_v2 = vmul.f32 %v8564_v16, %v8010_v1  ;;  %v3822_v27 = vmul.f32 %v8565_v56, %v8024_v5  ;;  %v8574_v56 = vld [vmem:[#allocation80_spill] sm:$0xff] }
 0x78a   : > { %v7972_v7 = vmax.f32 %v4121_v17, %v3852_v23  ;;  %v4492_v17 = vpack.c.bf16 %v4482_v45, %v4481_v46  ;;  %v4011_v50 = vmax.f32 %v4010_v19, %v3756_v54  ;;  %v8560_v23 = vld [vmem:[#allocation41_spill] sm:$0xff]  ;;  %v3759_v51 = vmul.f32 %v8566_v53, %v8034_v6  ;;  %v8567_v19 = vld [vmem:[#allocation75_spill] sm:$0xff] }
 0x78b   : > { %v7974_v18 = vpop.permute.xlu1 %3214  ;;  %v7985_v37 = vpop.permute.xlu0 %3684  ;;  %v3757_v44 = vmul.f32 %v8560_v23, %v8010_v1  ;;  %v4049_v41 = vmax.f32 %v4048_v55, %v3789_v33  ;;  %v3791_v61 = vmul.f32 %v8567_v19, %v8034_v6  ;;  %v3792_v54 = vmul.f32 %v8568_v35, %v8048_v38  ;;  %v8569_v55 = vld [vmem:[#allocation46_spill] sm:$0xff]  ;;  %v8575_v19 = vld [vmem:[#allocation48_spill] sm:$0xff]  ;;  %v8576_v35 = vld [vmem:[#allocation109_spill] sm:$0xff] }
 0x78c   : > { %5077 = vmatpush3.bf16.msra.mxu1 %v4492_v17  ;;  %v4085_v17 = vmax.f32 %v4084_v43, %v3820_v12  ;;  %v3760_v30 = vmul.f32 %v8569_v55, %v8048_v38  ;;  %v8056_v12 = vld [vmem:[#allocation2 + $0xe8] sm:$0xff]  ;;  %v8570_v43 = vld [vmem:[#allocation107_spill] sm:$0xff]  ;;  %v8582_v28 = vmax.f32 %v7928_v21, %v7961_v39 }
 0x78d   : > { %5078 = vmatprep.subr.bf16.mxu1 %v8362_v59  ;;  %v4012_v45 = vmax.f32 %v4011_v50, %v3757_v44  ;;  %v4050_v63 = vmax.f32 %v4049_v41, %v3790_v58  ;;  %v3823_v23 = vmul.f32 %v8570_v43, %v8034_v6  ;;  %v3824_v58 = vmul.f32 %v8571_v36, %v8048_v38  ;;  %v8577_v43 = vld [vmem:[#allocation112_spill] sm:$0xff] }
 0x78e   : > { %v4086_v47 = vmax.f32 %v4085_v17, %v3821_v2  ;;  %v8572_v17 = vld [vmem:[#allocation45_spill] sm:$0xff]  ;;  %v8070_v2 = vld [vmem:[#allocation2 + $0xf0] sm:$0xff] }
 0x78f   : > { %v7991_v15 = vpop.permute.xlu1 %3059  ;;  %v7994_v42 = vpop.permute.xlu0 %3529  ;;  %v4013_v9 = vmax.f32 %v4012_v45, %v3758_v0  ;;  %v4051_v24 = vmax.f32 %v4050_v63, %v3791_v61  ;;  %v3761_v31 = vmul.f32 %v8572_v17, %v8056_v12  ;;  %v8573_v0 = vld [vmem:[#allocation77_spill] sm:$0xff]  ;;  %v3762_v61 = vmul.f32 %v8575_v19, %v8070_v2 }
 0x790   : > { %v4087_v50 = vmax.f32 %v4086_v47, %v3822_v27  ;;  %v3793_v16 = vmul.f32 %v8573_v0, %v8056_v12  ;;  %v3794_v27 = vmul.f32 %v8574_v56, %v8070_v2 }
 0x791   : > { %v4014_v25 = vmax.f32 %v4013_v9, %v3759_v51  ;;  %v4052_v33 = vmax.f32 %v4051_v24, %v3792_v54  ;;  %v3825_v54 = vmul.f32 %v8576_v35, %v8056_v12 }
 0x792   : > { %v4088_v41 = vmax.f32 %v4087_v50, %v3823_v23  ;;  %v3826_v23 = vmul.f32 %v8577_v43, %v8070_v2 }
 0x793   : > { %v8002_v20 = vpop.permute.xlu1 %3689  ;;  %v8006_v3 = vpop.permute.xlu0 %3374  ;;  %v4015_v8 = vmax.f32 %v4014_v25, %v3760_v30  ;;  %v4053_v47 = vmax.f32 %v4052_v33, %v3793_v16  ;;  %v8080_v25 = vld [vmem:[#allocation2 + $0xf8] sm:$0xff] }
 0x794   : > { %v4089_v51 = vmax.f32 %v4088_v41, %v3824_v58  ;;  %v8578_v33 = vld [vmem:[#allocation47_spill] sm:$0xff] }
 0x795   : > { %v4016_v63 = vmax.f32 %v4015_v8, %v3761_v31  ;;  %v4054_v55 = vmax.f32 %v4053_v47, %v3794_v27  ;;  %v3763_v36 = vmul.f32 %v8578_v33, %v8080_v25  ;;  %v8579_v58 = vld [vmem:[#allocation79_spill] sm:$0xff] }
 0x796   : > { %v4090_v8 = vmax.f32 %v4089_v51, %v3825_v54  ;;  %v3795_v41 = vmul.f32 %v8579_v58, %v8080_v25 }
 0x797   : > { %v8014_v29 = vpop.permute.xlu1 %3534  ;;  %v8016_v4 = vpop.permute.xlu0 %3219  ;;  %v4017_v50 = vmax.f32 %v4016_v63, %v3762_v61  ;;  %v8580_v63 = vld [vmem:[#allocation111_spill] sm:$0xff] }
 0x798   : > { %v4055_v0 = vmax.f32 %v4054_v55, %v3795_v41  ;;  %v4091_v56 = vmax.f32 %v4090_v8, %v3826_v23  ;;  %v3827_v27 = vmul.f32 %v8580_v63, %v8080_v25  ;;  %v3853_v55 = vmul.f32 %v7991_v15, %v8010_v1 }
 0x799   : > { %v4018_v31 = vmax.f32 %v4017_v50, %v3763_v36 }
 0x79a   : > { %v4056_v61 = vrot.slane %v4055_v0, 4  ;;  %v4092_v35 = vmax.f32 %v4091_v56, %v3827_v27  ;;  %v4123_v56 = vmax.f32 %v7972_v7, %v3853_v55 }
 0x79b   : > { %v8026_v46 = vpop.permute.xlu1 %3379  ;;  %v8030_v11 = vpop.permute.xlu0 %3064  ;;  %v4019_v19 = vrot.slane %v4018_v31, 4 }
 0x79c   : > { %v4057_v33 = vmax.f32 %v4055_v0, %v4056_v61  ;;  %v4093_v50 = vrot.slane %v4092_v35, 4  ;;  %v3854_v41 = vmul.f32 %v8030_v11, %v8024_v5  ;;  %v3884_v11 = vmul.f32 %v7974_v18, %v7958_v60 }
 0x79d   : > { %v4020_v43 = vmax.f32 %v4018_v31, %v4019_v19 }
 0x79e   : > { %v4058_v36 = vrot.slane %v4057_v33, 2  ;;  %v4094_v59 = vmax.f32 %v4092_v35, %v4093_v50  ;;  %v4124_v15 = vmax.f32 %v4123_v56, %v3854_v41  ;;  %v3978_v35 = vmul.f32 %v7985_v37, %v7856_v22 }
 0x79f   : > { %v8038_v32 = vpop.permute.xlu1 %3224  ;;  %v8040_v52 = vpop.permute.xlu0 %3694  ;;  %v4021_v8 = vrot.slane %v4020_v43, 2 }
 0x7a0   : > { %v8116_v19 = vmax.f32 %v4057_v33, %v4058_v36  ;;  %v4095_v26 = vrot.slane %v4094_v59, 2  ;;  %v3916_v33 = vmul.f32 %v8006_v3, %v7958_v60  ;;  %v3979_v3 = vmul.f32 %v8002_v20, %v7888_v10 }
 0x7a1   : > { %v8114_v27 = vmax.f32 %v4020_v43, %v4021_v8  ;;  %v3947_v43 = vmul.f32 %v7994_v42, %v7888_v10  ;;  %v4159_v42 = vmax.f32 %v4158_v49, %v3884_v11 }
 0x7a2   : > { %v4060_v18 = vrot.slane %v8116_v19, 1  ;;  %v8133_v36 = vmax.f32 %v4094_v59, %v4095_v26  ;;  %v3917_v59 = vmul.f32 %v8026_v46, %v8010_v1  ;;  %v4196_v10 = vmax.f32 %v8582_v28, %v3916_v33 }
 0x7a3   : > { %v3070_v40 = vpop.permute.xlu1 %3069  ;;  %v8052_v48 = vpop.permute.xlu0 %3539  ;;  %v4023_v55 = vrot.slane %v8114_v27, 1  ;;  %v4232_v14 = vmax.f32 %v7945_v34, %v3947_v43 }
 0x7a4   : > { %v3855_v31 = vmul.f32 %v3070_v40, %v8034_v6 }
 0x7a6   : > { %v4125_v7 = vmax.f32 %v4124_v15, %v3855_v31  ;;  %v4197_v15 = vmax.f32 %v4196_v10, %v3917_v59  ;;  %v4097_v10 = vrot.slane %v8133_v36, 1 }
 0x7a7   : > { %v8060_v44 = vpop.permute.xlu1 %3699  ;;  %v8062_v45 = vpop.permute.xlu0 %3384 }
 0x7a8   : > { %v3918_v21 = vmul.f32 %v8062_v45, %v8024_v5 }
 0x7ab   : > { %v8072_v9 = vpop.permute.xlu1 %3544  ;;  %v8076_v53 = vpop.permute.xlu0 %3229 }
 0x7ac   : > { %v3887_v20 = vmul.f32 %v8076_v53, %v8034_v6 }
 0x7af   : > { %v8084_v24 = vpop.permute.xlu1 %3389  ;;  %v3075_v30 = vpop.permute.xlu0 %3074 }
 0x7b0   : > { %v3856_v61 = vmul.f32 %v3075_v30, %v8048_v38  ;;  %v3885_v30 = vmul.f32 %v8016_v4, %v8010_v1  ;;  %v3886_v4 = vmul.f32 %v8038_v32, %v8024_v5  ;;  %v3919_v11 = vmul.f32 %v8084_v24, %v8034_v6 }
 0x7b2   : > { %v4126_v8 = vmax.f32 %v4125_v7, %v3856_v61  ;;  %v4160_v49 = vmax.f32 %v4159_v42, %v3885_v30  ;;  %v4198_v30 = vmax.f32 %v4197_v15, %v3918_v21 }
 0x7b3   : > { %v8092_v17 = vpop.permute.xlu1 %3234  ;;  %v8094_v16 = vpop.permute.xlu0 %3704 }
 0x7b4   : > { %v4161_v31 = vmax.f32 %v4160_v49, %v3886_v4  ;;  %v3888_v39 = vmul.f32 %v8092_v17, %v8048_v38  ;;  %v3982_v17 = vmul.f32 %v8094_v16, %v8024_v5 }
 0x7b6   : > { %v4162_v61 = vmax.f32 %v4161_v31, %v3887_v20 }
 0x7b7   : > { %v3080_v47 = vpop.permute.xlu1 %3079  ;;  %v8098_v51 = vpop.permute.xlu0 %3549 }
 0x7b8   : > { %v3857_v40 = vmul.f32 %v3080_v47, %v8056_v12  ;;  %v8581_v47 = vmax.f32 %v7890_v57, %v7917_v13  ;;  %v3980_v57 = vmul.f32 %v8040_v52, %v7958_v60  ;;  %v3949_v13 = vmul.f32 %v8052_v48, %v8010_v1 }
 0x7b9   : > { %v3950_v48 = vmul.f32 %v8072_v9, %v8024_v5  ;;  %v3951_v24 = vmul.f32 %v8098_v51, %v8034_v6 }
 0x7ba   : > { %v4268_v41 = vmax.f32 %v8581_v47, %v3978_v35  ;;  %v4127_v26 = vmax.f32 %v4126_v8, %v3857_v40 }
 0x7bb   : > { %v8100_v54 = vpop.permute.xlu1 %3709  ;;  %v8102_v58 = vpop.permute.xlu0 %3394 }
 0x7bc   : > { %v4269_v34 = vmax.f32 %v4268_v41, %v3979_v3  ;;  %v4199_v3 = vmax.f32 %v4198_v30, %v3919_v11 }
 0x7be   : > { %v4270_v45 = vmax.f32 %v4269_v34, %v3980_v57 }
 0x7bf   : > { %v8106_v23 = vpop.permute.xlu1 %3554  ;;  %v3240_v63 = vpop.permute.xlu0 %3239 }
 0x7c0   : > { %v3889_v35 = vmul.f32 %v3240_v63, %v8056_v12  ;;  %v3983_v63 = vmul.f32 %v8100_v54, %v8034_v6 }
 0x7c3   : > { %v8112_v0 = vpop.permute.xlu1 %3399  ;;  %v3085_v62 = vpop.permute.xlu0 %3084 }
 0x7c4   : > { %v3858_v22 = vmul.f32 %v3085_v62, %v8070_v2  ;;  %v3948_v62 = vmul.f32 %v8014_v29, %v7958_v60  ;;  %v3981_v60 = vmul.f32 %v8060_v44, %v8010_v1  ;;  %v4163_v1 = vmax.f32 %v4162_v61, %v3888_v39 }
 0x7c5   : > { %v3920_v44 = vmul.f32 %v8102_v58, %v8048_v38  ;;  %v3921_v16 = vmul.f32 %v8112_v0, %v8056_v12  ;;  %v3952_v58 = vmul.f32 %v8106_v23, %v8048_v38  ;;  %v4061_v39 = vmax.f32 %v8116_v19, %v4060_v18 }
 0x7c6   : > { %v4128_v29 = vmax.f32 %v4127_v26, %v3858_v22  ;;  %v4233_v53 = vmax.f32 %v4232_v14, %v3948_v62  ;;  %v4271_v8 = vmax.f32 %v4270_v45, %v3981_v60  ;;  %v4164_v5 = vmax.f32 %v4163_v1, %v3889_v35 }
 0x7c7   : > { %v3245_v50 = vpop.permute.xlu1 %3244  ;;  %v3715_v37 = vpop.permute.xlu0 %3714  ;;  %v4200_v51 = vmax.f32 %v4199_v3, %v3920_v44  ;;  %v4285_v18 = vpack.c.bf16 %v4061_v39, %v4061_v39 }
 0x7c8   : > { %v4234_v40 = vmax.f32 %v4233_v53, %v3949_v13  ;;  %v3890_v9 = vmul.f32 %v3245_v50, %v8070_v2  ;;  %v4272_v47 = vmax.f32 %v4271_v8, %v3982_v17  ;;  %v3984_v50 = vmul.f32 %v3715_v37, %v8048_v38 }
 0x7c9   : > { %v4201_v49 = vmax.f32 %v4200_v51, %v3921_v16 }
 0x7ca   : > { %v4235_v42 = vmax.f32 %v4234_v40, %v3950_v48  ;;  %v4165_v59 = vmax.f32 %v4164_v5, %v3890_v9  ;;  %v4273_v14 = vmax.f32 %v4272_v47, %v3983_v63  ;;  %v4024_v48 = vmax.f32 %v8114_v27, %v4023_v55 }
 0x7cb   : > { %v3090_v32 = vpop.permute.xlu1 %3089  ;;  %v3560_v56 = vpop.permute.xlu0 %3559 }
 0x7cc   : > { %v3859_v46 = vmul.f32 %v3090_v32, %v8080_v25  ;;  %v4236_v26 = vmax.f32 %v4235_v42, %v3951_v24  ;;  %v3953_v23 = vmul.f32 %v3560_v56, %v8056_v12  ;;  %v4274_v32 = vmax.f32 %v4273_v14, %v3984_v50 }
 0x7cd   : > { %v4284_v1 = vpack.c.bf16 %v4024_v48, %v4024_v48  ;;  %v4332_v24 = vunpack.c.l.b16 %v4285_v18 }
 0x7ce   : > { %v4129_v52 = vmax.f32 %v4128_v29, %v3859_v46  ;;  %v4237_v37 = vmax.f32 %v4236_v26, %v3952_v58 }
 0x7cf   : > { %v3720_v7 = vpop.permute.xlu1 %3719  ;;  %v3405_v33 = vpop.permute.xlu0 %3404 }
 0x7d0   : > { %v4130_v43 = vrot.slane %v4129_v52, 4  ;;  %v3922_v6 = vmul.f32 %v3405_v33, %v8070_v2  ;;  %v3985_v0 = vmul.f32 %v3720_v7, %v8056_v12  ;;  %v4098_v12 = vmax.f32 %v8133_v36, %v4097_v10 }
 0x7d1   : > { %v4238_v56 = vmax.f32 %v4237_v37, %v3953_v23 }
 0x7d2   : > { %v4131_v22 = vmax.f32 %v4129_v52, %v4130_v43  ;;  %v4202_v46 = vmax.f32 %v4201_v49, %v3922_v6  ;;  %v4275_v53 = vmax.f32 %v4274_v32, %v3985_v0  ;;  %v4286_v17 = vpack.c.bf16 %v4098_v12, %v4098_v12  ;;  %v4499_v12 = vld [vmem:[%s8583_s29 + $0x18] sm:$0xff] }
 0x7d3   : > { %v3565_v4 = vpop.permute.xlu1 %3564  ;;  %v3250_v62 = vpop.permute.xlu0 %3249 }
 0x7d4   : > { %v4132_v41 = vrot.slane %v4131_v22, 2  ;;  %v3891_v54 = vmul.f32 %v3250_v62, %v8080_v25  ;;  %v3954_v34 = vmul.f32 %v3565_v4, %v8070_v2 }
 0x7d6   : > { %v4133_v28 = vmax.f32 %v4131_v22, %v4132_v41  ;;  %v4166_v20 = vmax.f32 %v4165_v59, %v3891_v54  ;;  %v4239_v7 = vmax.f32 %v4238_v56, %v3954_v34  ;;  %v4333_v22 = vunpack.c.l.b16 %v4286_v17  ;;  %v4509_v17 = vld [vmem:[%s8583_s29 + $0x68] sm:$0xff] }
 0x7d7   : > { %v3725_v38 = vpop.permute.xlu1 %3724  ;;  %v3410_v29 = vpop.permute.xlu0 %3409 }
 0x7d8   : > { %v4134_v57 = vrot.slane %v4133_v28, 1  ;;  %v3986_v13 = vmul.f32 %v3725_v38, %v8070_v2  ;;  %v4167_v31 = vrot.slane %v4166_v20, 4  ;;  %v3923_v21 = vmul.f32 %v3410_v29, %v8080_v25  ;;  %v4496_v29 = vld [vmem:[%s8583_s29] sm:$0xff] }
 0x7da   : > { %v4168_v15 = vmax.f32 %v4166_v20, %v4167_v31  ;;  %v4203_v60 = vmax.f32 %v4202_v46, %v3923_v21  ;;  %v4135_v61 = vmax.f32 %v4133_v28, %v4134_v57  ;;  %v4276_v2 = vmax.f32 %v4275_v53, %v3986_v13  ;;  %v4497_v46 = vld [vmem:[%s8583_s29 + $0x8] sm:$0xff]  ;;  %v4498_v53 = vld [vmem:[%s8583_s29 + $0x10] sm:$0xff] }
 0x7db   : > { %v3730_v52 = vpop.permute.xlu1 %3729  ;;  %v3570_v35 = vpop.permute.xlu0 %3569  ;;  %v4512_v21 = vpack.c.bf16 %v4497_v46, %v4496_v29  ;;  %v4513_v56 = vpack.c.bf16 %v4499_v12, %v4498_v53 }
 0x7dc   : > { %v3987_v11 = vmul.f32 %v3730_v52, %v8080_v25  ;;  %v4169_v45 = vrot.slane %v4168_v15, 2  ;;  %v4204_v40 = vrot.slane %v4203_v60, 4  ;;  %v3955_v19 = vmul.f32 %v3570_v35, %v8080_v25  ;;  %v4501_v52 = vld [vmem:[%s8583_s29 + $0x28] sm:$0xff]  ;;  %v4504_v35 = vld [vmem:[%s8583_s29 + $0x40] sm:$0xff] }
 0x7dd   : > { %v4287_v44 = vpack.c.bf16 %v4135_v61, %v4135_v61  ;;  %v4331_v25 = vunpack.c.l.b16 %v4284_v1  ;;  %v4502_v61 = vld [vmem:[%s8583_s29 + $0x30] sm:$0xff]  ;;  %v4483_v1 = vld [vmem:[%s8534_s15 + $0x60] sm:$0xff] }
 0x7de   : > { %v4277_v36 = vmax.f32 %v4276_v2, %v3987_v11  ;;  %v4170_v43 = vmax.f32 %v4168_v15, %v4169_v45  ;;  %v4205_v33 = vmax.f32 %v4203_v60, %v4204_v40  ;;  %v4240_v30 = vmax.f32 %v4239_v7, %v3955_v19  ;;  %v4500_v60 = vld [vmem:[%s8583_s29 + $0x20] sm:$0xff]  ;;  %v4503_v2 = vld [vmem:[%s8583_s29 + $0x38] sm:$0xff]  ;;  %v4505_v7 = vld [vmem:[%s8583_s29 + $0x48] sm:$0xff] }
 0x7df   : > { %v4334_v16 = vunpack.c.l.b16 %v4287_v44  ;;  %v4340_v41 = vsel %vm4339_vm4, %v4332_v24, %v4331_v25  ;;  %v8584_v15 = vmov 0.0   ;;  %v4514_v48 = vpack.c.bf16 %v4501_v52, %v4500_v60  ;;  %v4506_v40 = vld [vmem:[%s8583_s29 + $0x50] sm:$0xff]  ;;  %v4507_v19 = vld [vmem:[%s8583_s29 + $0x58] sm:$0xff]  ;;  %v4484_v44 = vld [vmem:[%s8534_s15 + $0x68] sm:$0xff] }
 0x7e0   : > { %v4278_v9 = vrot.slane %v4277_v36, 4  ;;  %v4171_v27 = vrot.slane %v4170_v43, 1  ;;  %v4206_v55 = vrot.slane %v4205_v33, 2  ;;  %v4241_v8 = vrot.slane %v4240_v30, 4  ;;  %v4511_v24 = vld [vmem:[%s8583_s29 + $0x78] sm:$0xff] }
 0x7e1   : > { %v4342_v54 = vsel %vm4341_vm5, %v4333_v22, %v4340_v41  ;;  %v4515_v11 = vpack.c.bf16 %v4503_v2, %v4502_v61  ;;  %v4516_v45 = vpack.c.bf16 %v4505_v7, %v4504_v35  ;;  %v4517_v18 = vpack.c.bf16 %v4507_v19, %v4506_v40  ;;  %v4486_v25 = vld [vmem:[%s8534_s15 + $0x78] sm:$0xff] }
 0x7e2   : > { %v4279_v63 = vmax.f32 %v4277_v36, %v4278_v9  ;;  %v4172_v42 = vmax.f32 %v4170_v43, %v4171_v27  ;;  %v4207_v3 = vmax.f32 %v4205_v33, %v4206_v55  ;;  %v4242_v5 = vmax.f32 %v4240_v30, %v4241_v8  ;;  %v4508_v36 = vld [vmem:[%s8583_s29 + $0x60] sm:$0xff]  ;;  %v4510_v8 = vld [vmem:[%s8583_s29 + $0x70] sm:$0xff] }
 0x7e3   : > { %v4344_v14 = vsel %vm4343_vm6, %v4334_v16, %v4342_v54  ;;  %v4518_v43 = vpack.c.bf16 %v4509_v17, %v4508_v36  ;;  %v4750_v33 = vld [vmem:[%s8585_s1] ss:$0 sm:$0xff]  ;;  %v4493_v55 = vpack.c.bf16 %v4484_v44, %v4483_v1  ;;  %v4519_v22 = vpack.c.bf16 %v4511_v24, %v4510_v8 }
 0x7e4   : > { %v4280_v4 = vrot.slane %v4279_v63, 2  ;;  %v4288_v47 = vpack.c.bf16 %v4172_v42, %v4172_v42  ;;  %v4208_v58 = vrot.slane %v4207_v3, 1  ;;  %v4243_v50 = vrot.slane %v4242_v5, 2 }
 0x7e5   : > { %5079 = vmatpush3.bf16.msra.mxu1 %v4493_v55 }
 0x7e6   : > { %v4281_v62 = vmax.f32 %v4279_v63, %v4280_v4  ;;  %v4335_v51 = vunpack.c.l.b16 %v4288_v47  ;;  %v4209_v59 = vmax.f32 %v4207_v3, %v4208_v58  ;;  %v4244_v6 = vmax.f32 %v4242_v5, %v4243_v50  ;;  %5080 = vmatprep.subr.bf16.mxu1 %v8584_v15  ;;  %v4485_v5 = vld [vmem:[%s8534_s15 + $0x70] sm:$0xff]  ;;  %v4749_v47 = vld [vmem:[%s8586_s17] ss:$0 sm:$0xff] }
 0x7e7   : > { %v4494_v4 = vpack.c.bf16 %v4486_v25, %v4485_v5 }
 0x7e8   : > { %v4282_v26 = vrot.slane %v4281_v62, 1  ;;  %v4289_v28 = vpack.c.bf16 %v4209_v59, %v4209_v59  ;;  %v4245_v0 = vrot.slane %v4244_v6, 1  ;;  %v4346_v10 = vsel %vm4345_vm7, %v4335_v51, %v4344_v14 }
 0x7e9   : > { %5081 = vmatpush3.bf16.msra.mxu1 %v4494_v4 }
 0x7ea   : > { %v4283_v49 = vmax.f32 %v4281_v62, %v4282_v26  ;;  %v4336_v23 = vunpack.c.l.b16 %v4289_v28  ;;  %v4246_v20 = vmax.f32 %v4244_v6, %v4245_v0 }
 0x7ec   : > { %v4291_v38 = vpack.c.bf16 %v4283_v49, %v4283_v49  ;;  %v4290_v37 = vpack.c.bf16 %v4246_v20, %v4246_v20  ;;  %v4348_v32 = vsel %vm4347_vm8, %v4336_v23, %v4346_v10  ;;  %v4751_v10 = vld [vmem:[%s8587_s30] ss:$0 sm:$0xff] }
 0x7ee   : > { %v4338_v57 = vunpack.c.l.b16 %v4291_v38  ;;  %v4337_v13 = vunpack.c.l.b16 %v4290_v37 }
 0x7f0   : > { %v4350_v34 = vsel %vm4349_vm9, %v4337_v13, %v4348_v32 }
 0x7f1   : > { %v4352_v31 = vsel %vm4351_vm10, %v4338_v57, %v4350_v34 }
 0x7f2   : > { %v4353_v39 = vpack.c.b16 %v4352_v31, %v4352_v31 }
 0x7f4   : > { %5023 = vmatmul.mubr.bf16.vlgmr.msra.gmra.mrb[0].mxu0 %v4353_v39 }
 0x7f5   : > { %5047 = vmatpush3.bf16.msra.mxu0 %v4512_v21  ;;  %5062 = vmatprep.mubr.msk.bf16.mxu0 %vm5432_vm3, %v8584_v15 }
 0x7f6   : > { %5048 = vmatprep.subr.bf16.mxu0 %v8584_v15 }
 0x7f9   : > { %5049 = vmatpush3.bf16.msra.mxu0 %v4513_v56 }
 0x7fa   : > { %5050 = vmatprep.subr.bf16.mxu0 %v8584_v15 }
 0x7fd   : > { %5051 = vmatpush3.bf16.msra.mxu0 %v4514_v48 }
 0x7fe   : > { %5052 = vmatprep.subr.bf16.mxu0 %v8584_v15 }
 0x801   : > { %5053 = vmatpush3.bf16.msra.mxu0 %v4515_v11 }
 0x802   : > { %5054 = vmatprep.subr.bf16.mxu0 %v8584_v15 }
 0x805   : > { %5055 = vmatpush3.bf16.msra.mxu0 %v4516_v45 }
 0x806   : > { %5056 = vmatprep.subr.bf16.mxu0 %v8584_v15 }
 0x809   : > { %5057 = vmatpush3.bf16.msra.mxu0 %v4517_v18 }
 0x80a   : > { %5058 = vmatprep.subr.bf16.mxu0 %v8584_v15 }
 0x80d   : > { %5059 = vmatpush3.bf16.msra.mxu0 %v4518_v43 }
 0x80e   : > { %5060 = vmatprep.subr.bf16.mxu0 %v8584_v15 }
 0x811   : > { %5061 = vmatpush3.bf16.msra.mxu0 %v4519_v22 }
 0x843   : > { %v4463_v30 = vpop.f32.mrb[0].mxu1 }
 0x844   : > { %v4464_v9 = vadd.f32 %v4750_v33, %v4463_v30  ;;  %v5044_v27 = vpop.f32.mrb[1].mxu1 }
 0x845   : > { %v4466_v63 = vpop.f32.mrb[2].mxu1 }
 0x846   : > { %v4469_v42 = vmax.f32 %v4464_v9, 0.0  ;;  %v5045_v3 = vpop.f32.mrb[3].mxu1 }
 0x848   : > { %v4495_v16 = vpack.c.bf16 %v4469_v42, %v4469_v42 }
 0x84a   : > { %5063 = vmatmul.mubr.bf16.vlgmr.msra.gmra.mrb[4].mxu0 %v4495_v16 }
 0x8c7   : > { %v4389_v58 = vpop.f32.mrb[0].mxu0 }
 0x8c8   : > { %v4390_v50 = vadd.f32 %v4749_v47, %v4389_v58  ;;  %v5024_v41 = vpop.f32.mrb[1].mxu0 }
 0x8c9   : > { %v4392_v62 = vpop.f32.mrb[2].mxu0 }
 0x8ca   : > { %v4395_v51 = vmax.f32 %v4390_v50, 0.0  ;;  %v5025_v59 = vpop.f32.mrb[3].mxu0 }
 0x8cc   : > { %v4470_v6 = vpack.c.bf16 %v4395_v51, %v4395_v51 }
 0x8ce   : > { %5083 = vmatmul.mubr.bf16.vlgmr.msra.gmra.mrb[4].mxu1 %v4470_v6 }
 0x91d   : > { %v4554_v54 = vpop.f32.mrb[4].mxu0 }
 0x91e   : > { %v5064_v26 = vpop.f32.mrb[5].mxu0 }
 0x91f   : > { %v4557_v14 = vpop.f32.mrb[6].mxu0 }
 0x920   : > { %v5065_v28 = vpop.f32.mrb[7].mxu0 }
 0x9a1   : > { %v4594_v0 = vpop.f32.mrb[4].mxu1 }
 0x9a2   : > { %v4595_v49 = vadd.f32 %v4594_v0, %v4554_v54  ;;  %v5084_v23 = vpop.f32.mrb[5].mxu1 }
 0x9a3   : > { %v4597_v20 = vpop.f32.mrb[6].mxu1 }
 0x9a4   : > { %v4607_v38 = vadd.f32 %v4751_v10, %v4595_v49  ;;  %v5085_v37 = vpop.f32.mrb[7].mxu1 }
 0x9a6   : > { %v4752_v32 = vmul.f32 -1.442695, %v4607_v38 }
 0x9a8   : > { %5317 = vpow2.f32 %v4752_v32 }
 0x9b2   : > { %v5318_v57 = vpop.eup %5317 }
 0x9b3   : > { %v4611_v13 = vadd.f32 1.0, %v5318_v57 }
 0x9b5   : > { %5319 = vrcp.f32 %v4611_v13 }
 0x9bf   : > { %v5320_v29 = vpop.eup %5319 }
 0x9c0   : > { %4614 = vst [vmem:[#allocation8] sm:$0xff] %v5320_v29 }
 0x9c1 PF: > { %s8588_s11 = sadd.s32 4294967295, %s5421_s26   ;;  %s5433_s27 = smov [#allocation8]  }
 0x9c2   : > { %p8283_p13 = scmp.eq.s32.totalorder %s8588_s11, 11  ;;  %s4622_s23 = sshll.u32 %s5433_s27, 4  ;;  %s4623_s23 = int_to_ptr.vmem [resolvable:$true] %s4622_s23 }
 0x9c3   : > { %s5321_s24 = scalar_lea.vmem %s4623_s23, 128  ;;  %p5328_p3 = scmp.lt.s32.totalorder %s4623_s23, %s4623_s23 }
 0x9c4   : > { %p5322_p0 = scmp.ne.s32.totalorder %s4623_s23, %s5321_s24  ;;  %p5329_p4 = scmp.lt.s32.totalorder %s5321_s24, %s5321_s24 }
 0x9c6   : > { %p5323_p1 = pnand %p5322_p0, %p8283_p13  ;;  %p5330_p5 = por %p5329_p4, %p5328_p3 }
 0x9c8   : > { %p5324_p2 = pneg %p5323_p1 }
 0x9ca   : > { %p5331_p6 = pnand %p5330_p5, %p5324_p2 }
 0x9cc   : > { %5334 = shalt.err (!%p5331_p6)
}
 0x9cd   : > { %s8590_s28 = sld [smem:[#allocation124_spill]] }
 0x9d3   : > { %s5335_s13 = scalar_lea.hbm %s8590_s28, 128 }
 0x9d4   : > { %p5336_p7 = scmp.ne.s32.totalorder %s8590_s28, %s5335_s13  ;;  %p5341_p10 = scmp.lt.u32.totalorder %s5335_s13, %s8590_s28 }
 0x9d6   : > { %p5337_p8 = pnand %p5336_p7, %p8283_p13 }
 0x9d8   : > { %p5338_p9 = pneg %p5337_p8 }
 0x9da   : > { %p5343_p11 = pnand %p5341_p10, %p5338_p9 }
 0x9dc   : > { %5346 = shalt.err (!%p5343_p11)
}
 0x9dd   : > { %5127 = dma.vmem_to_hbm [thread:$0]  (%p8283_p13), %s4623_s23, 128, %s8590_s28, [#allocation9]  }
 0x9de   : > { %5384 = dma.done.wait (%p8283_p13), [#allocation9], 128  }
 0x9df   : > { %5386 = vsyncadd (%p8283_p13), [#allocation9], 4294967168 }
 0x9e0 PF: > { %s26_s26 = sadd.s32 1, %s5421_s26   ;;  %s8591_s20 = sld [smem:[#allocation11_spill]] }
 0x9e1   : > { %p23_p12 = scmp.ge.s32.totalorder %s26_s26, 14   ;;  %s8592_s21 = sld [smem:[#allocation12_spill]] }
 0x9e2   : > { %s8593_s22 = sld [smem:[#allocation13_spill]]  ;;  %s8594_s23 = sld [smem:[#allocation14_spill]] }
 0x9e3   : > { %s8595_s24 = sld [smem:[#allocation15_spill]]  ;;  %s8596_s25 = sld [smem:[#allocation16_spill]] }
 0x9e4   : > { %s8597_s18 = smov %s5393_s19  ;;  %s8598_s19 = smov %s5580_s14 }
 0x9e5   :  { %25 = sbr.rel (!%p23_p12) target bundleno = 13 (0xd), region = 188 }
 0x9ec   :  { %4635 = vsyncpa [#allocation9], 1 }
 0x9ed   :  { %4637 = vsyncpa [#allocation9 + $0x1], 1 }

</bundles_post_ra>
